<compile_context>
chip_gen: v5e
topology: v5e:2x2
jax: 0.10.0
libtpu: 0.0.40
codegen_flags: <defaults>
</compile_context>

<pallas_src>
import functools

import jax
import jax.numpy as jnp
from jax.experimental import pallas as pl
from jax.experimental.pallas import tpu as pltpu

# Flip to jnp.bfloat16 on v6e/v7x for ~2x MXU rate and half the DMA/VMEM bytes
# (accumulation stays f32 via preferred_element_type); kept f32 here so the
# correctness check against the XLA reference stays tight.
COMPUTE_DTYPE = jnp.float32

_TM_CONV = 512   # row tile for the conv matmuls (K <= 576 -> VMEM-safe on v5e)
_TM_HEAD = 256   # row tile for the fused FC head (K = 3136 -> keep blocks small)
_NPAD = 128      # lane-dense padded output width for the FC head


# ----------------------------------------------------------------------------
# Pallas kernels
# ----------------------------------------------------------------------------
def _mm_bias_kernel(a_ref, w_ref, b_ref, o_ref, *, relu):
    """o = a @ w + b (f32 accumulate on MXU), optional fused ReLU."""
    acc = jnp.dot(a_ref[...], w_ref[...], preferred_element_type=jnp.float32)
    acc = acc + b_ref[...]
    if relu:
        acc = jnp.maximum(acc, 0.0)
    o_ref[...] = acc.astype(o_ref.dtype)


def matmul_bias(a, w_t, b_row, *, relu, tm=_TM_CONV):
    """M-tiled matmul: a:(M,K) @ w_t:(K,N) + b:(1,N).  Weights stay VMEM-resident."""
    M, K = a.shape
    N = w_t.shape[1]
    a = a.astype(COMPUTE_DTYPE)
    w_t = w_t.astype(COMPUTE_DTYPE)
    tm_eff = M if M <= tm else tm            # full-dim block when M is small
    grid_m = pl.cdiv(M, tm_eff)
    return pl.pallas_call(
        functools.partial(_mm_bias_kernel, relu=relu),
        out_shape=jax.ShapeDtypeStruct((M, N), jnp.float32),
        grid=(grid_m,),
        in_specs=[
            pl.BlockSpec((tm_eff, K), lambda i: (i, 0)),
            pl.BlockSpec((K, N), lambda i: (0, 0)),    # constant index -> resident
            pl.BlockSpec((1, N), lambda i: (0, 0)),
        ],
        out_specs=pl.BlockSpec((tm_eff, N), lambda i: (i, 0)),
        compiler_params=pltpu.CompilerParams(
            dimension_semantics=("parallel",)),
    )(a, w_t, b_row)


def _fc_head_kernel(x_ref, w1_ref, b1_ref, w2_ref, b2_ref, o_ref, *,
                    dueling, n_actions):
    """Fused fc1(+ReLU) + fc2 / dueling head.  Hidden activation never leaves VMEM."""
    h = jnp.dot(x_ref[...], w1_ref[...],
                preferred_element_type=jnp.float32) + b1_ref[...]
    h = jnp.maximum(h, 0.0)
    out = jnp.dot(h.astype(w2_ref.dtype), w2_ref[...],
                  preferred_element_type=jnp.float32) + b2_ref[...]
    if dueling:
        # Padded layout: col 0 = value, cols 1..n_actions = advantage, rest = 0.
        col = jax.lax.broadcasted_iota(jnp.int32, out.shape, 1)
        adv_mask = (col >= 1) & (col < 1 + n_actions)
        a_mean = jnp.sum(jnp.where(adv_mask, out, 0.0), axis=1,
                         keepdims=True) * (1.0 / n_actions)
        out = out[:, 0:1] + out - a_mean   # cols 1..n_actions now hold q
    o_ref[...] = out.astype(o_ref.dtype)


def fc_head(x, w1_t, b1_row, w2_t, b2_row, *, dueling, n_actions, tm=_TM_HEAD):
    M, K = x.shape
    H = w1_t.shape[1]
    N = w2_t.shape[1]
    x = x.astype(COMPUTE_DTYPE)
    w1_t = w1_t.astype(COMPUTE_DTYPE)
    w2_t = w2_t.astype(COMPUTE_DTYPE)
    tm_eff = M if M <= tm else tm
    grid_m = pl.cdiv(M, tm_eff)
    return pl.pallas_call(
        functools.partial(_fc_head_kernel, dueling=dueling, n_actions=n_actions),
        out_shape=jax.ShapeDtypeStruct((M, N), jnp.float32),
        grid=(grid_m,),
        in_specs=[
            pl.BlockSpec((tm_eff, K), lambda i: (i, 0)),
            pl.BlockSpec((K, H), lambda i: (0, 0)),
            pl.BlockSpec((1, H), lambda i: (0, 0)),
            pl.BlockSpec((H, N), lambda i: (0, 0)),
            pl.BlockSpec((1, N), lambda i: (0, 0)),
        ],
        out_specs=pl.BlockSpec((tm_eff, N), lambda i: (i, 0)),
        compiler_params=pltpu.CompilerParams(
            dimension_semantics=("parallel",)),
    )(x, w1_t, b1_row, w2_t, b2_row)


# ----------------------------------------------------------------------------
# Glue: NHWC im2col (pure slicing / reshape; fused by XLA under jit)
# ----------------------------------------------------------------------------
def im2col_nhwc(x, k, s):
    """x: (B, H, W, C) NHWC -> cols: (B*Ho*Wo, k*k*C), column order (kh, kw, C)."""
    B, H, W, C = x.shape
    Ho = (H - k) // s + 1
    Wo = (W - k) // s + 1
    patches = []
    for kh in range(k):
        for kw in range(k):
            patches.append(x[:, kh:kh + s * Ho:s, kw:kw + s * Wo:s, :])
    col = jnp.concatenate(patches, axis=-1)          # (B, Ho, Wo, k*k*C)
    return col.reshape(B * Ho * Wo, k * k * C), B, Ho, Wo


def conv2d_relu_nhwc(x, w_t, b_row, *, k, stride):
    """Conv2d + ReLU, NHWC-resident.  w_t: (k*k*Cin, Cout) in (kh,kw,Cin) order."""
    col, B, Ho, Wo = im2col_nhwc(x, k, stride)
    out = matmul_bias(col, w_t, b_row, relu=True)
    return out.reshape(B, Ho, Wo, -1)                # stays NHWC


# ----------------------------------------------------------------------------
# Parameters (PyTorch layout) + one-time prep to kernel layout
# ----------------------------------------------------------------------------
def init_qnetwork_params(key, in_channels, hidden_size, output_size, dueling):
    """Deterministic uniform(-1/sqrt(fan_in), 1/sqrt(fan_in)) init (PyTorch-like)."""
    def lin(key, fan_in, shape):
        bound = 1.0 / jnp.sqrt(jnp.float32(fan_in))
        return jax.random.uniform(key, shape, jnp.float32, -bound, bound)

    keys = jax.random.split(key, 12)
    p = {
        "conv1_w": lin(keys[0], in_channels * 8 * 8, (32, in_channels, 8, 8)),
        "conv1_b": lin(keys[1], in_channels * 8 * 8, (32,)),
        "conv2_w": lin(keys[2], 32 * 4 * 4, (64, 32, 4, 4)),
        "conv2_b": lin(keys[3], 32 * 4 * 4, (64,)),
        "conv3_w": lin(keys[4], 64 * 3 * 3, (64, 64, 3, 3)),
        "conv3_b": lin(keys[5], 64 * 3 * 3, (64,)),
        "fc1_w": lin(keys[6], 7 * 7 * 64, (hidden_size, 7 * 7 * 64)),
        "fc1_b": lin(keys[7], 7 * 7 * 64, (hidden_size,)),
    }
    if dueling:
        p["val_w"] = lin(keys[8], hidden_size, (1, hidden_size))
        p["val_b"] = lin(keys[9], hidden_size, (1,))
        p["adv_w"] = lin(keys[10], hidden_size, (output_size, hidden_size))
        p["adv_b"] = lin(keys[11], hidden_size, (output_size,))
    else:
        p["fc2_w"] = lin(keys[8], hidden_size, (output_size, hidden_size))
        p["fc2_b"] = lin(keys[9], hidden_size, (output_size,))
    return p


def prepare_params(params, hidden_size, output_size, dueling):
    """One-time relayout: conv weights to (kh,kw,Cin,Cout), fc1 columns permuted
    for the NHWC flatten, head weights merged + zero-padded to lane-dense N=128."""
    prep = {}
    for i in (1, 2, 3):
        w = params[f"conv{i}_w"]                      # (Cout, Cin, k, k)
        Cout, Cin, k, _ = w.shape
        prep[f"conv{i}_wt"] = w.transpose(2, 3, 1, 0).reshape(k * k * Cin, Cout)
        prep[f"conv{i}_b"] = params[f"conv{i}_b"].reshape(1, Cout)

    # fc1: PyTorch columns are (C,H,W)-ordered; permute to (H,W,C) for NHWC flatten.
    w1 = params["fc1_w"].reshape(hidden_size, 64, 7, 7).transpose(0, 2, 3, 1)
    prep["fc1_wt"] = w1.reshape(hidden_size, 7 * 7 * 64).T       # (3136, hidden)
    prep["fc1_b"] = params["fc1_b"].reshape(1, hidden_size)

    wc = jnp.zeros((hidden_size, _NPAD), jnp.float32)
    bc = jnp.zeros((1, _NPAD), jnp.float32)
    if dueling:
        wc = wc.at[:, 0:1].set(params["val_w"].T)                 # col 0 = value
        wc = wc.at[:, 1:1 + output_size].set(params["adv_w"].T)   # cols 1..A = adv
        bc = bc.at[0, 0].set(params["val_b"][0])
        bc = bc.at[0, 1:1 + output_size].set(params["adv_b"])
    else:
        wc = wc.at[:, :output_size].set(params["fc2_w"].T)
        bc = bc.at[0, :output_size].set(params["fc2_b"])
    prep["head_wt"] = wc
    prep["head_b"] = bc
    return prep


# ----------------------------------------------------------------------------
# Forward (jit'd) + plain-JAX reference of the PyTorch module
# ----------------------------------------------------------------------------
@functools.partial(jax.jit, static_argnames=("dueling", "output_size"))
def qnetwork_forward(prep, x, *, dueling, output_size):
    """Forward pass; x is NCHW (B, C, 84, 84) like the PyTorch module."""
    B = x.shape[0]
    x = x.transpose(0, 2, 3, 1)                                   # NCHW -> NHWC once
    x = conv2d_relu_nhwc(x, prep["conv1_wt"], prep["conv1_b"], k=8, stride=4)
    x = conv2d_relu_nhwc(x, prep["conv2_wt"], prep["conv2_b"], k=4, stride=2)
    x = conv2d_relu_nhwc(x, prep["conv3_wt"], prep["conv3_b"], k=3, stride=1)
    x = x.reshape(B, -1)                                          # NHWC flatten (fc1_wt matches)
    out = fc_head(x, prep["fc1_wt"], prep["fc1_b"],
                  prep["head_wt"], prep["head_b"],
                  dueling=dueling, n_actions=output_size)         # (B, 128) lane-dense
    if dueling:
        return out[:, 1:1 + output_size]
    return out[:, :output_size]


def reference_forward(params, x, *, dueling):
    """Direct XLA translation of the PyTorch module (for correctness check)."""
    hp = jax.lax.Precision.HIGHEST

    def conv(x, w, b, s):
        y = jax.lax.conv_general_dilated(
            x, w, window_strides=(s, s), padding="VALID",
            dimension_numbers=("NCHW", "OIHW", "NCHW"), precision=hp)
        return jax.nn.relu(y + b.reshape(1, -1, 1, 1))

    x = conv(x, params["conv1_w"], params["conv1_b"], 4)
    x = conv(x, params["conv2_w"], params["conv2_b"], 2)
    x = conv(x, params["conv3_w"], params["conv3_b"], 1)
    x = x.reshape(x.shape[0], -1)
    h = jax.nn.relu(jnp.dot(x, params["fc1_w"].T, precision=hp) + params["fc1_b"])
    if dueling:
        v = jnp.dot(h, params["val_w"].T, precision=hp) + params["val_b"]
        a = jnp.dot(h, params["adv_w"].T, precision=hp) + params["adv_b"]
        return v + (a - a.mean(axis=1, keepdims=True))
    return jnp.dot(h, params["fc2_w"].T, precision=hp) + params["fc2_b"]


# ----------------------------------------------------------------------------
if __name__ == "__main__":
    # The module hard-codes fc_layer = Linear(7*7*64, hidden), which forces
    # 84x84 spatial inputs (standard Atari DQN).  Small batch/channels/hidden.
    B, C_in, H, W = 2, 4, 84, 84
    hidden_size = 128
    output_size = 6

    key = jax.random.PRNGKey(0)
    k_x, k_p1, k_p2 = jax.random.split(key, 3)
    x = jax.random.uniform(k_x, (B, C_in, H, W), jnp.float32)

    # Non-dueling head (forward's default path).
    params = init_qnetwork_params(k_p1, C_in, hidden_size, output_size, dueling=False)
    prep = prepare_params(params, hidden_size, output_size, dueling=False)
    q = qnetwork_forward(prep, x, dueling=False, output_size=output_size)
    q = jax.block_until_ready(q)
    assert q.shape == (B, output_size)
    q_ref = reference_forward(params, x, dueling=False)
    assert jnp.allclose(q, q_ref, atol=2e-3, rtol=2e-3), "non-dueling mismatch"

    # Dueling head.
    params_d = init_qnetwork_params(k_p2, C_in, hidden_size, output_size, dueling=True)
    prep_d = prepare_params(params_d, hidden_size, output_size, dueling=True)
    q_d = qnetwork_forward(prep_d, x, dueling=True, output_size=output_size)
    q_d = jax.block_until_ready(q_d)
    assert q_d.shape == (B, output_size)
    q_d_ref = reference_forward(params_d, x, dueling=True)
    assert jnp.allclose(q_d, q_d_ref, atol=2e-3, rtol=2e-3), "dueling mismatch"

    print("KERNEL_OK")
</pallas_src>

<mosaic_0001>
module attributes {stable_mosaic.version = 11 : i64} {
  func.func @_mm_bias_kernel(%arg0: i32, %arg1: memref<512x256xf32, #tpu.memory_space<vmem>>, %arg2: memref<256x32xf32, #tpu.memory_space<vmem>>, %arg3: memref<1x32xf32, #tpu.memory_space<vmem>>, %arg4: memref<512x32xf32, #tpu.memory_space<vmem>>) attributes {dimension_semantics = [#tpu.dimension_semantics<parallel>], iteration_bounds = array<i64: 2>, scalar_prefetch = 0 : i64, scratch_operands = 0 : i64, tpu.core_type = #tpu.core_type<tc>, window_params = [{transform_indices = @transform_0, window_bounds = array<i64: 512, 256>}, {pipeline_mode = #tpu.pipeline_mode<synchronous>, transform_indices = @transform_1, window_bounds = array<i64: 256, 32>}, {pipeline_mode = #tpu.pipeline_mode<synchronous>, transform_indices = @transform_2, window_bounds = array<i64: 1, 32>}, {transform_indices = @transform_3, window_bounds = array<i64: 512, 32>}]} {
    %c0 = arith.constant 0 : index
    %c0_0 = arith.constant 0 : index
    %0 = vector.load %arg1[%c0, %c0_0] : memref<512x256xf32, #tpu.memory_space<vmem>>, vector<512x256xf32>
    %c0_1 = arith.constant 0 : index
    %c0_2 = arith.constant 0 : index
    %1 = vector.load %arg2[%c0_1, %c0_2] : memref<256x32xf32, #tpu.memory_space<vmem>>, vector<256x32xf32>
    %cst = arith.constant dense<0.000000e+00> : vector<512x32xf32>
    %2 = tpu.matmul %0, %1, %cst {dimension_numbers = #tpu.dot_dimension_numbers<[1], [0], [0], [1], [0, 0, 1, 1], [], []>} : vector<512x256xf32>, vector<256x32xf32>, vector<512x32xf32> -> vector<512x32xf32>
    %c0_3 = arith.constant 0 : index
    %c0_4 = arith.constant 0 : index
    %3 = vector.load %arg3[%c0_3, %c0_4] : memref<1x32xf32, #tpu.memory_space<vmem>>, vector<1x32xf32>
    %4 = vector.broadcast %3 : vector<1x32xf32> to vector<512x32xf32>
    %5 = arith.addf %2, %4 : vector<512x32xf32>
    %cst_5 = arith.constant 0.000000e+00 : f32
    %6 = vector.broadcast %cst_5 : f32 to vector<512x32xf32>
    %7 = arith.maximumf %5, %6 : vector<512x32xf32>
    %c0_6 = arith.constant 0 : index
    %c0_7 = arith.constant 0 : index
    %8 = vector.load %arg4[%c0_6, %c0_7] : memref<512x32xf32, #tpu.memory_space<vmem>>, vector<512x32xf32>
    tpu.vector_store %arg4[%c0_6, %c0_7], %7 {strides = array<i32>} : memref<512x32xf32, #tpu.memory_space<vmem>>, vector<512x32xf32>,
    return
  }
  func.func @transform_0(%arg0: i32) -> (i32, i32) {
    %c0_i32 = arith.constant 0 : i32
    %c0_i32_0 = arith.constant 0 : i32
    return %arg0, %c0_i32 : i32, i32
  }
  func.func @transform_1(%arg0: i32) -> (i32, i32) {
    %c0_i32 = arith.constant 0 : i32
    %c0_i32_0 = arith.constant 0 : i32
    %c0_i32_1 = arith.constant 0 : i32
    return %c0_i32, %c0_i32_0 : i32, i32
  }
  func.func @transform_2(%arg0: i32) -> (i32, i32) {
    %c0_i32 = arith.constant 0 : i32
    %c0_i32_0 = arith.constant 0 : i32
    %c0_i32_1 = arith.constant 0 : i32
    return %c0_i32, %c0_i32_0 : i32, i32
  }
  func.func @transform_3(%arg0: i32) -> (i32, i32) {
    %c0_i32 = arith.constant 0 : i32
    %c0_i32_0 = arith.constant 0 : i32
    return %arg0, %c0_i32 : i32, i32
  }
}

module attributes {stable_mosaic.version = 11 : i64} {
  func.func @_mm_bias_kernel(%arg0: i32, %arg1: memref<162x512xf32, #tpu.memory_space<vmem>>, %arg2: memref<512x64xf32, #tpu.memory_space<vmem>>, %arg3: memref<1x64xf32, #tpu.memory_space<vmem>>, %arg4: memref<162x64xf32, #tpu.memory_space<vmem>>) attributes {dimension_semantics = [#tpu.dimension_semantics<parallel>], iteration_bounds = array<i64: 1>, scalar_prefetch = 0 : i64, scratch_operands = 0 : i64, tpu.core_type = #tpu.core_type<tc>, window_params = [{transform_indices = @transform_0, window_bounds = array<i64: 162, 512>}, {pipeline_mode = #tpu.pipeline_mode<synchronous>, transform_indices = @transform_1, window_bounds = array<i64: 512, 64>}, {pipeline_mode = #tpu.pipeline_mode<synchronous>, transform_indices = @transform_2, window_bounds = array<i64: 1, 64>}, {transform_indices = @transform_3, window_bounds = array<i64: 162, 64>}]} {
    %c0 = arith.constant 0 : index
    %c0_0 = arith.constant 0 : index
    %0 = vector.load %arg1[%c0, %c0_0] : memref<162x512xf32, #tpu.memory_space<vmem>>, vector<162x512xf32>
    %c0_1 = arith.constant 0 : index
    %c0_2 = arith.constant 0 : index
    %1 = vector.load %arg2[%c0_1, %c0_2] : memref<512x64xf32, #tpu.memory_space<vmem>>, vector<512x64xf32>
    %cst = arith.constant dense<0.000000e+00> : vector<162x64xf32>
    %2 = tpu.matmul %0, %1, %cst {dimension_numbers = #tpu.dot_dimension_numbers<[1], [0], [0], [1], [0, 0, 1, 1], [], []>} : vector<162x512xf32>, vector<512x64xf32>, vector<162x64xf32> -> vector<162x64xf32>
    %c0_3 = arith.constant 0 : index
    %c0_4 = arith.constant 0 : index
    %3 = vector.load %arg3[%c0_3, %c0_4] : memref<1x64xf32, #tpu.memory_space<vmem>>, vector<1x64xf32>
    %4 = vector.broadcast %3 : vector<1x64xf32> to vector<162x64xf32>
    %5 = arith.addf %2, %4 : vector<162x64xf32>
    %cst_5 = arith.constant 0.000000e+00 : f32
    %6 = vector.broadcast %cst_5 : f32 to vector<162x64xf32>
    %7 = arith.maximumf %5, %6 : vector<162x64xf32>
    %c0_6 = arith.constant 0 : index
    %c0_7 = arith.constant 0 : index
    %8 = vector.load %arg4[%c0_6, %c0_7] : memref<162x64xf32, #tpu.memory_space<vmem>>, vector<162x64xf32>
    tpu.vector_store %arg4[%c0_6, %c0_7], %7 {strides = array<i32>} : memref<162x64xf32, #tpu.memory_space<vmem>>, vector<162x64xf32>,
    return
  }
  func.func @transform_0(%arg0: i32) -> (i32, i32) {
    %c0_i32 = arith.constant 0 : i32
    %c0_i32_0 = arith.constant 0 : i32
    return %arg0, %c0_i32 : i32, i32
  }
  func.func @transform_1(%arg0: i32) -> (i32, i32) {
    %c0_i32 = arith.constant 0 : i32
    %c0_i32_0 = arith.constant 0 : i32
    %c0_i32_1 = arith.constant 0 : i32
    return %c0_i32, %c0_i32_0 : i32, i32
  }
  func.func @transform_2(%arg0: i32) -> (i32, i32) {
    %c0_i32 = arith.constant 0 : i32
    %c0_i32_0 = arith.constant 0 : i32
    %c0_i32_1 = arith.constant 0 : i32
    return %c0_i32, %c0_i32_0 : i32, i32
  }
  func.func @transform_3(%arg0: i32) -> (i32, i32) {
    %c0_i32 = arith.constant 0 : i32
    %c0_i32_0 = arith.constant 0 : i32
    return %arg0, %c0_i32 : i32, i32
  }
}

module attributes {stable_mosaic.version = 11 : i64} {
  func.func @_mm_bias_kernel(%arg0: i32, %arg1: memref<98x576xf32, #tpu.memory_space<vmem>>, %arg2: memref<576x64xf32, #tpu.memory_space<vmem>>, %arg3: memref<1x64xf32, #tpu.memory_space<vmem>>, %arg4: memref<98x64xf32, #tpu.memory_space<vmem>>) attributes {dimension_semantics = [#tpu.dimension_semantics<parallel>], iteration_bounds = array<i64: 1>, scalar_prefetch = 0 : i64, scratch_operands = 0 : i64, tpu.core_type = #tpu.core_type<tc>, window_params = [{transform_indices = @transform_0, window_bounds = array<i64: 98, 576>}, {pipeline_mode = #tpu.pipeline_mode<synchronous>, transform_indices = @transform_1, window_bounds = array<i64: 576, 64>}, {pipeline_mode = #tpu.pipeline_mode<synchronous>, transform_indices = @transform_2, window_bounds = array<i64: 1, 64>}, {transform_indices = @transform_3, window_bounds = array<i64: 98, 64>}]} {
    %c0 = arith.constant 0 : index
    %c0_0 = arith.constant 0 : index
    %0 = vector.load %arg1[%c0, %c0_0] : memref<98x576xf32, #tpu.memory_space<vmem>>, vector<98x576xf32>
    %c0_1 = arith.constant 0 : index
    %c0_2 = arith.constant 0 : index
    %1 = vector.load %arg2[%c0_1, %c0_2] : memref<576x64xf32, #tpu.memory_space<vmem>>, vector<576x64xf32>
    %cst = arith.constant dense<0.000000e+00> : vector<98x64xf32>
    %2 = tpu.matmul %0, %1, %cst {dimension_numbers = #tpu.dot_dimension_numbers<[1], [0], [0], [1], [0, 0, 1, 1], [], []>} : vector<98x576xf32>, vector<576x64xf32>, vector<98x64xf32> -> vector<98x64xf32>
    %c0_3 = arith.constant 0 : index
    %c0_4 = arith.constant 0 : index
    %3 = vector.load %arg3[%c0_3, %c0_4] : memref<1x64xf32, #tpu.memory_space<vmem>>, vector<1x64xf32>
    %4 = vector.broadcast %3 : vector<1x64xf32> to vector<98x64xf32>
    %5 = arith.addf %2, %4 : vector<98x64xf32>
    %cst_5 = arith.constant 0.000000e+00 : f32
    %6 = vector.broadcast %cst_5 : f32 to vector<98x64xf32>
    %7 = arith.maximumf %5, %6 : vector<98x64xf32>
    %c0_6 = arith.constant 0 : index
    %c0_7 = arith.constant 0 : index
    %8 = vector.load %arg4[%c0_6, %c0_7] : memref<98x64xf32, #tpu.memory_space<vmem>>, vector<98x64xf32>
    tpu.vector_store %arg4[%c0_6, %c0_7], %7 {strides = array<i32>} : memref<98x64xf32, #tpu.memory_space<vmem>>, vector<98x64xf32>,
    return
  }
  func.func @transform_0(%arg0: i32) -> (i32, i32) {
    %c0_i32 = arith.constant 0 : i32
    %c0_i32_0 = arith.constant 0 : i32
    return %arg0, %c0_i32 : i32, i32
  }
  func.func @transform_1(%arg0: i32) -> (i32, i32) {
    %c0_i32 = arith.constant 0 : i32
    %c0_i32_0 = arith.constant 0 : i32
    %c0_i32_1 = arith.constant 0 : i32
    return %c0_i32, %c0_i32_0 : i32, i32
  }
  func.func @transform_2(%arg0: i32) -> (i32, i32) {
    %c0_i32 = arith.constant 0 : i32
    %c0_i32_0 = arith.constant 0 : i32
    %c0_i32_1 = arith.constant 0 : i32
    return %c0_i32, %c0_i32_0 : i32, i32
  }
  func.func @transform_3(%arg0: i32) -> (i32, i32) {
    %c0_i32 = arith.constant 0 : i32
    %c0_i32_0 = arith.constant 0 : i32
    return %arg0, %c0_i32 : i32, i32
  }
}

module attributes {stable_mosaic.version = 11 : i64} {
  func.func @_fc_head_kernel(%arg0: i32, %arg1: memref<2x3136xf32, #tpu.memory_space<vmem>>, %arg2: memref<3136x128xf32, #tpu.memory_space<vmem>>, %arg3: memref<1x128xf32, #tpu.memory_space<vmem>>, %arg4: memref<128x128xf32, #tpu.memory_space<vmem>>, %arg5: memref<1x128xf32, #tpu.memory_space<vmem>>, %arg6: memref<2x128xf32, #tpu.memory_space<vmem>>) attributes {dimension_semantics = [#tpu.dimension_semantics<parallel>], iteration_bounds = array<i64: 1>, scalar_prefetch = 0 : i64, scratch_operands = 0 : i64, tpu.core_type = #tpu.core_type<tc>, window_params = [{transform_indices = @transform_0, window_bounds = array<i64: 2, 3136>}, {pipeline_mode = #tpu.pipeline_mode<synchronous>, transform_indices = @transform_1, window_bounds = array<i64: 3136, 128>}, {pipeline_mode = #tpu.pipeline_mode<synchronous>, transform_indices = @transform_2, window_bounds = array<i64: 1, 128>}, {pipeline_mode = #tpu.pipeline_mode<synchronous>, transform_indices = @transform_3, window_bounds = array<i64: 128, 128>}, {pipeline_mode = #tpu.pipeline_mode<synchronous>, transform_indices = @transform_4, window_bounds = array<i64: 1, 128>}, {transform_indices = @transform_5, window_bounds = array<i64: 2, 128>}]} {
    %c0 = arith.constant 0 : index
    %c0_0 = arith.constant 0 : index
    %0 = vector.load %arg1[%c0, %c0_0] : memref<2x3136xf32, #tpu.memory_space<vmem>>, vector<2x3136xf32>
    %c0_1 = arith.constant 0 : index
    %c0_2 = arith.constant 0 : index
    %1 = vector.load %arg2[%c0_1, %c0_2] : memref<3136x128xf32, #tpu.memory_space<vmem>>, vector<3136x128xf32>
    %cst = arith.constant dense<0.000000e+00> : vector<2x128xf32>
    %2 = tpu.matmul %0, %1, %cst {dimension_numbers = #tpu.dot_dimension_numbers<[1], [0], [0], [1], [0, 0, 1, 1], [], []>} : vector<2x3136xf32>, vector<3136x128xf32>, vector<2x128xf32> -> vector<2x128xf32>
    %c0_3 = arith.constant 0 : index
    %c0_4 = arith.constant 0 : index
    %3 = vector.load %arg3[%c0_3, %c0_4] : memref<1x128xf32, #tpu.memory_space<vmem>>, vector<1x128xf32>
    %4 = vector.broadcast %3 : vector<1x128xf32> to vector<2x128xf32>
    %5 = arith.addf %2, %4 : vector<2x128xf32>
    %cst_5 = arith.constant 0.000000e+00 : f32
    %6 = vector.broadcast %cst_5 : f32 to vector<2x128xf32>
    %7 = arith.maximumf %5, %6 : vector<2x128xf32>
    %c0_6 = arith.constant 0 : index
    %c0_7 = arith.constant 0 : index
    %8 = vector.load %arg4[%c0_6, %c0_7] : memref<128x128xf32, #tpu.memory_space<vmem>>, vector<128x128xf32>
    %cst_8 = arith.constant dense<0.000000e+00> : vector<2x128xf32>
    %9 = tpu.matmul %7, %8, %cst_8 {dimension_numbers = #tpu.dot_dimension_numbers<[1], [0], [0], [1], [0, 0, 1, 1], [], []>} : vector<2x128xf32>, vector<128x128xf32>, vector<2x128xf32> -> vector<2x128xf32>
    %c0_9 = arith.constant 0 : index
    %c0_10 = arith.constant 0 : index
    %10 = vector.load %arg5[%c0_9, %c0_10] : memref<1x128xf32, #tpu.memory_space<vmem>>, vector<1x128xf32>
    %11 = vector.broadcast %10 : vector<1x128xf32> to vector<2x128xf32>
    %12 = arith.addf %9, %11 : vector<2x128xf32>
    %c0_11 = arith.constant 0 : index
    %c0_12 = arith.constant 0 : index
    %13 = vector.load %arg6[%c0_11, %c0_12] : memref<2x128xf32, #tpu.memory_space<vmem>>, vector<2x128xf32>
    tpu.vector_store %arg6[%c0_11, %c0_12], %12 {strides = array<i32>} : memref<2x128xf32, #tpu.memory_space<vmem>>, vector<2x128xf32>,
    return
  }
  func.func @transform_0(%arg0: i32) -> (i32, i32) {
    %c0_i32 = arith.constant 0 : i32
    %c0_i32_0 = arith.constant 0 : i32
    return %arg0, %c0_i32 : i32, i32
  }
  func.func @transform_1(%arg0: i32) -> (i32, i32) {
    %c0_i32 = arith.constant 0 : i32
    %c0_i32_0 = arith.constant 0 : i32
    %c0_i32_1 = arith.constant 0 : i32
    return %c0_i32, %c0_i32_0 : i32, i32
  }
  func.func @transform_2(%arg0: i32) -> (i32, i32) {
    %c0_i32 = arith.constant 0 : i32
    %c0_i32_0 = arith.constant 0 : i32
    %c0_i32_1 = arith.constant 0 : i32
    return %c0_i32, %c0_i32_0 : i32, i32
  }
  func.func @transform_3(%arg0: i32) -> (i32, i32) {
    %c0_i32 = arith.constant 0 : i32
    %c0_i32_0 = arith.constant 0 : i32
    %c0_i32_1 = arith.constant 0 : i32
    return %c0_i32, %c0_i32_0 : i32, i32
  }
  func.func @transform_4(%arg0: i32) -> (i32, i32) {
    %c0_i32 = arith.constant 0 : i32
    %c0_i32_0 = arith.constant 0 : i32
    %c0_i32_1 = arith.constant 0 : i32
    return %c0_i32, %c0_i32_0 : i32, i32
  }
  func.func @transform_5(%arg0: i32) -> (i32, i32) {
    %c0_i32 = arith.constant 0 : i32
    %c0_i32_0 = arith.constant 0 : i32
    return %arg0, %c0_i32 : i32, i32
  }
}

</mosaic_0001>

<bundles_post_ra>
// kernel: qnetwork_forward.4
= control target key start
LH: loop header
LB: loop body
LE: loop exit
PB: predicated region body
PF: predicated region fallthrough
CT: control target
= control target key end

     0   :  { %s1509_s12 = smov 0   ;;  %s1511_s13 = smov 0   ;;  %s2114_s0 = inlined_call_operand.vmem [shape: f32[800,256], index: 0, kind: input, shape index: {}]   ;;  %s2115_s1 = inlined_call_operand.vmem [shape: f32[256,32], index: 1, kind: input, shape index: {}]   ;;  %s2116_s2 = inlined_call_operand.vmem [shape: f32[1,32], index: 2, kind: input, shape index: {}]   ;;  %s2117_s3 = inlined_call_operand.vmem [shape: f32[800,32], index: 3, kind: output, shape index: {}]  }
   0x1   :  { %s1513_s14 = smov 0  }
   0x2 LB: > { %s1522_s15 = sadd.s32 4294967295, %s1455_s14   ;;  %s1524_s16 = sadd.s32 1, %s1455_s14   ;;  %s1455_s14 = sphi %s1513_s14, %s2126_s14   ;;  %s1451_s13 = sphi %s1511_s13, %s2125_s13   ;;  %s1447_s12 = sphi %s1509_s12, %s2124_s12  }
   0x3   : > { %s85_s17 = ssub.s32 %s1455_s14, %s1524_s16  ;;  %s88_s18 = sadd.s32 1, %s1451_s13 }
   0x4   : > { %p86_p0 = scmp.eq.s32.totalorder %s85_s17, 0  ;;  %p98_p1 = scmp.ne.s32.totalorder %s1451_s13, %s1447_s12 }
   0x5   : > { %p99_p2 = scmp.eq.s32.totalorder %s1522_s15, 1  ;;  %p1254_p3 = scmp.ge.s32.totalorder %s1455_s14, 1 }
   0x6   : > { %s1532_s19 = scalar_select %p86_p0, %s1451_s13, %s88_s18  }
   0x7   : > { %p1534_p4 = por %p99_p2, %p98_p1  ;;  %p149_p5 = scmp.lt.s32.totalorder %s1455_s14, 3 }
   0x9   : > { %p150_p6 = pnand %p1254_p3, %p149_p5 }
   0xa   : > { %s1587_s5 = sshll.u32 (!%p150_p6), %s1522_s15, 6  ;;  %s175_s4 = sand.u32 (!%p150_p6), 1, %s1447_s12  }
   0xb   : > { %153 = sbr.rel (%p150_p6) target bundleno = 499 (0x1f3), region = 32  ;;  %p184_p7 = scmp.lt.s32.totalorder (!%p150_p6), %s1587_s5, 99 }
   0xc   : > { %s1255_s6 = sshll.u32 (!%p150_p6), %s175_s4, 9 }
   0xd   : > { %s1722_s12 = scalar_lea.vmem (!%p150_p6), [#allocation2], %s1255_s6  }
  0x10   : > { %v343_v0 = vld [vmem:[%s2115_s1 + $0x78] sm:$0xff]  ;;  %v342_v1 = vld [vmem:[%s2115_s1 + $0x70] sm:$0xff]  ;;  %v341_v4 = vld [vmem:[%s2115_s1 + $0x68] sm:$0xff]  ;;  %s185_s24 = scalar_select %p184_p7, %s1587_s5, 99  ;;  %vm846_vm0 = vcmask 261120  }
  0x11   : > { %v359_v2 = vld [vmem:[%s2115_s1 + $0xf8] sm:$0xff]  ;;  %1280 = vmatpush.msra.mxu2 %v343_v0  ;;  %v358_v3 = vld [vmem:[%s2115_s1 + $0xf0] sm:$0xff]  ;;  %364 = vmatpush.msra.mxu0 %v343_v0  ;;  %v357_v5 = vld [vmem:[%s2115_s1 + $0xe8] sm:$0xff]  ;;  %s1277_s8 = sshll.u32 (%p1534_p4), %s1522_s15, 9 }
  0x12   : > { %1296 = vmatpush.msra.mxu3 %v359_v2  ;;  %573 = vmatpush.msra.mxu1 %v359_v2  ;;  %v340_v6 = vld [vmem:[%s2115_s1 + $0x60] sm:$0xff]  ;;  %v339_v8 = vld [vmem:[%s2115_s1 + $0x58] sm:$0xff]  ;;  %v338_v10 = vld [vmem:[%s2115_s1 + $0x50] sm:$0xff]  ;;  %s1276_s7 = sshll.u32 %s185_s24, 4  ;;  %s1979_s11 = scalar_lea.vmem (%p1534_p4), %s2117_s3, %s1277_s8  }
  0x13   : > { %1281 = vmatpush.msra.mxu2 %v342_v1  ;;  %365 = vmatpush.msra.mxu0 %v342_v1  ;;  %v356_v7 = vld [vmem:[%s2115_s1 + $0xe0] sm:$0xff]  ;;  %v355_v9 = vld [vmem:[%s2115_s1 + $0xd8] sm:$0xff]  ;;  %v354_v11 = vld [vmem:[%s2115_s1 + $0xd0] sm:$0xff]  ;;  %s1636_s24 = scalar_lea.vmem %s2114_s0, %s1276_s7  ;;  %s919_s7 = ssub.s32 (%p1534_p4), 100, %s1587_s5 }
  0x14   : > { %1297 = vmatpush.msra.mxu3 %v358_v3  ;;  %574 = vmatpush.msra.mxu1 %v358_v3  ;;  %v337_v12 = vld [vmem:[%s2115_s1 + $0x48] sm:$0xff]  ;;  %v336_v14 = vld [vmem:[%s2115_s1 + $0x40] sm:$0xff]  ;;  %v335_v16 = vld [vmem:[%s2115_s1 + $0x38] sm:$0xff]  ;;  %p920_p8 = scmp.lt.s32.totalorder (%p1534_p4), %s919_s7, 64 }
  0x15   : > { %1282 = vmatpush.msra.mxu2 %v341_v4  ;;  %366 = vmatpush.msra.mxu0 %v341_v4  ;;  %v353_v13 = vld [vmem:[%s2115_s1 + $0xc8] sm:$0xff]  ;;  %v352_v15 = vld [vmem:[%s2115_s1 + $0xc0] sm:$0xff]  ;;  %v351_v17 = vld [vmem:[%s2115_s1 + $0xb8] sm:$0xff] }
  0x16   : > { %1298 = vmatpush.msra.mxu3 %v357_v5  ;;  %575 = vmatpush.msra.mxu1 %v357_v5  ;;  %v334_v18 = vld [vmem:[%s2115_s1 + $0x30] sm:$0xff]  ;;  %v333_v20 = vld [vmem:[%s2115_s1 + $0x28] sm:$0xff]  ;;  %v332_v22 = vld [vmem:[%s2115_s1 + $0x20] sm:$0xff] }
  0x17   : > { %1283 = vmatpush.msra.mxu2 %v340_v6  ;;  %367 = vmatpush.msra.mxu0 %v340_v6  ;;  %v350_v19 = vld [vmem:[%s2115_s1 + $0xb0] sm:$0xff]  ;;  %v349_v21 = vld [vmem:[%s2115_s1 + $0xa8] sm:$0xff]  ;;  %v348_v23 = vld [vmem:[%s2115_s1 + $0xa0] sm:$0xff] }
  0x18   : > { %1299 = vmatpush.msra.mxu3 %v356_v7  ;;  %576 = vmatpush.msra.mxu1 %v356_v7  ;;  %v331_v24 = vld [vmem:[%s2115_s1 + $0x18] sm:$0xff]  ;;  %v330_v26 = vld [vmem:[%s2115_s1 + $0x10] sm:$0xff]  ;;  %v329_v28 = vld [vmem:[%s2115_s1 + $0x8] sm:$0xff] }
  0x19   : > { %1284 = vmatpush.msra.mxu2 %v339_v8  ;;  %368 = vmatpush.msra.mxu0 %v339_v8  ;;  %v347_v25 = vld [vmem:[%s2115_s1 + $0x98] sm:$0xff]  ;;  %v346_v27 = vld [vmem:[%s2115_s1 + $0x90] sm:$0xff]  ;;  %v345_v29 = vld [vmem:[%s2115_s1 + $0x88] sm:$0xff] }
  0x1a   : > { %1300 = vmatpush.msra.mxu3 %v355_v9  ;;  %577 = vmatpush.msra.mxu1 %v355_v9  ;;  %v328_v30 = vld [vmem:[%s2115_s1] sm:$0xff]  ;;  %v265_v33 = vld [vmem:[%s1636_s24 + $0x208] sm:$0xff]  ;;  %v266_v36 = vld [vmem:[%s1636_s24 + $0x210] sm:$0xff] }
  0x1b   : > { %1285 = vmatpush.msra.mxu2 %v338_v10  ;;  %369 = vmatpush.msra.mxu0 %v338_v10  ;;  %v344_v31 = vld [vmem:[%s2115_s1 + $0x80] sm:$0xff]  ;;  %v201_v35 = vld [vmem:[%s1636_s24 + $0x8] sm:$0xff]  ;;  %v267_v37 = vld [vmem:[%s1636_s24 + $0x218] sm:$0xff] }
  0x1c   : > { %1301 = vmatpush.msra.mxu3 %v354_v11  ;;  %578 = vmatpush.msra.mxu1 %v354_v11  ;;  %v264_v32 = vld [vmem:[%s1636_s24 + $0x200] sm:$0xff]  ;;  %v202_v38 = vld [vmem:[%s1636_s24 + $0x10] sm:$0xff]  ;;  %v203_v39 = vld [vmem:[%s1636_s24 + $0x18] sm:$0xff] }
  0x1d   : > { %1286 = vmatpush.msra.mxu2 %v337_v12  ;;  %370 = vmatpush.msra.mxu0 %v337_v12  ;;  %v200_v34 = vld [vmem:[%s1636_s24] sm:$0xff]  ;;  %v269_v41 = vld [vmem:[%s1636_s24 + $0x228] sm:$0xff]  ;;  %v270_v44 = vld [vmem:[%s1636_s24 + $0x230] sm:$0xff] }
  0x1e   : > { %1302 = vmatpush.msra.mxu3 %v353_v13  ;;  %579 = vmatpush.msra.mxu1 %v353_v13  ;;  %v268_v40 = vld [vmem:[%s1636_s24 + $0x220] sm:$0xff]  ;;  %v205_v43 = vld [vmem:[%s1636_s24 + $0x28] sm:$0xff]  ;;  %v271_v45 = vld [vmem:[%s1636_s24 + $0x238] sm:$0xff] }
  0x1f   : > { %1287 = vmatpush.msra.mxu2 %v336_v14  ;;  %371 = vmatpush.msra.mxu0 %v336_v14  ;;  %v204_v42 = vld [vmem:[%s1636_s24 + $0x20] sm:$0xff]  ;;  %v206_v46 = vld [vmem:[%s1636_s24 + $0x30] sm:$0xff]  ;;  %v207_v47 = vld [vmem:[%s1636_s24 + $0x38] sm:$0xff] }
  0x20   : > { %1303 = vmatpush.msra.mxu3 %v352_v15  ;;  %580 = vmatpush.msra.mxu1 %v352_v15  ;;  %v272_v48 = vld [vmem:[%s1636_s24 + $0x240] sm:$0xff]  ;;  %v273_v49 = vld [vmem:[%s1636_s24 + $0x248] sm:$0xff]  ;;  %v274_v52 = vld [vmem:[%s1636_s24 + $0x250] sm:$0xff] }
  0x21   : > { %1288 = vmatpush.msra.mxu2 %v335_v16  ;;  %372 = vmatpush.msra.mxu0 %v335_v16  ;;  %v208_v50 = vld [vmem:[%s1636_s24 + $0x40] sm:$0xff]  ;;  %v209_v51 = vld [vmem:[%s1636_s24 + $0x48] sm:$0xff]  ;;  %v275_v53 = vld [vmem:[%s1636_s24 + $0x258] sm:$0xff] }
  0x22   : > { %1304 = vmatpush.msra.mxu3 %v351_v17  ;;  %581 = vmatpush.msra.mxu1 %v351_v17  ;;  %v210_v54 = vld [vmem:[%s1636_s24 + $0x50] sm:$0xff]  ;;  %v211_v55 = vld [vmem:[%s1636_s24 + $0x58] sm:$0xff]  ;;  %v276_v56 = vld [vmem:[%s1636_s24 + $0x260] sm:$0xff] }
  0x23   : > { %1289 = vmatpush.msra.mxu2 %v334_v18  ;;  %373 = vmatpush.msra.mxu0 %v334_v18  ;;  %v277_v57 = vld [vmem:[%s1636_s24 + $0x268] sm:$0xff]  ;;  %v212_v58 = vld [vmem:[%s1636_s24 + $0x60] sm:$0xff]  ;;  %v278_v60 = vld [vmem:[%s1636_s24 + $0x270] sm:$0xff] }
  0x24   : > { %1305 = vmatpush.msra.mxu3 %v350_v19  ;;  %582 = vmatpush.msra.mxu1 %v350_v19  ;;  %v213_v59 = vld [vmem:[%s1636_s24 + $0x68] sm:$0xff]  ;;  %v279_v61 = vld [vmem:[%s1636_s24 + $0x278] sm:$0xff]  ;;  %v214_v62 = vld [vmem:[%s1636_s24 + $0x70] sm:$0xff] }
  0x25   : > { %1290 = vmatpush.msra.mxu2 %v333_v20  ;;  %374 = vmatpush.msra.mxu0 %v333_v20  ;;  %v215_v63 = vld [vmem:[%s1636_s24 + $0x78] sm:$0xff]  ;;  %v280_v0 = vld [vmem:[%s1636_s24 + $0x280] sm:$0xff]  ;;  %v281_v1 = vld [vmem:[%s1636_s24 + $0x288] sm:$0xff] }
  0x26   : > { %1306 = vmatpush.msra.mxu3 %v349_v21  ;;  %583 = vmatpush.msra.mxu1 %v349_v21  ;;  %v216_v2 = vld [vmem:[%s1636_s24 + $0x80] sm:$0xff]  ;;  %v217_v3 = vld [vmem:[%s1636_s24 + $0x88] sm:$0xff]  ;;  %v282_v4 = vld [vmem:[%s1636_s24 + $0x290] sm:$0xff] }
  0x27   : > { %1291 = vmatpush.msra.mxu2 %v332_v22  ;;  %375 = vmatpush.msra.mxu0 %v332_v22  ;;  %v283_v5 = vld [vmem:[%s1636_s24 + $0x298] sm:$0xff]  ;;  %v218_v6 = vld [vmem:[%s1636_s24 + $0x90] sm:$0xff]  ;;  %v284_v8 = vld [vmem:[%s1636_s24 + $0x2a0] sm:$0xff] }
  0x28   : > { %1307 = vmatpush.msra.mxu3 %v348_v23  ;;  %584 = vmatpush.msra.mxu1 %v348_v23  ;;  %v219_v7 = vld [vmem:[%s1636_s24 + $0x98] sm:$0xff]  ;;  %v285_v9 = vld [vmem:[%s1636_s24 + $0x2a8] sm:$0xff]  ;;  %v220_v10 = vld [vmem:[%s1636_s24 + $0xa0] sm:$0xff] }
  0x29   : > { %1292 = vmatpush.msra.mxu2 %v331_v24  ;;  %376 = vmatpush.msra.mxu0 %v331_v24  ;;  %v221_v11 = vld [vmem:[%s1636_s24 + $0xa8] sm:$0xff]  ;;  %v286_v12 = vld [vmem:[%s1636_s24 + $0x2b0] sm:$0xff]  ;;  %v287_v13 = vld [vmem:[%s1636_s24 + $0x2b8] sm:$0xff] }
  0x2a   : > { %1308 = vmatpush.msra.mxu3 %v347_v25  ;;  %585 = vmatpush.msra.mxu1 %v347_v25  ;;  %v222_v14 = vld [vmem:[%s1636_s24 + $0xb0] sm:$0xff]  ;;  %v223_v15 = vld [vmem:[%s1636_s24 + $0xb8] sm:$0xff]  ;;  %v288_v16 = vld [vmem:[%s1636_s24 + $0x2c0] sm:$0xff] }
  0x2b   : > { %1293 = vmatpush.msra.mxu2 %v330_v26  ;;  %377 = vmatpush.msra.mxu0 %v330_v26  ;;  %v289_v17 = vld [vmem:[%s1636_s24 + $0x2c8] sm:$0xff]  ;;  %v224_v18 = vld [vmem:[%s1636_s24 + $0xc0] sm:$0xff]  ;;  %v290_v20 = vld [vmem:[%s1636_s24 + $0x2d0] sm:$0xff] }
  0x2c   : > { %1309 = vmatpush.msra.mxu3 %v346_v27  ;;  %586 = vmatpush.msra.mxu1 %v346_v27  ;;  %v225_v19 = vld [vmem:[%s1636_s24 + $0xc8] sm:$0xff]  ;;  %v291_v21 = vld [vmem:[%s1636_s24 + $0x2d8] sm:$0xff]  ;;  %v226_v22 = vld [vmem:[%s1636_s24 + $0xd0] sm:$0xff] }
  0x2d   : > { %1294 = vmatpush.msra.mxu2 %v329_v28  ;;  %378 = vmatpush.msra.mxu0 %v329_v28  ;;  %v227_v23 = vld [vmem:[%s1636_s24 + $0xd8] sm:$0xff]  ;;  %v292_v24 = vld [vmem:[%s1636_s24 + $0x2e0] sm:$0xff]  ;;  %v293_v25 = vld [vmem:[%s1636_s24 + $0x2e8] sm:$0xff] }
  0x2e   : > { %1310 = vmatpush.msra.mxu3 %v345_v29  ;;  %587 = vmatpush.msra.mxu1 %v345_v29  ;;  %v228_v26 = vld [vmem:[%s1636_s24 + $0xe0] sm:$0xff]  ;;  %v229_v27 = vld [vmem:[%s1636_s24 + $0xe8] sm:$0xff]  ;;  %v294_v28 = vld [vmem:[%s1636_s24 + $0x2f0] sm:$0xff] }
  0x2f   : > { %1295 = vmatpush.msra.mxu2 %v328_v30  ;;  %379 = vmatpush.msra.mxu0 %v328_v30  ;;  %v295_v29 = vld [vmem:[%s1636_s24 + $0x2f8] sm:$0xff]  ;;  %v230_v30 = vld [vmem:[%s1636_s24 + $0xf0] sm:$0xff] }
  0x30   : > { %1311 = vmatpush.msra.mxu3 %v344_v31  ;;  %476 = vmatmul.f32.vlgmr.msra.gmra.mxu2 %v264_v32  ;;  %v1711_v32 = vld [vmem:[%s2116_s2] ss:$0 sm:$0xff] }
  0x31   : > { %685 = vmatmul.f32.vlgmr.msra.gmra.mxu3 %v265_v33  ;;  %588 = vmatpush.msra.mxu1 %v344_v31  ;;  %v231_v31 = vld [vmem:[%s1636_s24 + $0xf8] sm:$0xff]  ;;  %v296_v33 = vld [vmem:[%s1636_s24 + $0x300] sm:$0xff] }
  0x32   : > { %380 = vmatmul.f32.vlgmr.msra.gmra.mxu0 %v200_v34  ;;  %589 = vmatmul.f32.vlgmr.msra.gmra.mxu1 %v201_v35  ;;  %v297_v34 = vld [vmem:[%s1636_s24 + $0x308] sm:$0xff] }
  0x38   : > { %479 = vmatmul.f32.gmra.mxu2 %v266_v36 }
  0x39   : > { %688 = vmatmul.f32.gmra.mxu3 %v267_v37  ;;  %v232_v37 = vld [vmem:[%s1636_s24 + $0x100] sm:$0xff] }
  0x3a   : > { %383 = vmatmul.f32.gmra.mxu0 %v202_v38  ;;  %592 = vmatmul.f32.gmra.mxu1 %v203_v39  ;;  %v233_v38 = vld [vmem:[%s1636_s24 + $0x108] sm:$0xff] }
  0x40   : > { %482 = vmatmul.f32.gmra.mxu2 %v268_v40 }
  0x41   : > { %691 = vmatmul.f32.gmra.mxu3 %v269_v41 }
  0x42   : > { %386 = vmatmul.f32.gmra.mxu0 %v204_v42  ;;  %595 = vmatmul.f32.gmra.mxu1 %v205_v43 }
  0x48   : > { %485 = vmatmul.f32.gmra.mxu2 %v270_v44 }
  0x49   : > { %694 = vmatmul.f32.gmra.mxu3 %v271_v45  ;;  %v298_v45 = vld [vmem:[%s1636_s24 + $0x310] sm:$0xff] }
  0x4a   : > { %389 = vmatmul.f32.gmra.mxu0 %v206_v46  ;;  %598 = vmatmul.f32.gmra.mxu1 %v207_v47  ;;  %v299_v46 = vld [vmem:[%s1636_s24 + $0x318] sm:$0xff] }
  0x50   : > { %488 = vmatmul.f32.gmra.mxu2 %v272_v48 }
  0x51   : > { %697 = vmatmul.f32.gmra.mxu3 %v273_v49 }
  0x52   : > { %392 = vmatmul.f32.gmra.mxu0 %v208_v50  ;;  %601 = vmatmul.f32.gmra.mxu1 %v209_v51  ;;  %v234_v50 = vld [vmem:[%s1636_s24 + $0x110] sm:$0xff]  ;;  %v235_v51 = vld [vmem:[%s1636_s24 + $0x118] sm:$0xff] }
  0x58   : > { %491 = vmatmul.f32.gmra.mxu2 %v274_v52 }
  0x59   : > { %700 = vmatmul.f32.gmra.mxu3 %v275_v53 }
  0x5a   : > { %395 = vmatmul.f32.gmra.mxu0 %v210_v54  ;;  %604 = vmatmul.f32.gmra.mxu1 %v211_v55 }
  0x60   : > { %494 = vmatmul.f32.gmra.mxu2 %v276_v56 }
  0x61   : > { %703 = vmatmul.f32.gmra.mxu3 %v277_v57 }
  0x62   : > { %398 = vmatmul.f32.gmra.mxu0 %v212_v58  ;;  %607 = vmatmul.f32.gmra.mxu1 %v213_v59  ;;  %v300_v59 = vld [vmem:[%s1636_s24 + $0x320] sm:$0xff] }
  0x68   : > { %497 = vmatmul.f32.gmra.mxu2 %v278_v60  ;;  %v301_v60 = vld [vmem:[%s1636_s24 + $0x328] sm:$0xff] }
  0x69   : > { %706 = vmatmul.f32.gmra.mxu3 %v279_v61 }
  0x6a   : > { %401 = vmatmul.f32.gmra.mxu0 %v214_v62  ;;  %610 = vmatmul.f32.gmra.mxu1 %v215_v63 }
  0x70   : > { %500 = vmatmul.f32.gmra.mxu2 %v280_v0  ;;  %v236_v0 = vld [vmem:[%s1636_s24 + $0x120] sm:$0xff] }
  0x71   : > { %709 = vmatmul.f32.gmra.mxu3 %v281_v1  ;;  %v237_v1 = vld [vmem:[%s1636_s24 + $0x128] sm:$0xff] }
  0x72   : > { %404 = vmatmul.f32.gmra.mxu0 %v216_v2  ;;  %613 = vmatmul.f32.gmra.mxu1 %v217_v3 }
  0x78   : > { %503 = vmatmul.f32.gmra.mxu2 %v282_v4 }
  0x79   : > { %712 = vmatmul.f32.gmra.mxu3 %v283_v5 }
  0x7a   : > { %407 = vmatmul.f32.gmra.mxu0 %v218_v6  ;;  %616 = vmatmul.f32.gmra.mxu1 %v219_v7 }
  0x80   : > { %506 = vmatmul.f32.gmra.mxu2 %v284_v8 }
  0x81   : > { %715 = vmatmul.f32.gmra.mxu3 %v285_v9  ;;  %v302_v9 = vld [vmem:[%s1636_s24 + $0x330] sm:$0xff] }
  0x82   : > { %410 = vmatmul.f32.gmra.mxu0 %v220_v10  ;;  %619 = vmatmul.f32.gmra.mxu1 %v221_v11  ;;  %v303_v10 = vld [vmem:[%s1636_s24 + $0x338] sm:$0xff] }
  0x88   : > { %509 = vmatmul.f32.gmra.mxu2 %v286_v12 }
  0x89   : > { %718 = vmatmul.f32.gmra.mxu3 %v287_v13 }
  0x8a   : > { %413 = vmatmul.f32.gmra.mxu0 %v222_v14  ;;  %622 = vmatmul.f32.gmra.mxu1 %v223_v15  ;;  %v238_v14 = vld [vmem:[%s1636_s24 + $0x130] sm:$0xff]  ;;  %v239_v15 = vld [vmem:[%s1636_s24 + $0x138] sm:$0xff] }
  0x90   : > { %512 = vmatmul.f32.gmra.mxu2 %v288_v16 }
  0x91   : > { %721 = vmatmul.f32.gmra.mxu3 %v289_v17 }
  0x92   : > { %416 = vmatmul.f32.gmra.mxu0 %v224_v18  ;;  %625 = vmatmul.f32.gmra.mxu1 %v225_v19 }
  0x98   : > { %515 = vmatmul.f32.gmra.mxu2 %v290_v20 }
  0x99   : > { %724 = vmatmul.f32.gmra.mxu3 %v291_v21 }
  0x9a   : > { %419 = vmatmul.f32.gmra.mxu0 %v226_v22  ;;  %628 = vmatmul.f32.gmra.mxu1 %v227_v23  ;;  %v304_v23 = vld [vmem:[%s1636_s24 + $0x340] sm:$0xff] }
  0xa0   : > { %518 = vmatmul.f32.gmra.mxu2 %v292_v24  ;;  %v305_v24 = vld [vmem:[%s1636_s24 + $0x348] sm:$0xff] }
  0xa1   : > { %727 = vmatmul.f32.gmra.mxu3 %v293_v25 }
  0xa2   : > { %422 = vmatmul.f32.gmra.mxu0 %v228_v26  ;;  %631 = vmatmul.f32.gmra.mxu1 %v229_v27 }
  0xa8   : > { %521 = vmatmul.f32.gmra.mxu2 %v294_v28  ;;  %v240_v28 = vld [vmem:[%s1636_s24 + $0x140] sm:$0xff] }
  0xa9   : > { %730 = vmatmul.f32.gmra.mxu3 %v295_v29  ;;  %v241_v29 = vld [vmem:[%s1636_s24 + $0x148] sm:$0xff] }
  0xaa   : > { %425 = vmatmul.f32.gmra.mxu0 %v230_v30  ;;  %634 = vmatmul.f32.gmra.mxu1 %v231_v31 }
  0xaf   : > { %v381_v35 = vpop.f32.mrf.mxu0  ;;  %v590_v36 = vpop.f32.mrf.mxu1 }
  0xb0   : > { %524 = vmatmul.f32.gmra.mxu2 %v296_v33  ;;  %v382_v39 = vadd.f32 %v1711_v32, %v381_v35 }
  0xb1   : > { %733 = vmatmul.f32.gmra.mxu3 %v297_v34 }
  0xb2   : > { %v591_v40 = vadd.f32 %v590_v36, %v382_v39  ;;  %428 = vmatmul.f32.gmra.mxu0 %v232_v37  ;;  %637 = vmatmul.f32.gmra.mxu1 %v233_v38  ;;  %v306_v38 = vld [vmem:[%s1636_s24 + $0x350] sm:$0xff]  ;;  %v307_v39 = vld [vmem:[%s1636_s24 + $0x358] sm:$0xff] }
  0xb3   : > { %v477_v41 = vpop.f32.mrf.mxu2 }
  0xb4   : > { %v686_v42 = vpop.f32.mrf.mxu3  ;;  %v478_v43 = vadd.f32 %v1711_v32, %v477_v41  ;;  %v782_v44 = vmax.f32 %v591_v40, 0.0 }
  0xb6   : > { %847 = vst.msk [vmem:[%s1722_s12] sm:$0xff] %vm846_vm0, %v782_v44  ;;  %v687_v47 = vadd.f32 %v686_v42, %v478_v43  ;;  %v242_v43 = vld [vmem:[%s1636_s24 + $0x150] sm:$0xff]  ;;  %v243_v44 = vld [vmem:[%s1636_s24 + $0x158] sm:$0xff] }
  0xb7   : > { %v384_v48 = vpop.f32.mrf.mxu0  ;;  %v593_v49 = vpop.f32.mrf.mxu1 }
  0xb8   : > { %v814_v52 = vmax.f32 %v687_v47, 0.0  ;;  %527 = vmatmul.f32.gmra.mxu2 %v298_v45  ;;  %v385_v53 = vadd.f32 %v1711_v32, %v384_v48 }
  0xb9   : > { %736 = vmatmul.f32.gmra.mxu3 %v299_v46 }
  0xba   : > { %879 = vst.msk [vmem:[%s1722_s12 + $0x100] sm:$0xff] %vm846_vm0, %v814_v52  ;;  %v594_v54 = vadd.f32 %v593_v49, %v385_v53  ;;  %431 = vmatmul.f32.gmra.mxu0 %v234_v50  ;;  %640 = vmatmul.f32.gmra.mxu1 %v235_v51  ;;  %v308_v52 = vld [vmem:[%s1636_s24 + $0x360] sm:$0xff]  ;;  %v309_v53 = vld [vmem:[%s1636_s24 + $0x368] sm:$0xff] }
  0xbb   : > { %v480_v55 = vpop.f32.mrf.mxu2 }
  0xbc   : > { %v689_v56 = vpop.f32.mrf.mxu3  ;;  %v481_v57 = vadd.f32 %v1711_v32, %v480_v55  ;;  %v783_v58 = vmax.f32 %v594_v54, 0.0 }
  0xbe   : > { %848 = vst.msk [vmem:[%s1722_s12 + $0x8] sm:$0xff] %vm846_vm0, %v783_v58  ;;  %v690_v61 = vadd.f32 %v689_v56, %v481_v57  ;;  %v244_v57 = vld [vmem:[%s1636_s24 + $0x160] sm:$0xff]  ;;  %v245_v58 = vld [vmem:[%s1636_s24 + $0x168] sm:$0xff] }
  0xbf   : > { %v387_v62 = vpop.f32.mrf.mxu0  ;;  %v596_v63 = vpop.f32.mrf.mxu1 }
  0xc0   : > { %v815_v2 = vmax.f32 %v690_v61, 0.0  ;;  %530 = vmatmul.f32.gmra.mxu2 %v300_v59  ;;  %v388_v3 = vadd.f32 %v1711_v32, %v387_v62 }
  0xc1   : > { %739 = vmatmul.f32.gmra.mxu3 %v301_v60 }
  0xc2   : > { %880 = vst.msk [vmem:[%s1722_s12 + $0x108] sm:$0xff] %vm846_vm0, %v815_v2  ;;  %v597_v4 = vadd.f32 %v596_v63, %v388_v3  ;;  %434 = vmatmul.f32.gmra.mxu0 %v236_v0  ;;  %643 = vmatmul.f32.gmra.mxu1 %v237_v1  ;;  %v310_v2 = vld [vmem:[%s1636_s24 + $0x370] sm:$0xff]  ;;  %v311_v3 = vld [vmem:[%s1636_s24 + $0x378] sm:$0xff] }
  0xc3   : > { %v483_v5 = vpop.f32.mrf.mxu2 }
  0xc4   : > { %v692_v6 = vpop.f32.mrf.mxu3  ;;  %v484_v7 = vadd.f32 %v1711_v32, %v483_v5  ;;  %v784_v8 = vmax.f32 %v597_v4, 0.0 }
  0xc6   : > { %849 = vst.msk [vmem:[%s1722_s12 + $0x10] sm:$0xff] %vm846_vm0, %v784_v8  ;;  %v693_v11 = vadd.f32 %v692_v6, %v484_v7  ;;  %v246_v7 = vld [vmem:[%s1636_s24 + $0x170] sm:$0xff]  ;;  %v247_v8 = vld [vmem:[%s1636_s24 + $0x178] sm:$0xff] }
  0xc7   : > { %v390_v12 = vpop.f32.mrf.mxu0  ;;  %v599_v13 = vpop.f32.mrf.mxu1 }
  0xc8   : > { %v816_v16 = vmax.f32 %v693_v11, 0.0  ;;  %533 = vmatmul.f32.gmra.mxu2 %v302_v9  ;;  %v391_v17 = vadd.f32 %v1711_v32, %v390_v12 }
  0xc9   : > { %742 = vmatmul.f32.gmra.mxu3 %v303_v10 }
  0xca   : > { %881 = vst.msk [vmem:[%s1722_s12 + $0x110] sm:$0xff] %vm846_vm0, %v816_v16  ;;  %v600_v18 = vadd.f32 %v599_v13, %v391_v17  ;;  %437 = vmatmul.f32.gmra.mxu0 %v238_v14  ;;  %646 = vmatmul.f32.gmra.mxu1 %v239_v15  ;;  %v312_v16 = vld [vmem:[%s1636_s24 + $0x380] sm:$0xff]  ;;  %v313_v17 = vld [vmem:[%s1636_s24 + $0x388] sm:$0xff] }
  0xcb   : > { %v486_v19 = vpop.f32.mrf.mxu2 }
  0xcc   : > { %v695_v20 = vpop.f32.mrf.mxu3  ;;  %v487_v21 = vadd.f32 %v1711_v32, %v486_v19  ;;  %v785_v22 = vmax.f32 %v600_v18, 0.0 }
  0xce   : > { %850 = vst.msk [vmem:[%s1722_s12 + $0x18] sm:$0xff] %vm846_vm0, %v785_v22  ;;  %v696_v25 = vadd.f32 %v695_v20, %v487_v21  ;;  %v248_v21 = vld [vmem:[%s1636_s24 + $0x180] sm:$0xff]  ;;  %v249_v22 = vld [vmem:[%s1636_s24 + $0x188] sm:$0xff] }
  0xcf   : > { %v393_v26 = vpop.f32.mrf.mxu0  ;;  %v602_v27 = vpop.f32.mrf.mxu1 }
  0xd0   : > { %v817_v30 = vmax.f32 %v696_v25, 0.0  ;;  %536 = vmatmul.f32.gmra.mxu2 %v304_v23  ;;  %v394_v31 = vadd.f32 %v1711_v32, %v393_v26 }
  0xd1   : > { %745 = vmatmul.f32.gmra.mxu3 %v305_v24 }
  0xd2   : > { %882 = vst.msk [vmem:[%s1722_s12 + $0x118] sm:$0xff] %vm846_vm0, %v817_v30  ;;  %v603_v33 = vadd.f32 %v602_v27, %v394_v31  ;;  %440 = vmatmul.f32.gmra.mxu0 %v240_v28  ;;  %649 = vmatmul.f32.gmra.mxu1 %v241_v29  ;;  %v314_v30 = vld [vmem:[%s1636_s24 + $0x390] sm:$0xff]  ;;  %v315_v31 = vld [vmem:[%s1636_s24 + $0x398] sm:$0xff] }
  0xd3   : > { %v489_v34 = vpop.f32.mrf.mxu2 }
  0xd4   : > { %v698_v35 = vpop.f32.mrf.mxu3  ;;  %v490_v36 = vadd.f32 %v1711_v32, %v489_v34  ;;  %v786_v37 = vmax.f32 %v603_v33, 0.0 }
  0xd6   : > { %851 = vst.msk [vmem:[%s1722_s12 + $0x20] sm:$0xff] %vm846_vm0, %v786_v37  ;;  %v699_v40 = vadd.f32 %v698_v35, %v490_v36  ;;  %v250_v36 = vld [vmem:[%s1636_s24 + $0x190] sm:$0xff]  ;;  %v251_v37 = vld [vmem:[%s1636_s24 + $0x198] sm:$0xff] }
  0xd7   : > { %v396_v41 = vpop.f32.mrf.mxu0  ;;  %v605_v42 = vpop.f32.mrf.mxu1 }
  0xd8   : > { %v818_v45 = vmax.f32 %v699_v40, 0.0  ;;  %539 = vmatmul.f32.gmra.mxu2 %v306_v38  ;;  %v397_v46 = vadd.f32 %v1711_v32, %v396_v41 }
  0xd9   : > { %748 = vmatmul.f32.gmra.mxu3 %v307_v39 }
  0xda   : > { %883 = vst.msk [vmem:[%s1722_s12 + $0x120] sm:$0xff] %vm846_vm0, %v818_v45  ;;  %v606_v47 = vadd.f32 %v605_v42, %v397_v46  ;;  %443 = vmatmul.f32.gmra.mxu0 %v242_v43  ;;  %652 = vmatmul.f32.gmra.mxu1 %v243_v44  ;;  %v316_v45 = vld [vmem:[%s1636_s24 + $0x3a0] sm:$0xff]  ;;  %v317_v46 = vld [vmem:[%s1636_s24 + $0x3a8] sm:$0xff] }
  0xdb   : > { %v492_v48 = vpop.f32.mrf.mxu2 }
  0xdc   : > { %v701_v49 = vpop.f32.mrf.mxu3  ;;  %v493_v50 = vadd.f32 %v1711_v32, %v492_v48  ;;  %v787_v51 = vmax.f32 %v606_v47, 0.0 }
  0xde   : > { %852 = vst.msk [vmem:[%s1722_s12 + $0x28] sm:$0xff] %vm846_vm0, %v787_v51  ;;  %v702_v54 = vadd.f32 %v701_v49, %v493_v50  ;;  %v252_v50 = vld [vmem:[%s1636_s24 + $0x1a0] sm:$0xff]  ;;  %v253_v51 = vld [vmem:[%s1636_s24 + $0x1a8] sm:$0xff] }
  0xdf   : > { %v399_v55 = vpop.f32.mrf.mxu0  ;;  %v608_v56 = vpop.f32.mrf.mxu1 }
  0xe0   : > { %v819_v59 = vmax.f32 %v702_v54, 0.0  ;;  %542 = vmatmul.f32.gmra.mxu2 %v308_v52  ;;  %v400_v60 = vadd.f32 %v1711_v32, %v399_v55 }
  0xe1   : > { %751 = vmatmul.f32.gmra.mxu3 %v309_v53 }
  0xe2   : > { %884 = vst.msk [vmem:[%s1722_s12 + $0x128] sm:$0xff] %vm846_vm0, %v819_v59  ;;  %v609_v61 = vadd.f32 %v608_v56, %v400_v60  ;;  %446 = vmatmul.f32.gmra.mxu0 %v244_v57  ;;  %655 = vmatmul.f32.gmra.mxu1 %v245_v58  ;;  %v318_v59 = vld [vmem:[%s1636_s24 + $0x3b0] sm:$0xff]  ;;  %v319_v60 = vld [vmem:[%s1636_s24 + $0x3b8] sm:$0xff] }
  0xe3   : > { %v495_v62 = vpop.f32.mrf.mxu2 }
  0xe4   : > { %v704_v63 = vpop.f32.mrf.mxu3  ;;  %v496_v0 = vadd.f32 %v1711_v32, %v495_v62  ;;  %v788_v1 = vmax.f32 %v609_v61, 0.0 }
  0xe6   : > { %853 = vst.msk [vmem:[%s1722_s12 + $0x30] sm:$0xff] %vm846_vm0, %v788_v1  ;;  %v705_v4 = vadd.f32 %v704_v63, %v496_v0  ;;  %v254_v0 = vld [vmem:[%s1636_s24 + $0x1b0] sm:$0xff]  ;;  %v255_v1 = vld [vmem:[%s1636_s24 + $0x1b8] sm:$0xff] }
  0xe7   : > { %v402_v5 = vpop.f32.mrf.mxu0  ;;  %v611_v6 = vpop.f32.mrf.mxu1 }
  0xe8   : > { %v820_v9 = vmax.f32 %v705_v4, 0.0  ;;  %545 = vmatmul.f32.gmra.mxu2 %v310_v2  ;;  %v403_v10 = vadd.f32 %v1711_v32, %v402_v5 }
  0xe9   : > { %754 = vmatmul.f32.gmra.mxu3 %v311_v3 }
  0xea   : > { %885 = vst.msk [vmem:[%s1722_s12 + $0x130] sm:$0xff] %vm846_vm0, %v820_v9  ;;  %v612_v11 = vadd.f32 %v611_v6, %v403_v10  ;;  %449 = vmatmul.f32.gmra.mxu0 %v246_v7  ;;  %658 = vmatmul.f32.gmra.mxu1 %v247_v8  ;;  %v320_v9 = vld [vmem:[%s1636_s24 + $0x3c0] sm:$0xff]  ;;  %v321_v10 = vld [vmem:[%s1636_s24 + $0x3c8] sm:$0xff] }
  0xeb   : > { %v498_v12 = vpop.f32.mrf.mxu2 }
  0xec   : > { %v707_v13 = vpop.f32.mrf.mxu3  ;;  %v499_v14 = vadd.f32 %v1711_v32, %v498_v12  ;;  %v789_v15 = vmax.f32 %v612_v11, 0.0 }
  0xee   : > { %854 = vst.msk [vmem:[%s1722_s12 + $0x38] sm:$0xff] %vm846_vm0, %v789_v15  ;;  %v708_v18 = vadd.f32 %v707_v13, %v499_v14  ;;  %v256_v14 = vld [vmem:[%s1636_s24 + $0x1c0] sm:$0xff]  ;;  %v257_v15 = vld [vmem:[%s1636_s24 + $0x1c8] sm:$0xff] }
  0xef   : > { %v405_v19 = vpop.f32.mrf.mxu0  ;;  %v614_v20 = vpop.f32.mrf.mxu1 }
  0xf0   : > { %v821_v23 = vmax.f32 %v708_v18, 0.0  ;;  %548 = vmatmul.f32.gmra.mxu2 %v312_v16  ;;  %v406_v24 = vadd.f32 %v1711_v32, %v405_v19 }
  0xf1   : > { %757 = vmatmul.f32.gmra.mxu3 %v313_v17 }
  0xf2   : > { %886 = vst.msk [vmem:[%s1722_s12 + $0x138] sm:$0xff] %vm846_vm0, %v821_v23  ;;  %v615_v25 = vadd.f32 %v614_v20, %v406_v24  ;;  %452 = vmatmul.f32.gmra.mxu0 %v248_v21  ;;  %661 = vmatmul.f32.gmra.mxu1 %v249_v22  ;;  %v322_v23 = vld [vmem:[%s1636_s24 + $0x3d0] sm:$0xff]  ;;  %v323_v24 = vld [vmem:[%s1636_s24 + $0x3d8] sm:$0xff] }
  0xf3   : > { %v501_v26 = vpop.f32.mrf.mxu2 }
  0xf4   : > { %v710_v27 = vpop.f32.mrf.mxu3  ;;  %v502_v28 = vadd.f32 %v1711_v32, %v501_v26  ;;  %v790_v29 = vmax.f32 %v615_v25, 0.0 }
  0xf6   : > { %855 = vst.msk [vmem:[%s1722_s12 + $0x40] sm:$0xff] %vm846_vm0, %v790_v29  ;;  %v711_v33 = vadd.f32 %v710_v27, %v502_v28  ;;  %v258_v28 = vld [vmem:[%s1636_s24 + $0x1d0] sm:$0xff]  ;;  %v259_v29 = vld [vmem:[%s1636_s24 + $0x1d8] sm:$0xff] }
  0xf7   : > { %v408_v34 = vpop.f32.mrf.mxu0  ;;  %v617_v35 = vpop.f32.mrf.mxu1 }
  0xf8   : > { %v822_v38 = vmax.f32 %v711_v33, 0.0  ;;  %551 = vmatmul.f32.gmra.mxu2 %v314_v30  ;;  %v409_v39 = vadd.f32 %v1711_v32, %v408_v34 }
  0xf9   : > { %760 = vmatmul.f32.gmra.mxu3 %v315_v31 }
  0xfa   : > { %887 = vst.msk [vmem:[%s1722_s12 + $0x140] sm:$0xff] %vm846_vm0, %v822_v38  ;;  %v618_v40 = vadd.f32 %v617_v35, %v409_v39  ;;  %455 = vmatmul.f32.gmra.mxu0 %v250_v36  ;;  %664 = vmatmul.f32.gmra.mxu1 %v251_v37  ;;  %v324_v38 = vld [vmem:[%s1636_s24 + $0x3e0] sm:$0xff]  ;;  %v325_v39 = vld [vmem:[%s1636_s24 + $0x3e8] sm:$0xff] }
  0xfb   : > { %v504_v41 = vpop.f32.mrf.mxu2 }
  0xfc   : > { %v713_v42 = vpop.f32.mrf.mxu3  ;;  %v505_v43 = vadd.f32 %v1711_v32, %v504_v41  ;;  %v791_v44 = vmax.f32 %v618_v40, 0.0 }
  0xfe   : > { %856 = vst.msk [vmem:[%s1722_s12 + $0x48] sm:$0xff] %vm846_vm0, %v791_v44  ;;  %v714_v47 = vadd.f32 %v713_v42, %v505_v43  ;;  %v260_v43 = vld [vmem:[%s1636_s24 + $0x1e0] sm:$0xff]  ;;  %v261_v44 = vld [vmem:[%s1636_s24 + $0x1e8] sm:$0xff] }
  0xff   : > { %v411_v48 = vpop.f32.mrf.mxu0  ;;  %v620_v49 = vpop.f32.mrf.mxu1 }
 0x100   : > { %v823_v52 = vmax.f32 %v714_v47, 0.0  ;;  %554 = vmatmul.f32.gmra.mxu2 %v316_v45  ;;  %v412_v53 = vadd.f32 %v1711_v32, %v411_v48 }
 0x101   : > { %763 = vmatmul.f32.gmra.mxu3 %v317_v46 }
 0x102   : > { %888 = vst.msk [vmem:[%s1722_s12 + $0x148] sm:$0xff] %vm846_vm0, %v823_v52  ;;  %v621_v54 = vadd.f32 %v620_v49, %v412_v53  ;;  %458 = vmatmul.f32.gmra.mxu0 %v252_v50  ;;  %667 = vmatmul.f32.gmra.mxu1 %v253_v51  ;;  %v326_v52 = vld [vmem:[%s1636_s24 + $0x3f0] sm:$0xff]  ;;  %v327_v53 = vld [vmem:[%s1636_s24 + $0x3f8] sm:$0xff] }
 0x103   : > { %v507_v55 = vpop.f32.mrf.mxu2 }
 0x104   : > { %v716_v56 = vpop.f32.mrf.mxu3  ;;  %v508_v57 = vadd.f32 %v1711_v32, %v507_v55  ;;  %v792_v58 = vmax.f32 %v621_v54, 0.0 }
 0x106   : > { %857 = vst.msk [vmem:[%s1722_s12 + $0x50] sm:$0xff] %vm846_vm0, %v792_v58  ;;  %v717_v61 = vadd.f32 %v716_v56, %v508_v57  ;;  %v262_v57 = vld [vmem:[%s1636_s24 + $0x1f0] sm:$0xff]  ;;  %v263_v58 = vld [vmem:[%s1636_s24 + $0x1f8] sm:$0xff] }
 0x107   : > { %v414_v62 = vpop.f32.mrf.mxu0  ;;  %v623_v63 = vpop.f32.mrf.mxu1 }
 0x108   : > { %v824_v2 = vmax.f32 %v717_v61, 0.0  ;;  %557 = vmatmul.f32.gmra.mxu2 %v318_v59  ;;  %v415_v3 = vadd.f32 %v1711_v32, %v414_v62 }
 0x109   : > { %766 = vmatmul.f32.gmra.mxu3 %v319_v60 }
 0x10a   : > { %889 = vst.msk [vmem:[%s1722_s12 + $0x150] sm:$0xff] %vm846_vm0, %v824_v2  ;;  %v624_v4 = vadd.f32 %v623_v63, %v415_v3  ;;  %461 = vmatmul.f32.gmra.mxu0 %v254_v0  ;;  %670 = vmatmul.f32.gmra.mxu1 %v255_v1 }
 0x10b   : > { %v510_v5 = vpop.f32.mrf.mxu2 }
 0x10c   : > { %v719_v6 = vpop.f32.mrf.mxu3  ;;  %v511_v7 = vadd.f32 %v1711_v32, %v510_v5  ;;  %v793_v8 = vmax.f32 %v624_v4, 0.0 }
 0x10e   : > { %858 = vst.msk [vmem:[%s1722_s12 + $0x58] sm:$0xff] %vm846_vm0, %v793_v8  ;;  %v720_v11 = vadd.f32 %v719_v6, %v511_v7 }
 0x10f   : > { %v417_v12 = vpop.f32.mrf.mxu0  ;;  %v626_v13 = vpop.f32.mrf.mxu1 }
 0x110   : > { %v825_v16 = vmax.f32 %v720_v11, 0.0  ;;  %560 = vmatmul.f32.gmra.mxu2 %v320_v9  ;;  %v418_v17 = vadd.f32 %v1711_v32, %v417_v12 }
 0x111   : > { %769 = vmatmul.f32.gmra.mxu3 %v321_v10 }
 0x112   : > { %890 = vst.msk [vmem:[%s1722_s12 + $0x158] sm:$0xff] %vm846_vm0, %v825_v16  ;;  %v627_v18 = vadd.f32 %v626_v13, %v418_v17  ;;  %464 = vmatmul.f32.gmra.mxu0 %v256_v14  ;;  %673 = vmatmul.f32.gmra.mxu1 %v257_v15 }
 0x113   : > { %v513_v19 = vpop.f32.mrf.mxu2 }
 0x114   : > { %v722_v20 = vpop.f32.mrf.mxu3  ;;  %v514_v21 = vadd.f32 %v1711_v32, %v513_v19  ;;  %v794_v22 = vmax.f32 %v627_v18, 0.0 }
 0x116   : > { %859 = vst.msk [vmem:[%s1722_s12 + $0x60] sm:$0xff] %vm846_vm0, %v794_v22  ;;  %v723_v25 = vadd.f32 %v722_v20, %v514_v21 }
 0x117   : > { %v420_v26 = vpop.f32.mrf.mxu0  ;;  %v629_v27 = vpop.f32.mrf.mxu1 }
 0x118   : > { %v826_v30 = vmax.f32 %v723_v25, 0.0  ;;  %563 = vmatmul.f32.gmra.mxu2 %v322_v23  ;;  %v421_v31 = vadd.f32 %v1711_v32, %v420_v26 }
 0x119   : > { %772 = vmatmul.f32.gmra.mxu3 %v323_v24 }
 0x11a   : > { %891 = vst.msk [vmem:[%s1722_s12 + $0x160] sm:$0xff] %vm846_vm0, %v826_v30  ;;  %v630_v33 = vadd.f32 %v629_v27, %v421_v31  ;;  %467 = vmatmul.f32.gmra.mxu0 %v258_v28  ;;  %676 = vmatmul.f32.gmra.mxu1 %v259_v29 }
 0x11b   : > { %v516_v34 = vpop.f32.mrf.mxu2 }
 0x11c   : > { %v725_v35 = vpop.f32.mrf.mxu3  ;;  %v517_v36 = vadd.f32 %v1711_v32, %v516_v34  ;;  %v795_v37 = vmax.f32 %v630_v33, 0.0 }
 0x11e   : > { %860 = vst.msk [vmem:[%s1722_s12 + $0x68] sm:$0xff] %vm846_vm0, %v795_v37  ;;  %v726_v40 = vadd.f32 %v725_v35, %v517_v36 }
 0x11f   : > { %v423_v41 = vpop.f32.mrf.mxu0  ;;  %v632_v42 = vpop.f32.mrf.mxu1 }
 0x120   : > { %v827_v45 = vmax.f32 %v726_v40, 0.0  ;;  %566 = vmatmul.f32.gmra.mxu2 %v324_v38  ;;  %v424_v46 = vadd.f32 %v1711_v32, %v423_v41 }
 0x121   : > { %775 = vmatmul.f32.gmra.mxu3 %v325_v39 }
 0x122   : > { %892 = vst.msk [vmem:[%s1722_s12 + $0x168] sm:$0xff] %vm846_vm0, %v827_v45  ;;  %v633_v47 = vadd.f32 %v632_v42, %v424_v46  ;;  %470 = vmatmul.f32.gmra.mxu0 %v260_v43  ;;  %679 = vmatmul.f32.gmra.mxu1 %v261_v44 }
 0x123   : > { %v519_v48 = vpop.f32.mrf.mxu2 }
 0x124   : > { %v728_v49 = vpop.f32.mrf.mxu3  ;;  %v520_v50 = vadd.f32 %v1711_v32, %v519_v48  ;;  %v796_v51 = vmax.f32 %v633_v47, 0.0 }
 0x126   : > { %861 = vst.msk [vmem:[%s1722_s12 + $0x70] sm:$0xff] %vm846_vm0, %v796_v51  ;;  %v729_v54 = vadd.f32 %v728_v49, %v520_v50 }
 0x127   : > { %v426_v55 = vpop.f32.mrf.mxu0  ;;  %v635_v56 = vpop.f32.mrf.mxu1 }
 0x128   : > { %v828_v59 = vmax.f32 %v729_v54, 0.0  ;;  %569 = vmatmul.f32.gmra.mxu2 %v326_v52  ;;  %v427_v60 = vadd.f32 %v1711_v32, %v426_v55 }
 0x129   : > { %778 = vmatmul.f32.gmra.mxu3 %v327_v53 }
 0x12a   : > { %893 = vst.msk [vmem:[%s1722_s12 + $0x170] sm:$0xff] %vm846_vm0, %v828_v59  ;;  %v636_v61 = vadd.f32 %v635_v56, %v427_v60  ;;  %473 = vmatmul.f32.gmra.mxu0 %v262_v57  ;;  %682 = vmatmul.f32.gmra.mxu1 %v263_v58 }
 0x12b   : > { %v522_v62 = vpop.f32.mrf.mxu2 }
 0x12c   : > { %v731_v63 = vpop.f32.mrf.mxu3  ;;  %v523_v0 = vadd.f32 %v1711_v32, %v522_v62  ;;  %v797_v1 = vmax.f32 %v636_v61, 0.0 }
 0x12e   : > { %862 = vst.msk [vmem:[%s1722_s12 + $0x78] sm:$0xff] %vm846_vm0, %v797_v1  ;;  %v732_v2 = vadd.f32 %v731_v63, %v523_v0 }
 0x12f   : > { %v429_v3 = vpop.f32.mrf.mxu0  ;;  %v638_v4 = vpop.f32.mrf.mxu1 }
 0x130   : > { %v829_v5 = vmax.f32 %v732_v2, 0.0  ;;  %v430_v6 = vadd.f32 %v1711_v32, %v429_v3 }
 0x132   : > { %894 = vst.msk [vmem:[%s1722_s12 + $0x178] sm:$0xff] %vm846_vm0, %v829_v5  ;;  %v639_v7 = vadd.f32 %v638_v4, %v430_v6 }
 0x133   : > { %v525_v8 = vpop.f32.mrf.mxu2 }
 0x134   : > { %v734_v9 = vpop.f32.mrf.mxu3  ;;  %v526_v10 = vadd.f32 %v1711_v32, %v525_v8  ;;  %v798_v11 = vmax.f32 %v639_v7, 0.0 }
 0x136   : > { %863 = vst.msk [vmem:[%s1722_s12 + $0x80] sm:$0xff] %vm846_vm0, %v798_v11  ;;  %v735_v12 = vadd.f32 %v734_v9, %v526_v10 }
 0x137   : > { %v432_v13 = vpop.f32.mrf.mxu0  ;;  %v641_v14 = vpop.f32.mrf.mxu1 }
 0x138   : > { %v830_v15 = vmax.f32 %v735_v12, 0.0  ;;  %v433_v16 = vadd.f32 %v1711_v32, %v432_v13 }
 0x13a   : > { %895 = vst.msk [vmem:[%s1722_s12 + $0x180] sm:$0xff] %vm846_vm0, %v830_v15  ;;  %v642_v17 = vadd.f32 %v641_v14, %v433_v16 }
 0x13b   : > { %v528_v18 = vpop.f32.mrf.mxu2 }
 0x13c   : > { %v737_v19 = vpop.f32.mrf.mxu3  ;;  %v529_v20 = vadd.f32 %v1711_v32, %v528_v18  ;;  %v799_v21 = vmax.f32 %v642_v17, 0.0 }
 0x13e   : > { %864 = vst.msk [vmem:[%s1722_s12 + $0x88] sm:$0xff] %vm846_vm0, %v799_v21  ;;  %v738_v22 = vadd.f32 %v737_v19, %v529_v20 }
 0x13f   : > { %v435_v23 = vpop.f32.mrf.mxu0  ;;  %v644_v24 = vpop.f32.mrf.mxu1 }
 0x140   : > { %v831_v25 = vmax.f32 %v738_v22, 0.0  ;;  %v436_v26 = vadd.f32 %v1711_v32, %v435_v23 }
 0x142   : > { %896 = vst.msk [vmem:[%s1722_s12 + $0x188] sm:$0xff] %vm846_vm0, %v831_v25  ;;  %v645_v27 = vadd.f32 %v644_v24, %v436_v26 }
 0x143   : > { %v531_v28 = vpop.f32.mrf.mxu2 }
 0x144   : > { %v740_v29 = vpop.f32.mrf.mxu3  ;;  %v532_v30 = vadd.f32 %v1711_v32, %v531_v28  ;;  %v800_v31 = vmax.f32 %v645_v27, 0.0 }
 0x146   : > { %865 = vst.msk [vmem:[%s1722_s12 + $0x90] sm:$0xff] %vm846_vm0, %v800_v31  ;;  %v741_v33 = vadd.f32 %v740_v29, %v532_v30 }
 0x147   : > { %v438_v34 = vpop.f32.mrf.mxu0  ;;  %v647_v35 = vpop.f32.mrf.mxu1 }
 0x148   : > { %v832_v36 = vmax.f32 %v741_v33, 0.0  ;;  %v439_v37 = vadd.f32 %v1711_v32, %v438_v34 }
 0x14a   : > { %897 = vst.msk [vmem:[%s1722_s12 + $0x190] sm:$0xff] %vm846_vm0, %v832_v36  ;;  %v648_v38 = vadd.f32 %v647_v35, %v439_v37 }
 0x14b   : > { %v534_v39 = vpop.f32.mrf.mxu2 }
 0x14c   : > { %v743_v40 = vpop.f32.mrf.mxu3  ;;  %v535_v41 = vadd.f32 %v1711_v32, %v534_v39  ;;  %v801_v42 = vmax.f32 %v648_v38, 0.0 }
 0x14e   : > { %866 = vst.msk [vmem:[%s1722_s12 + $0x98] sm:$0xff] %vm846_vm0, %v801_v42  ;;  %v744_v43 = vadd.f32 %v743_v40, %v535_v41 }
 0x14f   : > { %v441_v44 = vpop.f32.mrf.mxu0  ;;  %v650_v45 = vpop.f32.mrf.mxu1 }
 0x150   : > { %v833_v46 = vmax.f32 %v744_v43, 0.0  ;;  %v442_v47 = vadd.f32 %v1711_v32, %v441_v44 }
 0x152   : > { %898 = vst.msk [vmem:[%s1722_s12 + $0x198] sm:$0xff] %vm846_vm0, %v833_v46  ;;  %v651_v48 = vadd.f32 %v650_v45, %v442_v47 }
 0x153   : > { %v537_v49 = vpop.f32.mrf.mxu2 }
 0x154   : > { %v746_v50 = vpop.f32.mrf.mxu3  ;;  %v538_v51 = vadd.f32 %v1711_v32, %v537_v49  ;;  %v802_v52 = vmax.f32 %v651_v48, 0.0 }
 0x156   : > { %867 = vst.msk [vmem:[%s1722_s12 + $0xa0] sm:$0xff] %vm846_vm0, %v802_v52  ;;  %v747_v53 = vadd.f32 %v746_v50, %v538_v51 }
 0x157   : > { %v444_v54 = vpop.f32.mrf.mxu0  ;;  %v653_v55 = vpop.f32.mrf.mxu1 }
 0x158   : > { %v834_v56 = vmax.f32 %v747_v53, 0.0  ;;  %v445_v57 = vadd.f32 %v1711_v32, %v444_v54 }
 0x15a   : > { %899 = vst.msk [vmem:[%s1722_s12 + $0x1a0] sm:$0xff] %vm846_vm0, %v834_v56  ;;  %v654_v58 = vadd.f32 %v653_v55, %v445_v57 }
 0x15b   : > { %v540_v59 = vpop.f32.mrf.mxu2 }
 0x15c   : > { %v749_v60 = vpop.f32.mrf.mxu3  ;;  %v541_v61 = vadd.f32 %v1711_v32, %v540_v59  ;;  %v803_v62 = vmax.f32 %v654_v58, 0.0 }
 0x15e   : > { %868 = vst.msk [vmem:[%s1722_s12 + $0xa8] sm:$0xff] %vm846_vm0, %v803_v62  ;;  %v750_v63 = vadd.f32 %v749_v60, %v541_v61 }
 0x15f   : > { %v447_v0 = vpop.f32.mrf.mxu0  ;;  %v656_v1 = vpop.f32.mrf.mxu1 }
 0x160   : > { %v835_v2 = vmax.f32 %v750_v63, 0.0  ;;  %v448_v3 = vadd.f32 %v1711_v32, %v447_v0 }
 0x162   : > { %900 = vst.msk [vmem:[%s1722_s12 + $0x1a8] sm:$0xff] %vm846_vm0, %v835_v2  ;;  %v657_v4 = vadd.f32 %v656_v1, %v448_v3 }
 0x163   : > { %v543_v5 = vpop.f32.mrf.mxu2 }
 0x164   : > { %v752_v6 = vpop.f32.mrf.mxu3  ;;  %v544_v7 = vadd.f32 %v1711_v32, %v543_v5  ;;  %v804_v8 = vmax.f32 %v657_v4, 0.0 }
 0x166   : > { %869 = vst.msk [vmem:[%s1722_s12 + $0xb0] sm:$0xff] %vm846_vm0, %v804_v8  ;;  %v753_v9 = vadd.f32 %v752_v6, %v544_v7 }
 0x167   : > { %v450_v10 = vpop.f32.mrf.mxu0  ;;  %v659_v11 = vpop.f32.mrf.mxu1 }
 0x168   : > { %v836_v12 = vmax.f32 %v753_v9, 0.0  ;;  %v451_v13 = vadd.f32 %v1711_v32, %v450_v10 }
 0x16a   : > { %901 = vst.msk [vmem:[%s1722_s12 + $0x1b0] sm:$0xff] %vm846_vm0, %v836_v12  ;;  %v660_v14 = vadd.f32 %v659_v11, %v451_v13 }
 0x16b   : > { %v546_v15 = vpop.f32.mrf.mxu2 }
 0x16c   : > { %v755_v16 = vpop.f32.mrf.mxu3  ;;  %v547_v17 = vadd.f32 %v1711_v32, %v546_v15  ;;  %v805_v18 = vmax.f32 %v660_v14, 0.0 }
 0x16e   : > { %870 = vst.msk [vmem:[%s1722_s12 + $0xb8] sm:$0xff] %vm846_vm0, %v805_v18  ;;  %v756_v19 = vadd.f32 %v755_v16, %v547_v17 }
 0x16f   : > { %v453_v20 = vpop.f32.mrf.mxu0  ;;  %v662_v21 = vpop.f32.mrf.mxu1 }
 0x170   : > { %v837_v22 = vmax.f32 %v756_v19, 0.0  ;;  %v454_v23 = vadd.f32 %v1711_v32, %v453_v20 }
 0x172   : > { %902 = vst.msk [vmem:[%s1722_s12 + $0x1b8] sm:$0xff] %vm846_vm0, %v837_v22  ;;  %v663_v24 = vadd.f32 %v662_v21, %v454_v23 }
 0x173   : > { %v549_v25 = vpop.f32.mrf.mxu2 }
 0x174   : > { %v758_v26 = vpop.f32.mrf.mxu3  ;;  %v550_v27 = vadd.f32 %v1711_v32, %v549_v25  ;;  %v806_v28 = vmax.f32 %v663_v24, 0.0 }
 0x176   : > { %871 = vst.msk [vmem:[%s1722_s12 + $0xc0] sm:$0xff] %vm846_vm0, %v806_v28  ;;  %v759_v29 = vadd.f32 %v758_v26, %v550_v27 }
 0x177   : > { %v456_v30 = vpop.f32.mrf.mxu0  ;;  %v665_v31 = vpop.f32.mrf.mxu1 }
 0x178   : > { %v838_v33 = vmax.f32 %v759_v29, 0.0  ;;  %v457_v34 = vadd.f32 %v1711_v32, %v456_v30 }
 0x17a   : > { %903 = vst.msk [vmem:[%s1722_s12 + $0x1c0] sm:$0xff] %vm846_vm0, %v838_v33  ;;  %v666_v35 = vadd.f32 %v665_v31, %v457_v34 }
 0x17b   : > { %v552_v36 = vpop.f32.mrf.mxu2 }
 0x17c   : > { %v761_v37 = vpop.f32.mrf.mxu3  ;;  %v553_v38 = vadd.f32 %v1711_v32, %v552_v36  ;;  %v807_v39 = vmax.f32 %v666_v35, 0.0 }
 0x17e   : > { %872 = vst.msk [vmem:[%s1722_s12 + $0xc8] sm:$0xff] %vm846_vm0, %v807_v39  ;;  %v762_v40 = vadd.f32 %v761_v37, %v553_v38 }
 0x17f   : > { %v459_v41 = vpop.f32.mrf.mxu0  ;;  %v668_v42 = vpop.f32.mrf.mxu1 }
 0x180   : > { %v839_v43 = vmax.f32 %v762_v40, 0.0  ;;  %v460_v44 = vadd.f32 %v1711_v32, %v459_v41 }
 0x182   : > { %904 = vst.msk [vmem:[%s1722_s12 + $0x1c8] sm:$0xff] %vm846_vm0, %v839_v43  ;;  %v669_v45 = vadd.f32 %v668_v42, %v460_v44 }
 0x183   : > { %v555_v46 = vpop.f32.mrf.mxu2 }
 0x184   : > { %v764_v47 = vpop.f32.mrf.mxu3  ;;  %v556_v48 = vadd.f32 %v1711_v32, %v555_v46  ;;  %v808_v49 = vmax.f32 %v669_v45, 0.0 }
 0x186   : > { %873 = vst.msk [vmem:[%s1722_s12 + $0xd0] sm:$0xff] %vm846_vm0, %v808_v49  ;;  %v765_v50 = vadd.f32 %v764_v47, %v556_v48 }
 0x187   : > { %v462_v51 = vpop.f32.mrf.mxu0  ;;  %v671_v52 = vpop.f32.mrf.mxu1 }
 0x188   : > { %v840_v53 = vmax.f32 %v765_v50, 0.0  ;;  %v463_v54 = vadd.f32 %v1711_v32, %v462_v51 }
 0x18a   : > { %905 = vst.msk [vmem:[%s1722_s12 + $0x1d0] sm:$0xff] %vm846_vm0, %v840_v53  ;;  %v672_v55 = vadd.f32 %v671_v52, %v463_v54 }
 0x18b   : > { %v558_v56 = vpop.f32.mrf.mxu2 }
 0x18c   : > { %v767_v57 = vpop.f32.mrf.mxu3  ;;  %v559_v58 = vadd.f32 %v1711_v32, %v558_v56  ;;  %v809_v59 = vmax.f32 %v672_v55, 0.0 }
 0x18e   : > { %874 = vst.msk [vmem:[%s1722_s12 + $0xd8] sm:$0xff] %vm846_vm0, %v809_v59  ;;  %v768_v60 = vadd.f32 %v767_v57, %v559_v58 }
 0x18f   : > { %v465_v61 = vpop.f32.mrf.mxu0  ;;  %v674_v62 = vpop.f32.mrf.mxu1 }
 0x190   : > { %v841_v63 = vmax.f32 %v768_v60, 0.0  ;;  %v466_v0 = vadd.f32 %v1711_v32, %v465_v61 }
 0x192   : > { %906 = vst.msk [vmem:[%s1722_s12 + $0x1d8] sm:$0xff] %vm846_vm0, %v841_v63  ;;  %v675_v1 = vadd.f32 %v674_v62, %v466_v0 }
 0x193   : > { %v561_v2 = vpop.f32.mrf.mxu2 }
 0x194   : > { %v770_v3 = vpop.f32.mrf.mxu3  ;;  %v562_v4 = vadd.f32 %v1711_v32, %v561_v2  ;;  %v810_v5 = vmax.f32 %v675_v1, 0.0 }
 0x196   : > { %875 = vst.msk [vmem:[%s1722_s12 + $0xe0] sm:$0xff] %vm846_vm0, %v810_v5  ;;  %v771_v6 = vadd.f32 %v770_v3, %v562_v4 }
 0x197   : > { %v468_v7 = vpop.f32.mrf.mxu0  ;;  %v677_v8 = vpop.f32.mrf.mxu1 }
 0x198   : > { %v842_v9 = vmax.f32 %v771_v6, 0.0  ;;  %v469_v10 = vadd.f32 %v1711_v32, %v468_v7 }
 0x19a   : > { %907 = vst.msk [vmem:[%s1722_s12 + $0x1e0] sm:$0xff] %vm846_vm0, %v842_v9  ;;  %v678_v11 = vadd.f32 %v677_v8, %v469_v10 }
 0x19b   : > { %v564_v12 = vpop.f32.mrf.mxu2 }
 0x19c   : > { %v773_v13 = vpop.f32.mrf.mxu3  ;;  %v565_v14 = vadd.f32 %v1711_v32, %v564_v12  ;;  %v811_v15 = vmax.f32 %v678_v11, 0.0 }
 0x19e   : > { %876 = vst.msk [vmem:[%s1722_s12 + $0xe8] sm:$0xff] %vm846_vm0, %v811_v15  ;;  %v774_v16 = vadd.f32 %v773_v13, %v565_v14 }
 0x19f   : > { %v471_v17 = vpop.f32.mrf.mxu0  ;;  %v680_v18 = vpop.f32.mrf.mxu1 }
 0x1a0   : > { %v843_v19 = vmax.f32 %v774_v16, 0.0  ;;  %v472_v20 = vadd.f32 %v1711_v32, %v471_v17 }
 0x1a2   : > { %908 = vst.msk [vmem:[%s1722_s12 + $0x1e8] sm:$0xff] %vm846_vm0, %v843_v19  ;;  %v681_v21 = vadd.f32 %v680_v18, %v472_v20 }
 0x1a3   : > { %v567_v22 = vpop.f32.mrf.mxu2 }
 0x1a4   : > { %v776_v23 = vpop.f32.mrf.mxu3  ;;  %v568_v24 = vadd.f32 %v1711_v32, %v567_v22  ;;  %v812_v25 = vmax.f32 %v681_v21, 0.0 }
 0x1a6   : > { %877 = vst.msk [vmem:[%s1722_s12 + $0xf0] sm:$0xff] %vm846_vm0, %v812_v25  ;;  %v777_v26 = vadd.f32 %v776_v23, %v568_v24 }
 0x1a7   : > { %v474_v27 = vpop.f32.mrf.mxu0  ;;  %v683_v28 = vpop.f32.mrf.mxu1 }
 0x1a8   : > { %v844_v29 = vmax.f32 %v777_v26, 0.0  ;;  %v475_v30 = vadd.f32 %v1711_v32, %v474_v27 }
 0x1aa   : > { %909 = vst.msk [vmem:[%s1722_s12 + $0x1f0] sm:$0xff] %vm846_vm0, %v844_v29  ;;  %v684_v31 = vadd.f32 %v683_v28, %v475_v30 }
 0x1ab   : > { %v570_v33 = vpop.f32.mrf.mxu2 }
 0x1ac   : > { %v779_v34 = vpop.f32.mrf.mxu3  ;;  %v571_v35 = vadd.f32 %v1711_v32, %v570_v33  ;;  %v813_v36 = vmax.f32 %v684_v31, 0.0 }
 0x1ae   : > { %878 = vst.msk [vmem:[%s1722_s12 + $0xf8] sm:$0xff] %vm846_vm0, %v813_v36  ;;  %v780_v37 = vadd.f32 %v779_v34, %v571_v35  ;;  %917 = sbr.rel (!%p1534_p4) target bundleno = 499 (0x1f3), region = 36 }
 0x1b0   : > { %v845_v38 = vmax.f32 %v780_v37, 0.0 }
 0x1b2   : > { %910 = vst.msk [vmem:[%s1722_s12 + $0x1f8] sm:$0xff] %vm846_vm0, %v845_v38 }
 0x1b3   : > { %s2128_s7 = smov (!%p920_p8, %s919_s7), 64 }
 0x1b4   : > { %s1261_s14 = sshll.u32 %s2128_s7, 3 }
 0x1b5   : > { %p1264_p9 = scmp.eq.s32.totalorder %s1261_s14, 0 }
 0x1b6   : > { %s1985_s17 = sshrl.u32 (!%p1264_p9), %s2128_s7, 5 }
 0x1b7   : > { %928 = sbr.rel (%p1264_p9) target bundleno = 499 (0x1f3), region = 40  ;;  %p1265_p10 = scmp.le.s32.totalorder (!%p1264_p9), %s1985_s17, 0 }
 0x1bc   : > { %1207 = sbr.rel (%p1265_p10) target bundleno = 482 (0x1e2), region = 116  ;;  %s2119_s15 = smov (!%p1265_p10), %s1979_s11 }
 0x1bd   : > { %s2120_s20 = smov (!%p1265_p10), %s1722_s12  ;;  %s1994_s5 = smov (!%p1265_p10), 0  }
 0x1be   : > { %s1996_s18 = smov (!%p1265_p10), 0  }
 0x1c1 LB: >> { %v1053_v32 = vld [vmem:[%s1463_s20] sm:$0xff]  ;;  %v1055_v39 = vld [vmem:[%s1463_s20 + $0x8] sm:$0xff]  ;;  %v1057_v40 = vld [vmem:[%s1463_s20 + $0x10] sm:$0xff]  ;;  %s1117_s21 = sadd.s32 1, %s1467_s5  ;;  %s1047_s18 = sadd.s32 1, %s1471_s18   ;;  %s1471_s18 = sphi %s1996_s18, %s1047_s18   ;;  %s1467_s5 = sphi %s1994_s5, %s2123_s5   ;;  %s1463_s20 = sphi %s2120_s20, %s2122_s20   ;;  %s1459_s15 = sphi %s2119_s15, %s2121_s15  }
 0x1c2   : >> { %1054 = vst [vmem:[%s1459_s15] sm:$0xff] %v1053_v32  ;;  %v1059_v41 = vld [vmem:[%s1463_s20 + $0x18] sm:$0xff]  ;;  %p1118_p11 = scmp.ge.s32.totalorder %s1117_s21, %s1985_s17  ;;  %v1061_v42 = vld [vmem:[%s1463_s20 + $0x20] sm:$0xff]  ;;  %v1063_v43 = vld [vmem:[%s1463_s20 + $0x28] sm:$0xff]  ;;  %p1046_p12 = scmp.ge.s32.totalorder %s1047_s18, %s1985_s17 }
 0x1c3   : >> { %1056 = vst [vmem:[%s1459_s15 + $0x8] sm:$0xff] %v1055_v39  ;;  %v1065_v44 = vld [vmem:[%s1463_s20 + $0x30] sm:$0xff]  ;;  %v1067_v45 = vld [vmem:[%s1463_s20 + $0x38] sm:$0xff]  ;;  %v1069_v46 = vld [vmem:[%s1463_s20 + $0x40] sm:$0xff] }
 0x1c4   : >> { %1058 = vst [vmem:[%s1459_s15 + $0x10] sm:$0xff] %v1057_v40  ;;  %s2130_s21 = smov (%p1118_p11, %s1117_s21), 0  ;;  %v1071_v47 = vld [vmem:[%s1463_s20 + $0x48] sm:$0xff]  ;;  %v1073_v48 = vld [vmem:[%s1463_s20 + $0x50] sm:$0xff]  ;;  %v1075_v49 = vld [vmem:[%s1463_s20 + $0x58] sm:$0xff] }
 0x1c5   : >> { %1060 = vst [vmem:[%s1459_s15 + $0x18] sm:$0xff] %v1059_v41  ;;  %s1266_s22 = sshll.u32 %s2130_s21, 8  ;;  %v1077_v50 = vld [vmem:[%s1463_s20 + $0x60] sm:$0xff]  ;;  %v1079_v51 = vld [vmem:[%s1463_s20 + $0x68] sm:$0xff]  ;;  %v1081_v52 = vld [vmem:[%s1463_s20 + $0x70] sm:$0xff]  ;;  %s2123_s5 = smov %s2130_s21 }
 0x1c6   : >> { %1062 = vst [vmem:[%s1459_s15 + $0x20] sm:$0xff] %v1061_v42  ;;  %s2028_s23 = scalar_lea.vmem %s1722_s12, %s1266_s22 [#allocation2]   ;;  %s2031_s24 = scalar_lea.vmem %s1979_s11, %s1266_s22   ;;  %v1083_v53 = vld [vmem:[%s1463_s20 + $0x78] sm:$0xff]  ;;  %v1085_v54 = vld [vmem:[%s1463_s20 + $0x80] sm:$0xff]  ;;  %v1087_v55 = vld [vmem:[%s1463_s20 + $0x88] sm:$0xff] }
 0x1c7   : >> { %1064 = vst [vmem:[%s1459_s15 + $0x28] sm:$0xff] %v1063_v43  ;;  %v1089_v56 = vld [vmem:[%s1463_s20 + $0x90] sm:$0xff]  ;;  %v1091_v57 = vld [vmem:[%s1463_s20 + $0x98] sm:$0xff]  ;;  %v1093_v58 = vld [vmem:[%s1463_s20 + $0xa0] sm:$0xff] }
 0x1c8   : >> { %1066 = vst [vmem:[%s1459_s15 + $0x30] sm:$0xff] %v1065_v44  ;;  %v1095_v59 = vld [vmem:[%s1463_s20 + $0xa8] sm:$0xff]  ;;  %v1097_v60 = vld [vmem:[%s1463_s20 + $0xb0] sm:$0xff]  ;;  %v1099_v61 = vld [vmem:[%s1463_s20 + $0xb8] sm:$0xff] }
 0x1c9   : >> { %1068 = vst [vmem:[%s1459_s15 + $0x38] sm:$0xff] %v1067_v45  ;;  %v1101_v62 = vld [vmem:[%s1463_s20 + $0xc0] sm:$0xff]  ;;  %v1103_v63 = vld [vmem:[%s1463_s20 + $0xc8] sm:$0xff]  ;;  %v1105_v0 = vld [vmem:[%s1463_s20 + $0xd0] sm:$0xff] }
 0x1ca   : >> { %1070 = vst [vmem:[%s1459_s15 + $0x40] sm:$0xff] %v1069_v46  ;;  %v1107_v1 = vld [vmem:[%s1463_s20 + $0xd8] sm:$0xff]  ;;  %v1109_v2 = vld [vmem:[%s1463_s20 + $0xe0] sm:$0xff]  ;;  %v1111_v3 = vld [vmem:[%s1463_s20 + $0xe8] sm:$0xff] }
 0x1cb   : >> { %1072 = vst [vmem:[%s1459_s15 + $0x48] sm:$0xff] %v1071_v47  ;;  %v1113_v4 = vld [vmem:[%s1463_s20 + $0xf0] sm:$0xff]  ;;  %v1115_v5 = vld [vmem:[%s1463_s20 + $0xf8] sm:$0xff]  ;;  %s2122_s20 = smov %s2028_s23 }
 0x1cc   : >> { %1074 = vst [vmem:[%s1459_s15 + $0x50] sm:$0xff] %v1073_v48 }
 0x1cd   : >> { %1076 = vst [vmem:[%s1459_s15 + $0x58] sm:$0xff] %v1075_v49 }
 0x1ce   : >> { %1078 = vst [vmem:[%s1459_s15 + $0x60] sm:$0xff] %v1077_v50 }
 0x1cf   : >> { %1080 = vst [vmem:[%s1459_s15 + $0x68] sm:$0xff] %v1079_v51 }
 0x1d0   : >> { %1082 = vst [vmem:[%s1459_s15 + $0x70] sm:$0xff] %v1081_v52 }
 0x1d1   : >> { %1084 = vst [vmem:[%s1459_s15 + $0x78] sm:$0xff] %v1083_v53 }
 0x1d2   : >> { %1086 = vst [vmem:[%s1459_s15 + $0x80] sm:$0xff] %v1085_v54 }
 0x1d3   : >> { %1088 = vst [vmem:[%s1459_s15 + $0x88] sm:$0xff] %v1087_v55 }
 0x1d4   : >> { %1090 = vst [vmem:[%s1459_s15 + $0x90] sm:$0xff] %v1089_v56 }
 0x1d5   : >> { %1092 = vst [vmem:[%s1459_s15 + $0x98] sm:$0xff] %v1091_v57 }
 0x1d6   : >> { %1094 = vst [vmem:[%s1459_s15 + $0xa0] sm:$0xff] %v1093_v58 }
 0x1d7   : >> { %1096 = vst [vmem:[%s1459_s15 + $0xa8] sm:$0xff] %v1095_v59 }
 0x1d8   : >> { %1098 = vst [vmem:[%s1459_s15 + $0xb0] sm:$0xff] %v1097_v60 }
 0x1d9   : >> { %1100 = vst [vmem:[%s1459_s15 + $0xb8] sm:$0xff] %v1099_v61 }
 0x1da   : >> { %1102 = vst [vmem:[%s1459_s15 + $0xc0] sm:$0xff] %v1101_v62 }
 0x1db   : >> { %1104 = vst [vmem:[%s1459_s15 + $0xc8] sm:$0xff] %v1103_v63 }
 0x1dc   : >> { %1106 = vst [vmem:[%s1459_s15 + $0xd0] sm:$0xff] %v1105_v0 }
 0x1dd   : >> { %1108 = vst [vmem:[%s1459_s15 + $0xd8] sm:$0xff] %v1107_v1  ;;  %1049 = sbr.rel (!%p1046_p12) target bundleno = 449 (0x1c1), region = 122 }
 0x1de   : >> { %1110 = vst [vmem:[%s1459_s15 + $0xe0] sm:$0xff] %v1109_v2 }
 0x1df   : >> { %1112 = vst [vmem:[%s1459_s15 + $0xe8] sm:$0xff] %v1111_v3 }
 0x1e0   : >> { %1114 = vst [vmem:[%s1459_s15 + $0xf0] sm:$0xff] %v1113_v4 }
 0x1e1   : >> { %1116 = vst [vmem:[%s1459_s15 + $0xf8] sm:$0xff] %v1115_v5  ;;  %s2121_s15 = smov %s2031_s24 }
 0x1e2 PF: > { %s2096_s25 = sand.u32 31, %s2128_s7   ;;  %s1278_s26 = sshll.u32 %s1985_s17, 8 }
 0x1e3   : > { %s1128_s27 = scalar_lea.vmem %s1722_s12, %s1278_s26 [#allocation2]   ;;  %s1130_s28 = scalar_lea.vmem %s1979_s11, %s1278_s26  }
 0x1e4   : > { %p1271_p13 = scmp.le.s32.totalorder %s2096_s25, 0 }
 0x1e5   : > { %s1473_s29 = smov (!%p1271_p13), %s1130_s28   ;;  %s1477_s30 = smov (!%p1271_p13), %s1128_s27  }
 0x1e6   : > { %1221 = sbr.rel (%p1271_p13) target bundleno = 499 (0x1f3), region = 127  ;;  %s1481_s4 = smov (!%p1271_p13), 0  }
 0x1e7   : > { %s1485_s6 = smov (!%p1271_p13), 0  }
 0x1eb LB: >> { %v1140_v6 = vld [vmem:[%s1479_s30] sm:$0xff]  ;;  %s1142_s7 = sadd.s32 1, %s1483_s4  ;;  %s1134_s6 = sadd.s32 1, %s1487_s6   ;;  %s1487_s6 = sphi %s1485_s6, %s1134_s6   ;;  %s1483_s4 = sphi %s1481_s4, %s1482_s4   ;;  %s1479_s30 = sphi %s1477_s30, %s1147_s30   ;;  %s1475_s29 = sphi %s1473_s29, %s1148_s29  }
 0x1ec   : >> { %1141 = vst [vmem:[%s1475_s29] sm:$0xff] %v1140_v6  ;;  %p1143_p0 = scmp.ge.s32.totalorder %s1142_s7, %s2096_s25  ;;  %p1133_p1 = scmp.ge.s32.totalorder %s1134_s6, %s2096_s25 }
 0x1ee   : >> { %s2132_s7 = smov (%p1143_p0, %s1142_s7), 0  ;;  %1136 = sbr.rel (!%p1133_p1) target bundleno = 491 (0x1eb), region = 133 }
 0x1ef   : >> { %s1272_s12 = sshll.u32 %s2132_s7, 3  ;;  %s1482_s4 = smov %s2132_s7  }
 0x1f0   : >> { %s1147_s30 = scalar_lea.vmem %s1128_s27, %s1272_s12 [#allocation2]   ;;  %s1148_s29 = scalar_lea.vmem %s1130_s28, %s1272_s12  }
 0x1f3 PF: > { %p10_p2 = scmp.ge.s32.totalorder %s1524_s16, 4   ;;  %s2124_s12 = smov %s1451_s13 }
 0x1f4   : > { %s2125_s13 = smov %s1532_s19  ;;  %s2126_s14 = smov %s1524_s16 }
 0x1f5   :  { %12 = sbr.rel (!%p10_p2) target bundleno = 2 (0x2), region = 144 }

// kernel: qnetwork_forward.5
= control target key start
LH: loop header
LB: loop body
LE: loop exit
PB: predicated region body
PF: predicated region fallthrough
CT: control target
= control target key end

     0   :  { %vm507_vm0 = vcmask 523264   ;;  %vm528_vm1 = vcmask 517120   ;;  %s1108_s1 = inlined_call_operand.vmem [shape: f32[512,64], index: 1, kind: input, shape index: {}]   ;;  %s1109_s0 = inlined_call_operand.vmem [shape: f32[162,512], index: 0, kind: input, shape index: {}]   ;;  %s1110_s2 = inlined_call_operand.vmem [shape: f32[1,64], index: 2, kind: input, shape index: {}]   ;;  %s1111_s3 = inlined_call_operand.vmem [shape: f32[162,64], index: 3, kind: output, shape index: {}]  }
   0x1   :  { %v145_v0 = vld [vmem:[%s1108_s1 + $0x178] sm:$0xff]  ;;  %v144_v2 = vld [vmem:[%s1108_s1 + $0x170] sm:$0xff]  ;;  %v143_v6 = vld [vmem:[%s1108_s1 + $0x168] sm:$0xff] }
   0x2   :  { %v113_v1 = vld [vmem:[%s1108_s1 + $0x78] sm:$0xff]  ;;  %326 = vmatpush.msra.mxu2 %v145_v0  ;;  %v112_v4 = vld [vmem:[%s1108_s1 + $0x70] sm:$0xff]  ;;  %v111_v8 = vld [vmem:[%s1108_s1 + $0x68] sm:$0xff] }
   0x3   :  { %166 = vmatpush.msra.mxu0 %v113_v1  ;;  %v161_v3 = vld [vmem:[%s1108_s1 + $0x1f8] sm:$0xff]  ;;  %v160_v7 = vld [vmem:[%s1108_s1 + $0x1f0] sm:$0xff]  ;;  %v159_v10 = vld [vmem:[%s1108_s1 + $0x1e8] sm:$0xff] }
   0x4   :  { %v129_v5 = vld [vmem:[%s1108_s1 + $0xf8] sm:$0xff]  ;;  %406 = vmatpush.msra.mxu3 %v161_v3  ;;  %327 = vmatpush.msra.mxu2 %v144_v2  ;;  %v128_v9 = vld [vmem:[%s1108_s1 + $0xf0] sm:$0xff]  ;;  %v142_v11 = vld [vmem:[%s1108_s1 + $0x160] sm:$0xff] }
   0x5   :  { %246 = vmatpush.msra.mxu1 %v129_v5  ;;  %167 = vmatpush.msra.mxu0 %v112_v4  ;;  %v110_v12 = vld [vmem:[%s1108_s1 + $0x60] sm:$0xff]  ;;  %v127_v13 = vld [vmem:[%s1108_s1 + $0xe8] sm:$0xff]  ;;  %v141_v16 = vld [vmem:[%s1108_s1 + $0x158] sm:$0xff] }
   0x6   :  { %407 = vmatpush.msra.mxu3 %v160_v7  ;;  %328 = vmatpush.msra.mxu2 %v143_v6  ;;  %v158_v14 = vld [vmem:[%s1108_s1 + $0x1e0] sm:$0xff]  ;;  %v109_v17 = vld [vmem:[%s1108_s1 + $0x58] sm:$0xff]  ;;  %v140_v20 = vld [vmem:[%s1108_s1 + $0x150] sm:$0xff] }
   0x7   :  { %247 = vmatpush.msra.mxu1 %v128_v9  ;;  %168 = vmatpush.msra.mxu0 %v111_v8  ;;  %v126_v15 = vld [vmem:[%s1108_s1 + $0xe0] sm:$0xff]  ;;  %v157_v18 = vld [vmem:[%s1108_s1 + $0x1d8] sm:$0xff]  ;;  %v108_v21 = vld [vmem:[%s1108_s1 + $0x50] sm:$0xff] }
   0x8   :  { %408 = vmatpush.msra.mxu3 %v159_v10  ;;  %329 = vmatpush.msra.mxu2 %v142_v11  ;;  %v125_v19 = vld [vmem:[%s1108_s1 + $0xd8] sm:$0xff]  ;;  %v156_v22 = vld [vmem:[%s1108_s1 + $0x1d0] sm:$0xff]  ;;  %v139_v24 = vld [vmem:[%s1108_s1 + $0x148] sm:$0xff] }
   0x9   :  { %248 = vmatpush.msra.mxu1 %v127_v13  ;;  %169 = vmatpush.msra.mxu0 %v110_v12  ;;  %v124_v23 = vld [vmem:[%s1108_s1 + $0xd0] sm:$0xff]  ;;  %v107_v25 = vld [vmem:[%s1108_s1 + $0x48] sm:$0xff]  ;;  %v138_v28 = vld [vmem:[%s1108_s1 + $0x140] sm:$0xff] }
   0xa   :  { %409 = vmatpush.msra.mxu3 %v158_v14  ;;  %330 = vmatpush.msra.mxu2 %v141_v16  ;;  %v155_v26 = vld [vmem:[%s1108_s1 + $0x1c8] sm:$0xff]  ;;  %v106_v29 = vld [vmem:[%s1108_s1 + $0x40] sm:$0xff]  ;;  %v137_v32 = vld [vmem:[%s1108_s1 + $0x138] sm:$0xff] }
   0xb   :  { %249 = vmatpush.msra.mxu1 %v126_v15  ;;  %170 = vmatpush.msra.mxu0 %v109_v17  ;;  %v123_v27 = vld [vmem:[%s1108_s1 + $0xc8] sm:$0xff]  ;;  %v154_v30 = vld [vmem:[%s1108_s1 + $0x1c0] sm:$0xff]  ;;  %v105_v33 = vld [vmem:[%s1108_s1 + $0x38] sm:$0xff] }
   0xc   :  { %410 = vmatpush.msra.mxu3 %v157_v18  ;;  %331 = vmatpush.msra.mxu2 %v140_v20  ;;  %v122_v31 = vld [vmem:[%s1108_s1 + $0xc0] sm:$0xff]  ;;  %v153_v34 = vld [vmem:[%s1108_s1 + $0x1b8] sm:$0xff]  ;;  %v136_v36 = vld [vmem:[%s1108_s1 + $0x130] sm:$0xff] }
   0xd   :  { %250 = vmatpush.msra.mxu1 %v125_v19  ;;  %171 = vmatpush.msra.mxu0 %v108_v21  ;;  %v121_v35 = vld [vmem:[%s1108_s1 + $0xb8] sm:$0xff]  ;;  %v104_v37 = vld [vmem:[%s1108_s1 + $0x30] sm:$0xff]  ;;  %v135_v40 = vld [vmem:[%s1108_s1 + $0x128] sm:$0xff] }
   0xe   :  { %411 = vmatpush.msra.mxu3 %v156_v22  ;;  %332 = vmatpush.msra.mxu2 %v139_v24  ;;  %v152_v38 = vld [vmem:[%s1108_s1 + $0x1b0] sm:$0xff]  ;;  %v103_v41 = vld [vmem:[%s1108_s1 + $0x28] sm:$0xff]  ;;  %v134_v44 = vld [vmem:[%s1108_s1 + $0x120] sm:$0xff] }
   0xf   :  { %251 = vmatpush.msra.mxu1 %v124_v23  ;;  %172 = vmatpush.msra.mxu0 %v107_v25  ;;  %v120_v39 = vld [vmem:[%s1108_s1 + $0xb0] sm:$0xff]  ;;  %v151_v42 = vld [vmem:[%s1108_s1 + $0x1a8] sm:$0xff]  ;;  %v102_v45 = vld [vmem:[%s1108_s1 + $0x20] sm:$0xff] }
  0x10   :  { %412 = vmatpush.msra.mxu3 %v155_v26  ;;  %333 = vmatpush.msra.mxu2 %v138_v28  ;;  %v119_v43 = vld [vmem:[%s1108_s1 + $0xa8] sm:$0xff]  ;;  %v150_v46 = vld [vmem:[%s1108_s1 + $0x1a0] sm:$0xff]  ;;  %v133_v48 = vld [vmem:[%s1108_s1 + $0x118] sm:$0xff] }
  0x11   :  { %252 = vmatpush.msra.mxu1 %v123_v27  ;;  %173 = vmatpush.msra.mxu0 %v106_v29  ;;  %v118_v47 = vld [vmem:[%s1108_s1 + $0xa0] sm:$0xff]  ;;  %v101_v49 = vld [vmem:[%s1108_s1 + $0x18] sm:$0xff]  ;;  %v132_v52 = vld [vmem:[%s1108_s1 + $0x110] sm:$0xff] }
  0x12   :  { %413 = vmatpush.msra.mxu3 %v154_v30  ;;  %334 = vmatpush.msra.mxu2 %v137_v32  ;;  %v149_v50 = vld [vmem:[%s1108_s1 + $0x198] sm:$0xff]  ;;  %v100_v53 = vld [vmem:[%s1108_s1 + $0x10] sm:$0xff]  ;;  %v131_v56 = vld [vmem:[%s1108_s1 + $0x108] sm:$0xff] }
  0x13   :  { %253 = vmatpush.msra.mxu1 %v122_v31  ;;  %174 = vmatpush.msra.mxu0 %v105_v33  ;;  %v117_v51 = vld [vmem:[%s1108_s1 + $0x98] sm:$0xff]  ;;  %v148_v54 = vld [vmem:[%s1108_s1 + $0x190] sm:$0xff]  ;;  %v99_v57 = vld [vmem:[%s1108_s1 + $0x8] sm:$0xff] }
  0x14   :  { %414 = vmatpush.msra.mxu3 %v153_v34  ;;  %335 = vmatpush.msra.mxu2 %v136_v36  ;;  %v116_v55 = vld [vmem:[%s1108_s1 + $0x90] sm:$0xff]  ;;  %v147_v58 = vld [vmem:[%s1108_s1 + $0x188] sm:$0xff]  ;;  %v130_v60 = vld [vmem:[%s1108_s1 + $0x100] sm:$0xff] }
  0x15   :  { %254 = vmatpush.msra.mxu1 %v121_v35  ;;  %175 = vmatpush.msra.mxu0 %v104_v37  ;;  %v115_v59 = vld [vmem:[%s1108_s1 + $0x88] sm:$0xff]  ;;  %v98_v61 = vld [vmem:[%s1108_s1] sm:$0xff]  ;;  %v16_v62 = vld [vmem:[%s1109_s0 + $0x10] sm:$0xff] }
  0x16   :  { %415 = vmatpush.msra.mxu3 %v152_v38  ;;  %336 = vmatpush.msra.mxu2 %v135_v40  ;;  %v146_v63 = vld [vmem:[%s1108_s1 + $0x180] sm:$0xff]  ;;  %v17_v1 = vld [vmem:[%s1109_s0 + $0x18] sm:$0xff]  ;;  %v15_v3 = vld [vmem:[%s1109_s0 + $0x8] sm:$0xff] }
  0x17   :  { %255 = vmatpush.msra.mxu1 %v120_v39  ;;  %176 = vmatpush.msra.mxu0 %v103_v41  ;;  %v14_v0 = vld [vmem:[%s1109_s0] sm:$0xff]  ;;  %v20_v4 = vld [vmem:[%s1109_s0 + $0x30] sm:$0xff]  ;;  %v21_v6 = vld [vmem:[%s1109_s0 + $0x38] sm:$0xff] }
  0x18   :  { %416 = vmatpush.msra.mxu3 %v151_v42  ;;  %337 = vmatpush.msra.mxu2 %v134_v44  ;;  %v114_v2 = vld [vmem:[%s1108_s1 + $0x80] sm:$0xff]  ;;  %v19_v7 = vld [vmem:[%s1109_s0 + $0x28] sm:$0xff]  ;;  %v24_v8 = vld [vmem:[%s1109_s0 + $0x50] sm:$0xff] }
  0x19   :  { %256 = vmatpush.msra.mxu1 %v119_v43  ;;  %177 = vmatpush.msra.mxu0 %v102_v45  ;;  %v18_v5 = vld [vmem:[%s1109_s0 + $0x20] sm:$0xff]  ;;  %v25_v10 = vld [vmem:[%s1109_s0 + $0x58] sm:$0xff]  ;;  %v23_v11 = vld [vmem:[%s1109_s0 + $0x48] sm:$0xff] }
  0x1a   :  { %417 = vmatpush.msra.mxu3 %v150_v46  ;;  %338 = vmatpush.msra.mxu2 %v133_v48  ;;  %v22_v9 = vld [vmem:[%s1109_s0 + $0x40] sm:$0xff]  ;;  %v28_v12 = vld [vmem:[%s1109_s0 + $0x70] sm:$0xff]  ;;  %v29_v14 = vld [vmem:[%s1109_s0 + $0x78] sm:$0xff] }
  0x1b   :  { %257 = vmatpush.msra.mxu1 %v118_v47  ;;  %178 = vmatpush.msra.mxu0 %v101_v49  ;;  %v26_v13 = vld [vmem:[%s1109_s0 + $0x60] sm:$0xff]  ;;  %v27_v15 = vld [vmem:[%s1109_s0 + $0x68] sm:$0xff]  ;;  %v32_v16 = vld [vmem:[%s1109_s0 + $0x90] sm:$0xff] }
  0x1c   :  { %418 = vmatpush.msra.mxu3 %v149_v50  ;;  %339 = vmatpush.msra.mxu2 %v132_v52  ;;  %v30_v17 = vld [vmem:[%s1109_s0 + $0x80] sm:$0xff]  ;;  %v33_v18 = vld [vmem:[%s1109_s0 + $0x98] sm:$0xff]  ;;  %v31_v19 = vld [vmem:[%s1109_s0 + $0x88] sm:$0xff] }
  0x1d   :  { %258 = vmatpush.msra.mxu1 %v117_v51  ;;  %179 = vmatpush.msra.mxu0 %v100_v53  ;;  %v36_v20 = vld [vmem:[%s1109_s0 + $0xb0] sm:$0xff]  ;;  %v34_v21 = vld [vmem:[%s1109_s0 + $0xa0] sm:$0xff]  ;;  %v37_v22 = vld [vmem:[%s1109_s0 + $0xb8] sm:$0xff] }
  0x1e   :  { %419 = vmatpush.msra.mxu3 %v148_v54  ;;  %340 = vmatpush.msra.mxu2 %v131_v56  ;;  %v35_v23 = vld [vmem:[%s1109_s0 + $0xa8] sm:$0xff]  ;;  %v40_v24 = vld [vmem:[%s1109_s0 + $0xd0] sm:$0xff]  ;;  %v38_v25 = vld [vmem:[%s1109_s0 + $0xc0] sm:$0xff] }
  0x1f   :  { %259 = vmatpush.msra.mxu1 %v116_v55  ;;  %180 = vmatpush.msra.mxu0 %v99_v57  ;;  %v41_v26 = vld [vmem:[%s1109_s0 + $0xd8] sm:$0xff]  ;;  %v39_v27 = vld [vmem:[%s1109_s0 + $0xc8] sm:$0xff]  ;;  %v44_v28 = vld [vmem:[%s1109_s0 + $0xf0] sm:$0xff] }
  0x20   :  { %420 = vmatpush.msra.mxu3 %v147_v58  ;;  %341 = vmatpush.msra.mxu2 %v130_v60  ;;  %v42_v29 = vld [vmem:[%s1109_s0 + $0xe0] sm:$0xff]  ;;  %v45_v30 = vld [vmem:[%s1109_s0 + $0xf8] sm:$0xff]  ;;  %v43_v31 = vld [vmem:[%s1109_s0 + $0xe8] sm:$0xff] }
  0x21   :  { %260 = vmatpush.msra.mxu1 %v115_v59  ;;  %181 = vmatpush.msra.mxu0 %v98_v61  ;;  %v48_v32 = vld [vmem:[%s1109_s0 + $0x110] sm:$0xff]  ;;  %v46_v33 = vld [vmem:[%s1109_s0 + $0x100] sm:$0xff]  ;;  %v49_v34 = vld [vmem:[%s1109_s0 + $0x118] sm:$0xff] }
  0x22   :  { %342 = vmatmul.f32.vlgmr.msra.gmra.mxu2 %v16_v62  ;;  %421 = vmatpush.msra.mxu3 %v146_v63  ;;  %v47_v35 = vld [vmem:[%s1109_s0 + $0x108] sm:$0xff]  ;;  %v52_v36 = vld [vmem:[%s1109_s0 + $0x130] sm:$0xff]  ;;  %v50_v37 = vld [vmem:[%s1109_s0 + $0x120] sm:$0xff] }
  0x23   :  { %182 = vmatmul.f32.vlgmr.msra.gmra.mxu0 %v14_v0  ;;  %422 = vmatmul.f32.vlgmr.msra.gmra.mxu3 %v17_v1  ;;  %v53_v38 = vld [vmem:[%s1109_s0 + $0x138] sm:$0xff]  ;;  %v51_v39 = vld [vmem:[%s1109_s0 + $0x128] sm:$0xff]  ;;  %v56_v40 = vld [vmem:[%s1109_s0 + $0x150] sm:$0xff] }
  0x24   :  { %261 = vmatpush.msra.mxu1 %v114_v2  ;;  %v54_v41 = vld [vmem:[%s1109_s0 + $0x140] sm:$0xff]  ;;  %v57_v42 = vld [vmem:[%s1109_s0 + $0x158] sm:$0xff]  ;;  %v55_v43 = vld [vmem:[%s1109_s0 + $0x148] sm:$0xff] }
  0x25   :  { %262 = vmatmul.f32.vlgmr.msra.gmra.mxu1 %v15_v3  ;;  %v60_v44 = vld [vmem:[%s1109_s0 + $0x170] sm:$0xff]  ;;  %v58_v45 = vld [vmem:[%s1109_s0 + $0x160] sm:$0xff]  ;;  %v61_v46 = vld [vmem:[%s1109_s0 + $0x178] sm:$0xff] }
  0x26   :  { %v59_v47 = vld [vmem:[%s1109_s0 + $0x168] sm:$0xff]  ;;  %v64_v48 = vld [vmem:[%s1109_s0 + $0x190] sm:$0xff]  ;;  %v62_v49 = vld [vmem:[%s1109_s0 + $0x180] sm:$0xff] }
  0x27   :  { %v65_v50 = vld [vmem:[%s1109_s0 + $0x198] sm:$0xff]  ;;  %v63_v51 = vld [vmem:[%s1109_s0 + $0x188] sm:$0xff]  ;;  %v68_v52 = vld [vmem:[%s1109_s0 + $0x1b0] sm:$0xff] }
  0x28   :  { %v66_v53 = vld [vmem:[%s1109_s0 + $0x1a0] sm:$0xff]  ;;  %v69_v54 = vld [vmem:[%s1109_s0 + $0x1b8] sm:$0xff]  ;;  %v67_v55 = vld [vmem:[%s1109_s0 + $0x1a8] sm:$0xff] }
  0x29   :  { %v72_v56 = vld [vmem:[%s1109_s0 + $0x1d0] sm:$0xff]  ;;  %v70_v57 = vld [vmem:[%s1109_s0 + $0x1c0] sm:$0xff]  ;;  %v73_v58 = vld [vmem:[%s1109_s0 + $0x1d8] sm:$0xff] }
  0x2a   :  { %345 = vmatmul.f32.gmra.mxu2 %v20_v4  ;;  %v71_v59 = vld [vmem:[%s1109_s0 + $0x1c8] sm:$0xff]  ;;  %v76_v60 = vld [vmem:[%s1109_s0 + $0x1f0] sm:$0xff]  ;;  %v74_v61 = vld [vmem:[%s1109_s0 + $0x1e0] sm:$0xff] }
  0x2b   :  { %185 = vmatmul.f32.gmra.mxu0 %v18_v5  ;;  %425 = vmatmul.f32.gmra.mxu3 %v21_v6  ;;  %v77_v62 = vld [vmem:[%s1109_s0 + $0x1f8] sm:$0xff]  ;;  %v75_v63 = vld [vmem:[%s1109_s0 + $0x1e8] sm:$0xff]  ;;  %v942_v0 = vld [vmem:[%s1110_s2] ss:$0 sm:$0xff] }
  0x2c   :  { %v80_v1 = vld [vmem:[%s1109_s0 + $0x210] sm:$0xff]  ;;  %v78_v3 = vld [vmem:[%s1109_s0 + $0x200] sm:$0xff]  ;;  %v81_v4 = vld [vmem:[%s1109_s0 + $0x218] sm:$0xff] }
  0x2d   :  { %265 = vmatmul.f32.gmra.mxu1 %v19_v7  ;;  %v79_v7 = vld [vmem:[%s1109_s0 + $0x208] sm:$0xff] }
  0x32   :  { %348 = vmatmul.f32.gmra.mxu2 %v24_v8 }
  0x33   :  { %188 = vmatmul.f32.gmra.mxu0 %v22_v9  ;;  %428 = vmatmul.f32.gmra.mxu3 %v25_v10 }
  0x35   :  { %268 = vmatmul.f32.gmra.mxu1 %v23_v11 }
  0x3a   :  { %351 = vmatmul.f32.gmra.mxu2 %v28_v12  ;;  %v84_v12 = vld [vmem:[%s1109_s0 + $0x230] sm:$0xff] }
  0x3b   :  { %191 = vmatmul.f32.gmra.mxu0 %v26_v13  ;;  %431 = vmatmul.f32.gmra.mxu3 %v29_v14 }
  0x3d   :  { %271 = vmatmul.f32.gmra.mxu1 %v27_v15  ;;  %v82_v15 = vld [vmem:[%s1109_s0 + $0x220] sm:$0xff] }
  0x42   :  { %354 = vmatmul.f32.gmra.mxu2 %v32_v16  ;;  %v85_v16 = vld [vmem:[%s1109_s0 + $0x238] sm:$0xff] }
  0x43   :  { %194 = vmatmul.f32.gmra.mxu0 %v30_v17  ;;  %434 = vmatmul.f32.gmra.mxu3 %v33_v18 }
  0x45   :  { %274 = vmatmul.f32.gmra.mxu1 %v31_v19 }
  0x4a   :  { %357 = vmatmul.f32.gmra.mxu2 %v36_v20  ;;  %v83_v20 = vld [vmem:[%s1109_s0 + $0x228] sm:$0xff] }
  0x4b   :  { %197 = vmatmul.f32.gmra.mxu0 %v34_v21  ;;  %437 = vmatmul.f32.gmra.mxu3 %v37_v22 }
  0x4d   :  { %277 = vmatmul.f32.gmra.mxu1 %v35_v23 }
  0x52   :  { %360 = vmatmul.f32.gmra.mxu2 %v40_v24 }
  0x53   :  { %200 = vmatmul.f32.gmra.mxu0 %v38_v25  ;;  %440 = vmatmul.f32.gmra.mxu3 %v41_v26  ;;  %v88_v25 = vld [vmem:[%s1109_s0 + $0x250] sm:$0xff] }
  0x55   :  { %280 = vmatmul.f32.gmra.mxu1 %v39_v27 }
  0x5a   :  { %363 = vmatmul.f32.gmra.mxu2 %v44_v28  ;;  %v86_v28 = vld [vmem:[%s1109_s0 + $0x240] sm:$0xff] }
  0x5b   :  { %203 = vmatmul.f32.gmra.mxu0 %v42_v29  ;;  %443 = vmatmul.f32.gmra.mxu3 %v45_v30  ;;  %v89_v29 = vld [vmem:[%s1109_s0 + $0x258] sm:$0xff] }
  0x5d   :  { %283 = vmatmul.f32.gmra.mxu1 %v43_v31 }
  0x62   :  { %366 = vmatmul.f32.gmra.mxu2 %v48_v32 }
  0x63   :  { %206 = vmatmul.f32.gmra.mxu0 %v46_v33  ;;  %446 = vmatmul.f32.gmra.mxu3 %v49_v34  ;;  %v87_v33 = vld [vmem:[%s1109_s0 + $0x248] sm:$0xff] }
  0x65   :  { %286 = vmatmul.f32.gmra.mxu1 %v47_v35 }
  0x6a   :  { %369 = vmatmul.f32.gmra.mxu2 %v52_v36 }
  0x6b   :  { %209 = vmatmul.f32.gmra.mxu0 %v50_v37  ;;  %449 = vmatmul.f32.gmra.mxu3 %v53_v38  ;;  %v92_v38 = vld [vmem:[%s1109_s0 + $0x270] sm:$0xff] }
  0x6d   :  { %289 = vmatmul.f32.gmra.mxu1 %v51_v39 }
  0x72   :  { %372 = vmatmul.f32.gmra.mxu2 %v56_v40 }
  0x73   :  { %212 = vmatmul.f32.gmra.mxu0 %v54_v41  ;;  %452 = vmatmul.f32.gmra.mxu3 %v57_v42  ;;  %v90_v41 = vld [vmem:[%s1109_s0 + $0x260] sm:$0xff]  ;;  %v93_v42 = vld [vmem:[%s1109_s0 + $0x278] sm:$0xff] }
  0x75   :  { %292 = vmatmul.f32.gmra.mxu1 %v55_v43 }
  0x7a   :  { %375 = vmatmul.f32.gmra.mxu2 %v60_v44 }
  0x7b   :  { %215 = vmatmul.f32.gmra.mxu0 %v58_v45  ;;  %455 = vmatmul.f32.gmra.mxu3 %v61_v46  ;;  %v91_v46 = vld [vmem:[%s1109_s0 + $0x268] sm:$0xff] }
  0x7d   :  { %295 = vmatmul.f32.gmra.mxu1 %v59_v47 }
  0x82   :  { %378 = vmatmul.f32.gmra.mxu2 %v64_v48 }
  0x83   :  { %218 = vmatmul.f32.gmra.mxu0 %v62_v49  ;;  %458 = vmatmul.f32.gmra.mxu3 %v65_v50 }
  0x85   :  { %298 = vmatmul.f32.gmra.mxu1 %v63_v51  ;;  %v96_v51 = vld [vmem:[%s1109_s0 + $0x290] sm:$0x3] }
  0x8a   :  { %381 = vmatmul.f32.gmra.mxu2 %v68_v52 }
  0x8b   :  { %221 = vmatmul.f32.gmra.mxu0 %v66_v53  ;;  %461 = vmatmul.f32.gmra.mxu3 %v69_v54  ;;  %v94_v54 = vld [vmem:[%s1109_s0 + $0x280] sm:$0x3] }
  0x8d   :  { %301 = vmatmul.f32.gmra.mxu1 %v67_v55  ;;  %v97_v55 = vld [vmem:[%s1109_s0 + $0x298] sm:$0x3] }
  0x92   :  { %384 = vmatmul.f32.gmra.mxu2 %v72_v56 }
  0x93   :  { %224 = vmatmul.f32.gmra.mxu0 %v70_v57  ;;  %464 = vmatmul.f32.gmra.mxu3 %v73_v58 }
  0x95   :  { %304 = vmatmul.f32.gmra.mxu1 %v71_v59  ;;  %v95_v59 = vld [vmem:[%s1109_s0 + $0x288] sm:$0x3] }
  0x9a   :  { %387 = vmatmul.f32.gmra.mxu2 %v76_v60 }
  0x9b   :  { %227 = vmatmul.f32.gmra.mxu0 %v74_v61  ;;  %467 = vmatmul.f32.gmra.mxu3 %v77_v62 }
  0x9d   :  { %307 = vmatmul.f32.gmra.mxu1 %v75_v63 }
  0xa0   :  { %v183_v2 = vpop.f32.mrf.mxu0 }
  0xa1   :  { %v184_v5 = vadd.f32 %v942_v0, %v183_v2 }
  0xa2   :  { %390 = vmatmul.f32.gmra.mxu2 %v80_v1  ;;  %v263_v6 = vpop.f32.mrf.mxu1 }
  0xa3   :  { %v264_v8 = vadd.f32 %v263_v6, %v184_v5  ;;  %230 = vmatmul.f32.gmra.mxu0 %v78_v3  ;;  %470 = vmatmul.f32.gmra.mxu3 %v81_v4 }
  0xa5   :  { %v343_v9 = vpop.f32.mrf.mxu2  ;;  %310 = vmatmul.f32.gmra.mxu1 %v79_v7 }
  0xa6   :  { %v344_v10 = vadd.f32 %v343_v9, %v264_v8  ;;  %v423_v11 = vpop.f32.mrf.mxu3 }
  0xa8   :  { %v424_v13 = vadd.f32 %v423_v11, %v344_v10  ;;  %v186_v14 = vpop.f32.mrf.mxu0 }
  0xa9   :  { %v187_v17 = vadd.f32 %v942_v0, %v186_v14 }
  0xaa   :  { %v486_v18 = vmax.f32 %v424_v13, 0.0  ;;  %393 = vmatmul.f32.gmra.mxu2 %v84_v12  ;;  %v266_v19 = vpop.f32.mrf.mxu1 }
  0xab   :  { %v267_v21 = vadd.f32 %v266_v19, %v187_v17  ;;  %233 = vmatmul.f32.gmra.mxu0 %v82_v15  ;;  %473 = vmatmul.f32.gmra.mxu3 %v85_v16 }
  0xac   :  { %508 = vst.msk [vmem:[%s1111_s3] sm:$0xff] %vm507_vm0, %v486_v18 }
  0xad   :  { %v346_v22 = vpop.f32.mrf.mxu2  ;;  %313 = vmatmul.f32.gmra.mxu1 %v83_v20 }
  0xae   :  { %v347_v23 = vadd.f32 %v346_v22, %v267_v21  ;;  %v426_v24 = vpop.f32.mrf.mxu3 }
  0xb0   :  { %v427_v26 = vadd.f32 %v426_v24, %v347_v23  ;;  %v189_v27 = vpop.f32.mrf.mxu0 }
  0xb1   :  { %v190_v30 = vadd.f32 %v942_v0, %v189_v27 }
  0xb2   :  { %v487_v31 = vmax.f32 %v427_v26, 0.0  ;;  %396 = vmatmul.f32.gmra.mxu2 %v88_v25  ;;  %v269_v32 = vpop.f32.mrf.mxu1 }
  0xb3   :  { %v270_v34 = vadd.f32 %v269_v32, %v190_v30  ;;  %236 = vmatmul.f32.gmra.mxu0 %v86_v28  ;;  %476 = vmatmul.f32.gmra.mxu3 %v89_v29 }
  0xb4   :  { %509 = vst.msk [vmem:[%s1111_s3 + $0x8] sm:$0xff] %vm507_vm0, %v487_v31 }
  0xb5   :  { %v349_v35 = vpop.f32.mrf.mxu2  ;;  %316 = vmatmul.f32.gmra.mxu1 %v87_v33 }
  0xb6   :  { %v350_v36 = vadd.f32 %v349_v35, %v270_v34  ;;  %v429_v37 = vpop.f32.mrf.mxu3 }
  0xb8   :  { %v430_v39 = vadd.f32 %v429_v37, %v350_v36  ;;  %v192_v40 = vpop.f32.mrf.mxu0 }
  0xb9   :  { %v193_v43 = vadd.f32 %v942_v0, %v192_v40 }
  0xba   :  { %v488_v44 = vmax.f32 %v430_v39, 0.0  ;;  %399 = vmatmul.f32.gmra.mxu2 %v92_v38  ;;  %v272_v45 = vpop.f32.mrf.mxu1 }
  0xbb   :  { %v273_v47 = vadd.f32 %v272_v45, %v193_v43  ;;  %239 = vmatmul.f32.gmra.mxu0 %v90_v41  ;;  %479 = vmatmul.f32.gmra.mxu3 %v93_v42 }
  0xbc   :  { %510 = vst.msk [vmem:[%s1111_s3 + $0x10] sm:$0xff] %vm507_vm0, %v488_v44 }
  0xbd   :  { %v352_v48 = vpop.f32.mrf.mxu2  ;;  %319 = vmatmul.f32.gmra.mxu1 %v91_v46 }
  0xbe   :  { %v353_v49 = vadd.f32 %v352_v48, %v273_v47  ;;  %v432_v50 = vpop.f32.mrf.mxu3 }
  0xc0   :  { %v433_v52 = vadd.f32 %v432_v50, %v353_v49  ;;  %v195_v53 = vpop.f32.mrf.mxu0 }
  0xc1   :  { %v196_v56 = vadd.f32 %v942_v0, %v195_v53 }
  0xc2   :  { %v489_v57 = vmax.f32 %v433_v52, 0.0  ;;  %402 = vmatmul.f32.gmra.mxu2 %v96_v51  ;;  %v275_v58 = vpop.f32.mrf.mxu1 }
  0xc3   :  { %v276_v60 = vadd.f32 %v275_v58, %v196_v56  ;;  %242 = vmatmul.f32.gmra.mxu0 %v94_v54  ;;  %482 = vmatmul.f32.gmra.mxu3 %v97_v55 }
  0xc4   :  { %511 = vst.msk [vmem:[%s1111_s3 + $0x18] sm:$0xff] %vm507_vm0, %v489_v57 }
  0xc5   :  { %v355_v61 = vpop.f32.mrf.mxu2  ;;  %322 = vmatmul.f32.gmra.mxu1 %v95_v59 }
  0xc6   :  { %v356_v62 = vadd.f32 %v355_v61, %v276_v60  ;;  %v435_v63 = vpop.f32.mrf.mxu3 }
  0xc8   :  { %v436_v1 = vadd.f32 %v435_v63, %v356_v62  ;;  %v198_v2 = vpop.f32.mrf.mxu0 }
  0xc9   :  { %v199_v3 = vadd.f32 %v942_v0, %v198_v2 }
  0xca   :  { %v490_v4 = vmax.f32 %v436_v1, 0.0  ;;  %v278_v5 = vpop.f32.mrf.mxu1 }
  0xcb   :  { %v279_v6 = vadd.f32 %v278_v5, %v199_v3 }
  0xcc   :  { %512 = vst.msk [vmem:[%s1111_s3 + $0x20] sm:$0xff] %vm507_vm0, %v490_v4 }
  0xcd   :  { %v358_v7 = vpop.f32.mrf.mxu2 }
  0xce   :  { %v359_v8 = vadd.f32 %v358_v7, %v279_v6  ;;  %v438_v9 = vpop.f32.mrf.mxu3 }
  0xd0   :  { %v439_v10 = vadd.f32 %v438_v9, %v359_v8  ;;  %v201_v11 = vpop.f32.mrf.mxu0 }
  0xd1   :  { %v202_v12 = vadd.f32 %v942_v0, %v201_v11 }
  0xd2   :  { %v491_v13 = vmax.f32 %v439_v10, 0.0  ;;  %v281_v14 = vpop.f32.mrf.mxu1 }
  0xd3   :  { %v282_v15 = vadd.f32 %v281_v14, %v202_v12 }
  0xd4   :  { %513 = vst.msk [vmem:[%s1111_s3 + $0x28] sm:$0xff] %vm507_vm0, %v491_v13 }
  0xd5   :  { %v361_v16 = vpop.f32.mrf.mxu2 }
  0xd6   :  { %v362_v17 = vadd.f32 %v361_v16, %v282_v15  ;;  %v441_v18 = vpop.f32.mrf.mxu3 }
  0xd8   :  { %v442_v19 = vadd.f32 %v441_v18, %v362_v17  ;;  %v204_v20 = vpop.f32.mrf.mxu0 }
  0xd9   :  { %v205_v21 = vadd.f32 %v942_v0, %v204_v20 }
  0xda   :  { %v492_v22 = vmax.f32 %v442_v19, 0.0  ;;  %v284_v23 = vpop.f32.mrf.mxu1 }
  0xdb   :  { %v285_v24 = vadd.f32 %v284_v23, %v205_v21 }
  0xdc   :  { %514 = vst.msk [vmem:[%s1111_s3 + $0x30] sm:$0xff] %vm507_vm0, %v492_v22 }
  0xdd   :  { %v364_v25 = vpop.f32.mrf.mxu2 }
  0xde   :  { %v365_v26 = vadd.f32 %v364_v25, %v285_v24  ;;  %v444_v27 = vpop.f32.mrf.mxu3 }
  0xe0   :  { %v445_v28 = vadd.f32 %v444_v27, %v365_v26  ;;  %v207_v29 = vpop.f32.mrf.mxu0 }
  0xe1   :  { %v208_v30 = vadd.f32 %v942_v0, %v207_v29 }
  0xe2   :  { %v493_v31 = vmax.f32 %v445_v28, 0.0  ;;  %v287_v32 = vpop.f32.mrf.mxu1 }
  0xe3   :  { %v288_v33 = vadd.f32 %v287_v32, %v208_v30 }
  0xe4   :  { %515 = vst.msk [vmem:[%s1111_s3 + $0x38] sm:$0xff] %vm507_vm0, %v493_v31 }
  0xe5   :  { %v367_v34 = vpop.f32.mrf.mxu2 }
  0xe6   :  { %v368_v35 = vadd.f32 %v367_v34, %v288_v33  ;;  %v447_v36 = vpop.f32.mrf.mxu3 }
  0xe8   :  { %v448_v37 = vadd.f32 %v447_v36, %v368_v35  ;;  %v210_v38 = vpop.f32.mrf.mxu0 }
  0xe9   :  { %v211_v39 = vadd.f32 %v942_v0, %v210_v38 }
  0xea   :  { %v494_v40 = vmax.f32 %v448_v37, 0.0  ;;  %v290_v41 = vpop.f32.mrf.mxu1 }
  0xeb   :  { %v291_v42 = vadd.f32 %v290_v41, %v211_v39 }
  0xec   :  { %516 = vst.msk [vmem:[%s1111_s3 + $0x40] sm:$0xff] %vm507_vm0, %v494_v40 }
  0xed   :  { %v370_v43 = vpop.f32.mrf.mxu2 }
  0xee   :  { %v371_v44 = vadd.f32 %v370_v43, %v291_v42  ;;  %v450_v45 = vpop.f32.mrf.mxu3 }
  0xf0   :  { %v451_v46 = vadd.f32 %v450_v45, %v371_v44  ;;  %v213_v47 = vpop.f32.mrf.mxu0 }
  0xf1   :  { %v214_v48 = vadd.f32 %v942_v0, %v213_v47 }
  0xf2   :  { %v495_v49 = vmax.f32 %v451_v46, 0.0  ;;  %v293_v50 = vpop.f32.mrf.mxu1 }
  0xf3   :  { %v294_v51 = vadd.f32 %v293_v50, %v214_v48 }
  0xf4   :  { %517 = vst.msk [vmem:[%s1111_s3 + $0x48] sm:$0xff] %vm507_vm0, %v495_v49 }
  0xf5   :  { %v373_v52 = vpop.f32.mrf.mxu2 }
  0xf6   :  { %v374_v53 = vadd.f32 %v373_v52, %v294_v51  ;;  %v453_v54 = vpop.f32.mrf.mxu3 }
  0xf8   :  { %v454_v55 = vadd.f32 %v453_v54, %v374_v53  ;;  %v216_v56 = vpop.f32.mrf.mxu0 }
  0xf9   :  { %v217_v57 = vadd.f32 %v942_v0, %v216_v56 }
  0xfa   :  { %v496_v58 = vmax.f32 %v454_v55, 0.0  ;;  %v296_v59 = vpop.f32.mrf.mxu1 }
  0xfb   :  { %v297_v60 = vadd.f32 %v296_v59, %v217_v57 }
  0xfc   :  { %518 = vst.msk [vmem:[%s1111_s3 + $0x50] sm:$0xff] %vm507_vm0, %v496_v58 }
  0xfd   :  { %v376_v61 = vpop.f32.mrf.mxu2 }
  0xfe   :  { %v377_v62 = vadd.f32 %v376_v61, %v297_v60  ;;  %v456_v63 = vpop.f32.mrf.mxu3 }
 0x100   :  { %v457_v1 = vadd.f32 %v456_v63, %v377_v62  ;;  %v219_v2 = vpop.f32.mrf.mxu0 }
 0x101   :  { %v220_v3 = vadd.f32 %v942_v0, %v219_v2 }
 0x102   :  { %v497_v4 = vmax.f32 %v457_v1, 0.0  ;;  %v299_v5 = vpop.f32.mrf.mxu1 }
 0x103   :  { %v300_v6 = vadd.f32 %v299_v5, %v220_v3 }
 0x104   :  { %519 = vst.msk [vmem:[%s1111_s3 + $0x58] sm:$0xff] %vm507_vm0, %v497_v4 }
 0x105   :  { %v379_v7 = vpop.f32.mrf.mxu2 }
 0x106   :  { %v380_v8 = vadd.f32 %v379_v7, %v300_v6  ;;  %v459_v9 = vpop.f32.mrf.mxu3 }
 0x108   :  { %v460_v10 = vadd.f32 %v459_v9, %v380_v8  ;;  %v222_v11 = vpop.f32.mrf.mxu0 }
 0x109   :  { %v223_v12 = vadd.f32 %v942_v0, %v222_v11 }
 0x10a   :  { %v498_v13 = vmax.f32 %v460_v10, 0.0  ;;  %v302_v14 = vpop.f32.mrf.mxu1 }
 0x10b   :  { %v303_v15 = vadd.f32 %v302_v14, %v223_v12 }
 0x10c   :  { %520 = vst.msk [vmem:[%s1111_s3 + $0x60] sm:$0xff] %vm507_vm0, %v498_v13 }
 0x10d   :  { %v382_v16 = vpop.f32.mrf.mxu2 }
 0x10e   :  { %v383_v17 = vadd.f32 %v382_v16, %v303_v15  ;;  %v462_v18 = vpop.f32.mrf.mxu3 }
 0x110   :  { %v463_v19 = vadd.f32 %v462_v18, %v383_v17  ;;  %v225_v20 = vpop.f32.mrf.mxu0 }
 0x111   :  { %v226_v21 = vadd.f32 %v942_v0, %v225_v20 }
 0x112   :  { %v499_v22 = vmax.f32 %v463_v19, 0.0  ;;  %v305_v23 = vpop.f32.mrf.mxu1 }
 0x113   :  { %v306_v24 = vadd.f32 %v305_v23, %v226_v21 }
 0x114   :  { %521 = vst.msk [vmem:[%s1111_s3 + $0x68] sm:$0xff] %vm507_vm0, %v499_v22 }
 0x115   :  { %v385_v25 = vpop.f32.mrf.mxu2 }
 0x116   :  { %v386_v26 = vadd.f32 %v385_v25, %v306_v24  ;;  %v465_v27 = vpop.f32.mrf.mxu3 }
 0x118   :  { %v466_v28 = vadd.f32 %v465_v27, %v386_v26  ;;  %v228_v29 = vpop.f32.mrf.mxu0 }
 0x119   :  { %v229_v30 = vadd.f32 %v942_v0, %v228_v29 }
 0x11a   :  { %v500_v31 = vmax.f32 %v466_v28, 0.0  ;;  %v308_v32 = vpop.f32.mrf.mxu1 }
 0x11b   :  { %v309_v33 = vadd.f32 %v308_v32, %v229_v30 }
 0x11c   :  { %522 = vst.msk [vmem:[%s1111_s3 + $0x70] sm:$0xff] %vm507_vm0, %v500_v31 }
 0x11d   :  { %v388_v34 = vpop.f32.mrf.mxu2 }
 0x11e   :  { %v389_v35 = vadd.f32 %v388_v34, %v309_v33  ;;  %v468_v36 = vpop.f32.mrf.mxu3 }
 0x120   :  { %v469_v37 = vadd.f32 %v468_v36, %v389_v35  ;;  %v231_v38 = vpop.f32.mrf.mxu0 }
 0x121   :  { %v232_v39 = vadd.f32 %v942_v0, %v231_v38 }
 0x122   :  { %v501_v40 = vmax.f32 %v469_v37, 0.0  ;;  %v311_v41 = vpop.f32.mrf.mxu1 }
 0x123   :  { %v312_v42 = vadd.f32 %v311_v41, %v232_v39 }
 0x124   :  { %523 = vst.msk [vmem:[%s1111_s3 + $0x78] sm:$0xff] %vm507_vm0, %v501_v40 }
 0x125   :  { %v391_v43 = vpop.f32.mrf.mxu2 }
 0x126   :  { %v392_v44 = vadd.f32 %v391_v43, %v312_v42  ;;  %v471_v45 = vpop.f32.mrf.mxu3 }
 0x128   :  { %v472_v46 = vadd.f32 %v471_v45, %v392_v44  ;;  %v234_v47 = vpop.f32.mrf.mxu0 }
 0x129   :  { %v235_v48 = vadd.f32 %v942_v0, %v234_v47 }
 0x12a   :  { %v502_v49 = vmax.f32 %v472_v46, 0.0  ;;  %v314_v50 = vpop.f32.mrf.mxu1 }
 0x12b   :  { %v315_v51 = vadd.f32 %v314_v50, %v235_v48 }
 0x12c   :  { %524 = vst.msk [vmem:[%s1111_s3 + $0x80] sm:$0xff] %vm507_vm0, %v502_v49 }
 0x12d   :  { %v394_v52 = vpop.f32.mrf.mxu2 }
 0x12e   :  { %v395_v53 = vadd.f32 %v394_v52, %v315_v51  ;;  %v474_v54 = vpop.f32.mrf.mxu3 }
 0x130   :  { %v475_v55 = vadd.f32 %v474_v54, %v395_v53  ;;  %v237_v56 = vpop.f32.mrf.mxu0 }
 0x131   :  { %v238_v57 = vadd.f32 %v942_v0, %v237_v56 }
 0x132   :  { %v503_v58 = vmax.f32 %v475_v55, 0.0  ;;  %v317_v59 = vpop.f32.mrf.mxu1 }
 0x133   :  { %v318_v60 = vadd.f32 %v317_v59, %v238_v57 }
 0x134   :  { %525 = vst.msk [vmem:[%s1111_s3 + $0x88] sm:$0xff] %vm507_vm0, %v503_v58 }
 0x135   :  { %v397_v61 = vpop.f32.mrf.mxu2 }
 0x136   :  { %v398_v62 = vadd.f32 %v397_v61, %v318_v60  ;;  %v477_v63 = vpop.f32.mrf.mxu3 }
 0x138   :  { %v478_v1 = vadd.f32 %v477_v63, %v398_v62  ;;  %v240_v2 = vpop.f32.mrf.mxu0 }
 0x139   :  { %v241_v3 = vadd.f32 %v942_v0, %v240_v2 }
 0x13a   :  { %v504_v4 = vmax.f32 %v478_v1, 0.0  ;;  %v320_v5 = vpop.f32.mrf.mxu1 }
 0x13b   :  { %v321_v6 = vadd.f32 %v320_v5, %v241_v3 }
 0x13c   :  { %526 = vst.msk [vmem:[%s1111_s3 + $0x90] sm:$0xff] %vm507_vm0, %v504_v4 }
 0x13d   :  { %v400_v7 = vpop.f32.mrf.mxu2 }
 0x13e   :  { %v401_v8 = vadd.f32 %v400_v7, %v321_v6  ;;  %v480_v9 = vpop.f32.mrf.mxu3 }
 0x140   :  { %v481_v10 = vadd.f32 %v480_v9, %v401_v8  ;;  %v243_v11 = vpop.f32.mrf.mxu0 }
 0x141   :  { %v244_v12 = vadd.f32 %v942_v0, %v243_v11 }
 0x142   :  { %v505_v13 = vmax.f32 %v481_v10, 0.0  ;;  %v323_v14 = vpop.f32.mrf.mxu1 }
 0x143   :  { %v324_v15 = vadd.f32 %v323_v14, %v244_v12 }
 0x144   :  { %527 = vst.msk [vmem:[%s1111_s3 + $0x98] sm:$0xff] %vm507_vm0, %v505_v13 }
 0x145   :  { %v403_v16 = vpop.f32.mrf.mxu2 }
 0x146   :  { %v404_v17 = vadd.f32 %v403_v16, %v324_v15  ;;  %v483_v18 = vpop.f32.mrf.mxu3 }
 0x148   :  { %v484_v19 = vadd.f32 %v483_v18, %v404_v17 }
 0x14a   :  { %v506_v20 = vmax.f32 %v484_v19, 0.0 }
 0x14c   :  { %529 = vst.msk [vmem:[%s1111_s3 + $0xa0] sm:$0x3] %vm528_vm1, %v506_v20 }

// kernel: qnetwork_forward.6
= control target key start
LH: loop header
LB: loop body
LE: loop exit
PB: predicated region body
PF: predicated region fallthrough
CT: control target
= control target key end

     0   :  { %vm155_vm0 = vcmask 523264   ;;  %vm500_vm1 = vcmask 517120   ;;  %s1108_s1 = inlined_call_operand.vmem [shape: f32[576,64], index: 1, kind: input, shape index: {}]   ;;  %s1109_s0 = inlined_call_operand.vmem [shape: f32[98,576], index: 0, kind: input, shape index: {}]   ;;  %s1110_s2 = inlined_call_operand.vmem [shape: f32[1,64], index: 2, kind: input, shape index: {}]   ;;  %s1111_s3 = inlined_call_operand.vmem [shape: f32[98,64], index: 3, kind: output, shape index: {}]  }
   0x1   :  { %v94_v0 = vld [vmem:[%s1108_s1 + $0x78] sm:$0xff]  ;;  %v93_v1 = vld [vmem:[%s1108_s1 + $0x70] sm:$0xff]  ;;  %v92_v2 = vld [vmem:[%s1108_s1 + $0x68] sm:$0xff] }
   0x2   :  { %519 = vmatpush.msra.mxu1 %v94_v0  ;;  %520 = vmatpush.msra.mxu2 %v94_v0  ;;  %v91_v3 = vld [vmem:[%s1108_s1 + $0x60] sm:$0xff]  ;;  %v90_v4 = vld [vmem:[%s1108_s1 + $0x58] sm:$0xff]  ;;  %v89_v5 = vld [vmem:[%s1108_s1 + $0x50] sm:$0xff] }
   0x3   :  { %521 = vmatpush.msra.mxu3 %v94_v0  ;;  %195 = vmatpush.msra.mxu0 %v94_v0  ;;  %v88_v6 = vld [vmem:[%s1108_s1 + $0x48] sm:$0xff]  ;;  %v87_v7 = vld [vmem:[%s1108_s1 + $0x40] sm:$0xff]  ;;  %v86_v8 = vld [vmem:[%s1108_s1 + $0x38] sm:$0xff] }
   0x4   :  { %522 = vmatpush.msra.mxu1 %v93_v1  ;;  %523 = vmatpush.msra.mxu2 %v93_v1  ;;  %v85_v9 = vld [vmem:[%s1108_s1 + $0x30] sm:$0xff]  ;;  %v84_v10 = vld [vmem:[%s1108_s1 + $0x28] sm:$0xff]  ;;  %v83_v11 = vld [vmem:[%s1108_s1 + $0x20] sm:$0xff] }
   0x5   :  { %524 = vmatpush.msra.mxu3 %v93_v1  ;;  %196 = vmatpush.msra.mxu0 %v93_v1  ;;  %v82_v12 = vld [vmem:[%s1108_s1 + $0x18] sm:$0xff]  ;;  %v81_v13 = vld [vmem:[%s1108_s1 + $0x10] sm:$0xff]  ;;  %v80_v14 = vld [vmem:[%s1108_s1 + $0x8] sm:$0xff] }
   0x6   :  { %525 = vmatpush.msra.mxu1 %v92_v2  ;;  %526 = vmatpush.msra.mxu2 %v92_v2  ;;  %v79_v15 = vld [vmem:[%s1108_s1] sm:$0xff]  ;;  %v126_v18 = vld [vmem:[%s1108_s1 + $0x178] sm:$0xff]  ;;  %v125_v20 = vld [vmem:[%s1108_s1 + $0x170] sm:$0xff] }
   0x7   :  { %527 = vmatpush.msra.mxu3 %v92_v2  ;;  %197 = vmatpush.msra.mxu0 %v92_v2  ;;  %v34_v16 = vld [vmem:[%s1109_s0 + $0xa0] sm:$0xff]  ;;  %v110_v19 = vld [vmem:[%s1108_s1 + $0xf8] sm:$0xff]  ;;  %v109_v21 = vld [vmem:[%s1108_s1 + $0xf0] sm:$0xff] }
   0x8   :  { %528 = vmatpush.msra.mxu1 %v91_v3  ;;  %529 = vmatpush.msra.mxu2 %v91_v3  ;;  %v54_v17 = vld [vmem:[%s1109_s0 + $0x140] sm:$0xff]  ;;  %v142_v22 = vld [vmem:[%s1108_s1 + $0x1f8] sm:$0xff]  ;;  %v124_v24 = vld [vmem:[%s1108_s1 + $0x168] sm:$0xff] }
   0x9   :  { %530 = vmatpush.msra.mxu3 %v91_v3  ;;  %198 = vmatpush.msra.mxu0 %v91_v3  ;;  %v14_v23 = vld [vmem:[%s1109_s0] sm:$0xff]  ;;  %v108_v25 = vld [vmem:[%s1108_s1 + $0xe8] sm:$0xff]  ;;  %v141_v26 = vld [vmem:[%s1108_s1 + $0x1f0] sm:$0xff] }
   0xa   :  { %531 = vmatpush.msra.mxu1 %v90_v4  ;;  %532 = vmatpush.msra.mxu2 %v90_v4  ;;  %v150_v27 = vld [vmem:[%s1108_s1 + $0x238] sm:$0xff]  ;;  %v123_v28 = vld [vmem:[%s1108_s1 + $0x160] sm:$0xff]  ;;  %v140_v30 = vld [vmem:[%s1108_s1 + $0x1e8] sm:$0xff] }
   0xb   :  { %533 = vmatpush.msra.mxu3 %v90_v4  ;;  %199 = vmatpush.msra.mxu0 %v90_v4  ;;  %v107_v29 = vld [vmem:[%s1108_s1 + $0xe0] sm:$0xff]  ;;  %v39_v31 = vld [vmem:[%s1109_s0 + $0xc8] sm:$0xff]  ;;  %v106_v33 = vld [vmem:[%s1108_s1 + $0xd8] sm:$0xff] }
   0xc   :  { %534 = vmatpush.msra.mxu1 %v89_v5  ;;  %535 = vmatpush.msra.mxu2 %v89_v5  ;;  %v59_v32 = vld [vmem:[%s1109_s0 + $0x168] sm:$0xff]  ;;  %v122_v34 = vld [vmem:[%s1108_s1 + $0x158] sm:$0xff]  ;;  %v139_v35 = vld [vmem:[%s1108_s1 + $0x1e0] sm:$0xff] }
   0xd   :  { %536 = vmatpush.msra.mxu3 %v89_v5  ;;  %200 = vmatpush.msra.mxu0 %v89_v5  ;;  %v105_v36 = vld [vmem:[%s1108_s1 + $0xd0] sm:$0xff]  ;;  %v138_v39 = vld [vmem:[%s1108_s1 + $0x1d8] sm:$0xff]  ;;  %v104_v40 = vld [vmem:[%s1108_s1 + $0xc8] sm:$0xff] }
   0xe   :  { %537 = vmatpush.msra.mxu1 %v88_v6  ;;  %538 = vmatpush.msra.mxu2 %v88_v6  ;;  %v149_v37 = vld [vmem:[%s1108_s1 + $0x230] sm:$0xff]  ;;  %v19_v41 = vld [vmem:[%s1109_s0 + $0x28] sm:$0xff]  ;;  %v103_v44 = vld [vmem:[%s1108_s1 + $0xc0] sm:$0xff] }
   0xf   :  { %539 = vmatpush.msra.mxu3 %v88_v6  ;;  %201 = vmatpush.msra.mxu0 %v88_v6  ;;  %v121_v38 = vld [vmem:[%s1108_s1 + $0x150] sm:$0xff]  ;;  %v120_v42 = vld [vmem:[%s1108_s1 + $0x148] sm:$0xff]  ;;  %v119_v46 = vld [vmem:[%s1108_s1 + $0x140] sm:$0xff] }
  0x10   :  { %540 = vmatpush.msra.mxu1 %v87_v7  ;;  %541 = vmatpush.msra.mxu2 %v87_v7  ;;  %v137_v43 = vld [vmem:[%s1108_s1 + $0x1d0] sm:$0xff]  ;;  %v148_v45 = vld [vmem:[%s1108_s1 + $0x228] sm:$0xff]  ;;  %v118_v50 = vld [vmem:[%s1108_s1 + $0x138] sm:$0xff] }
  0x11   :  { %542 = vmatpush.msra.mxu3 %v87_v7  ;;  %202 = vmatpush.msra.mxu0 %v87_v7  ;;  %v136_v47 = vld [vmem:[%s1108_s1 + $0x1c8] sm:$0xff]  ;;  %v44_v48 = vld [vmem:[%s1109_s0 + $0xf0] sm:$0xff]  ;;  %v102_v51 = vld [vmem:[%s1108_s1 + $0xb8] sm:$0xff] }
  0x12   :  { %543 = vmatpush.msra.mxu1 %v86_v8  ;;  %544 = vmatpush.msra.mxu2 %v86_v8  ;;  %v64_v49 = vld [vmem:[%s1109_s0 + $0x190] sm:$0xff]  ;;  %v135_v52 = vld [vmem:[%s1108_s1 + $0x1c0] sm:$0xff]  ;;  %v134_v56 = vld [vmem:[%s1108_s1 + $0x1b8] sm:$0xff] }
  0x13   :  { %545 = vmatpush.msra.mxu3 %v86_v8  ;;  %203 = vmatpush.msra.mxu0 %v86_v8  ;;  %v147_v53 = vld [vmem:[%s1108_s1 + $0x220] sm:$0xff]  ;;  %v117_v54 = vld [vmem:[%s1108_s1 + $0x130] sm:$0xff]  ;;  %v116_v58 = vld [vmem:[%s1108_s1 + $0x128] sm:$0xff] }
  0x14   :  { %546 = vmatpush.msra.mxu1 %v85_v9  ;;  %547 = vmatpush.msra.mxu2 %v85_v9  ;;  %v101_v55 = vld [vmem:[%s1108_s1 + $0xb0] sm:$0xff]  ;;  %v100_v59 = vld [vmem:[%s1108_s1 + $0xa8] sm:$0xff]  ;;  %v146_v61 = vld [vmem:[%s1108_s1 + $0x218] sm:$0xff] }
  0x15   :  { %548 = vmatpush.msra.mxu3 %v85_v9  ;;  %204 = vmatpush.msra.mxu0 %v85_v9  ;;  %v24_v57 = vld [vmem:[%s1109_s0 + $0x50] sm:$0xff]  ;;  %v115_v62 = vld [vmem:[%s1108_s1 + $0x120] sm:$0xff]  ;;  %v132_v0 = vld [vmem:[%s1108_s1 + $0x1a8] sm:$0xff] }
  0x16   :  { %549 = vmatpush.msra.mxu1 %v84_v10  ;;  %550 = vmatpush.msra.mxu2 %v84_v10  ;;  %v133_v60 = vld [vmem:[%s1108_s1 + $0x1b0] sm:$0xff]  ;;  %v99_v63 = vld [vmem:[%s1108_s1 + $0xa0] sm:$0xff]  ;;  %v49_v1 = vld [vmem:[%s1109_s0 + $0x118] sm:$0xff] }
  0x17   :  { %551 = vmatpush.msra.mxu3 %v84_v10  ;;  %205 = vmatpush.msra.mxu0 %v84_v10  ;;  %v69_v2 = vld [vmem:[%s1109_s0 + $0x1b8] sm:$0xff]  ;;  %v131_v5 = vld [vmem:[%s1108_s1 + $0x1a0] sm:$0xff]  ;;  %v97_v7 = vld [vmem:[%s1108_s1 + $0x90] sm:$0xff] }
  0x18   :  { %552 = vmatpush.msra.mxu1 %v83_v11  ;;  %553 = vmatpush.msra.mxu2 %v83_v11  ;;  %v98_v3 = vld [vmem:[%s1108_s1 + $0x98] sm:$0xff]  ;;  %v74_v6 = vld [vmem:[%s1109_s0 + $0x1e0] sm:$0x3]  ;;  %v113_v8 = vld [vmem:[%s1108_s1 + $0x110] sm:$0xff] }
  0x19   :  { %554 = vmatpush.msra.mxu3 %v83_v11  ;;  %206 = vmatpush.msra.mxu0 %v83_v11  ;;  %v114_v4 = vld [vmem:[%s1108_s1 + $0x118] sm:$0xff]  ;;  %v96_v10 = vld [vmem:[%s1108_s1 + $0x88] sm:$0xff]  ;;  %v145_v11 = vld [vmem:[%s1108_s1 + $0x210] sm:$0xff] }
  0x1a   :  { %555 = vmatpush.msra.mxu1 %v82_v12  ;;  %556 = vmatpush.msra.mxu2 %v82_v12  ;;  %v130_v9 = vld [vmem:[%s1108_s1 + $0x198] sm:$0xff] }
  0x1b   :  { %557 = vmatpush.msra.mxu3 %v82_v12  ;;  %207 = vmatpush.msra.mxu0 %v82_v12  ;;  %v112_v12 = vld [vmem:[%s1108_s1 + $0x108] sm:$0xff] }
  0x1c   :  { %558 = vmatpush.msra.mxu1 %v81_v13  ;;  %559 = vmatpush.msra.mxu2 %v81_v13 }
  0x1d   :  { %560 = vmatpush.msra.mxu3 %v81_v13  ;;  %208 = vmatpush.msra.mxu0 %v81_v13  ;;  %v129_v13 = vld [vmem:[%s1108_s1 + $0x190] sm:$0xff] }
  0x1e   :  { %561 = vmatpush.msra.mxu1 %v80_v14  ;;  %562 = vmatpush.msra.mxu2 %v80_v14 }
  0x1f   :  { %563 = vmatpush.msra.mxu3 %v80_v14  ;;  %209 = vmatpush.msra.mxu0 %v80_v14  ;;  %v95_v14 = vld [vmem:[%s1108_s1 + $0x80] sm:$0xff] }
  0x20   :  { %564 = vmatpush.msra.mxu1 %v79_v15  ;;  %565 = vmatpush.msra.mxu2 %v79_v15 }
  0x21   :  { %223 = vmatmul.f32.vlgmr.msra.gmra.mxu1 %v34_v16  ;;  %235 = vmatmul.f32.vlgmr.msra.gmra.mxu2 %v54_v17  ;;  %v111_v16 = vld [vmem:[%s1108_s1 + $0x100] sm:$0xff]  ;;  %v128_v17 = vld [vmem:[%s1108_s1 + $0x188] sm:$0xff] }
  0x22   :  { %307 = vmatpush.msrb.mxu2 %v126_v18  ;;  %251 = vmatpush.msrb.mxu1 %v110_v19  ;;  %v15_v18 = vld [vmem:[%s1109_s0 + $0x8] sm:$0xff]  ;;  %v16_v19 = vld [vmem:[%s1109_s0 + $0x10] sm:$0xff] }
  0x23   :  { %566 = vmatpush.msra.mxu3 %v79_v15  ;;  %210 = vmatpush.msra.mxu0 %v79_v15  ;;  %v29_v15 = vld [vmem:[%s1109_s0 + $0x78] sm:$0xff] }
  0x24   :  { %308 = vmatpush.msrb.mxu2 %v125_v20  ;;  %252 = vmatpush.msrb.mxu1 %v109_v21  ;;  %v127_v20 = vld [vmem:[%s1108_s1 + $0x180] sm:$0xff]  ;;  %v144_v21 = vld [vmem:[%s1108_s1 + $0x208] sm:$0xff] }
  0x25   :  { %363 = vmatpush.msrb.mxu3 %v142_v22  ;;  %211 = vmatmul.f32.vlgmr.msra.gmra.mxu0 %v14_v23  ;;  %v17_v22 = vld [vmem:[%s1109_s0 + $0x18] sm:$0xff]  ;;  %v143_v23 = vld [vmem:[%s1108_s1 + $0x200] sm:$0xff] }
  0x26   :  { %309 = vmatpush.msrb.mxu2 %v124_v24  ;;  %253 = vmatpush.msrb.mxu1 %v108_v25  ;;  %v18_v24 = vld [vmem:[%s1109_s0 + $0x20] sm:$0xff]  ;;  %v20_v25 = vld [vmem:[%s1109_s0 + $0x30] sm:$0xff] }
  0x27   :  { %364 = vmatpush.msrb.mxu3 %v141_v26  ;;  %427 = vmatpush.msrb.mxu0 %v150_v27  ;;  %v21_v26 = vld [vmem:[%s1109_s0 + $0x38] sm:$0xff]  ;;  %v22_v27 = vld [vmem:[%s1109_s0 + $0x40] sm:$0xff] }
  0x28   :  { %310 = vmatpush.msrb.mxu2 %v123_v28  ;;  %254 = vmatpush.msrb.mxu1 %v107_v29  ;;  %v23_v28 = vld [vmem:[%s1109_s0 + $0x48] sm:$0xff]  ;;  %v25_v29 = vld [vmem:[%s1109_s0 + $0x58] sm:$0xff] }
  0x29   :  { %365 = vmatpush.msrb.mxu3 %v140_v30  ;;  %226 = vmatmul.f32.gmra.mxu1 %v39_v31  ;;  %v26_v30 = vld [vmem:[%s1109_s0 + $0x60] sm:$0xff]  ;;  %v27_v31 = vld [vmem:[%s1109_s0 + $0x68] sm:$0xff] }
  0x2a   :  { %238 = vmatmul.f32.gmra.mxu2 %v59_v32  ;;  %255 = vmatpush.msrb.mxu1 %v106_v33  ;;  %v28_v32 = vld [vmem:[%s1109_s0 + $0x70] sm:$0xff]  ;;  %v30_v33 = vld [vmem:[%s1109_s0 + $0x80] sm:$0xff] }
  0x2b   :  { %311 = vmatpush.msrb.mxu2 %v122_v34  ;;  %366 = vmatpush.msrb.mxu3 %v139_v35  ;;  %v31_v34 = vld [vmem:[%s1109_s0 + $0x88] sm:$0xff]  ;;  %v32_v35 = vld [vmem:[%s1109_s0 + $0x90] sm:$0xff] }
  0x2c   :  { %256 = vmatpush.msrb.mxu1 %v105_v36  ;;  %428 = vmatpush.msrb.mxu0 %v149_v37  ;;  %v33_v36 = vld [vmem:[%s1109_s0 + $0x98] sm:$0xff]  ;;  %v35_v37 = vld [vmem:[%s1109_s0 + $0xa8] sm:$0xff] }
  0x2d   :  { %312 = vmatpush.msrb.mxu2 %v121_v38  ;;  %367 = vmatpush.msrb.mxu3 %v138_v39  ;;  %v36_v38 = vld [vmem:[%s1109_s0 + $0xb0] sm:$0xff]  ;;  %v37_v39 = vld [vmem:[%s1109_s0 + $0xb8] sm:$0xff] }
  0x2e   :  { %257 = vmatpush.msrb.mxu1 %v104_v40  ;;  %214 = vmatmul.f32.gmra.mxu0 %v19_v41  ;;  %v38_v40 = vld [vmem:[%s1109_s0 + $0xc0] sm:$0xff]  ;;  %v40_v41 = vld [vmem:[%s1109_s0 + $0xd0] sm:$0xff] }
  0x2f   :  { %313 = vmatpush.msrb.mxu2 %v120_v42  ;;  %368 = vmatpush.msrb.mxu3 %v137_v43  ;;  %v41_v42 = vld [vmem:[%s1109_s0 + $0xd8] sm:$0xff]  ;;  %v42_v43 = vld [vmem:[%s1109_s0 + $0xe0] sm:$0xff] }
  0x30   :  { %258 = vmatpush.msrb.mxu1 %v103_v44  ;;  %429 = vmatpush.msrb.mxu0 %v148_v45  ;;  %v43_v44 = vld [vmem:[%s1109_s0 + $0xe8] sm:$0xff]  ;;  %v45_v45 = vld [vmem:[%s1109_s0 + $0xf8] sm:$0xff] }
  0x31   :  { %314 = vmatpush.msrb.mxu2 %v119_v46  ;;  %369 = vmatpush.msrb.mxu3 %v136_v47  ;;  %v46_v46 = vld [vmem:[%s1109_s0 + $0x100] sm:$0xff]  ;;  %v47_v47 = vld [vmem:[%s1109_s0 + $0x108] sm:$0xff] }
  0x32   :  { %229 = vmatmul.f32.gmra.mxu1 %v44_v48  ;;  %241 = vmatmul.f32.gmra.mxu2 %v64_v49  ;;  %v48_v48 = vld [vmem:[%s1109_s0 + $0x110] sm:$0xff]  ;;  %v50_v49 = vld [vmem:[%s1109_s0 + $0x120] sm:$0xff] }
  0x33   :  { %315 = vmatpush.msrb.mxu2 %v118_v50  ;;  %259 = vmatpush.msrb.mxu1 %v102_v51  ;;  %v51_v50 = vld [vmem:[%s1109_s0 + $0x128] sm:$0xff]  ;;  %v52_v51 = vld [vmem:[%s1109_s0 + $0x130] sm:$0xff] }
  0x34   :  { %370 = vmatpush.msrb.mxu3 %v135_v52  ;;  %430 = vmatpush.msrb.mxu0 %v147_v53  ;;  %v53_v52 = vld [vmem:[%s1109_s0 + $0x138] sm:$0xff]  ;;  %v55_v53 = vld [vmem:[%s1109_s0 + $0x148] sm:$0xff] }
  0x35   :  { %316 = vmatpush.msrb.mxu2 %v117_v54  ;;  %260 = vmatpush.msrb.mxu1 %v101_v55  ;;  %v56_v54 = vld [vmem:[%s1109_s0 + $0x150] sm:$0xff]  ;;  %v57_v55 = vld [vmem:[%s1109_s0 + $0x158] sm:$0xff] }
  0x36   :  { %371 = vmatpush.msrb.mxu3 %v134_v56  ;;  %217 = vmatmul.f32.gmra.mxu0 %v24_v57  ;;  %v58_v56 = vld [vmem:[%s1109_s0 + $0x160] sm:$0xff]  ;;  %v60_v57 = vld [vmem:[%s1109_s0 + $0x170] sm:$0xff] }
  0x37   :  { %317 = vmatpush.msrb.mxu2 %v116_v58  ;;  %261 = vmatpush.msrb.mxu1 %v100_v59  ;;  %v61_v58 = vld [vmem:[%s1109_s0 + $0x178] sm:$0xff]  ;;  %v62_v59 = vld [vmem:[%s1109_s0 + $0x180] sm:$0xff] }
  0x38   :  { %372 = vmatpush.msrb.mxu3 %v133_v60  ;;  %431 = vmatpush.msrb.mxu0 %v146_v61  ;;  %v63_v60 = vld [vmem:[%s1109_s0 + $0x188] sm:$0xff]  ;;  %v65_v61 = vld [vmem:[%s1109_s0 + $0x198] sm:$0xff] }
  0x39   :  { %318 = vmatpush.msrb.mxu2 %v115_v62  ;;  %262 = vmatpush.msrb.mxu1 %v99_v63  ;;  %v66_v62 = vld [vmem:[%s1109_s0 + $0x1a0] sm:$0xff]  ;;  %v67_v63 = vld [vmem:[%s1109_s0 + $0x1a8] sm:$0xff] }
  0x3a   :  { %373 = vmatpush.msrb.mxu3 %v132_v0  ;;  %232 = vmatmul.f32.gmra.mxu1 %v49_v1  ;;  %v68_v0 = vld [vmem:[%s1109_s0 + $0x1b0] sm:$0xff]  ;;  %v70_v1 = vld [vmem:[%s1109_s0 + $0x1c0] sm:$0xff] }
  0x3b   :  { %244 = vmatmul.f32.gmra.mxu2 %v69_v2  ;;  %263 = vmatpush.msrb.mxu1 %v98_v3  ;;  %v71_v2 = vld [vmem:[%s1109_s0 + $0x1c8] sm:$0xff]  ;;  %v72_v3 = vld [vmem:[%s1109_s0 + $0x1d0] sm:$0xff] }
  0x3c   :  { %319 = vmatpush.msrb.mxu2 %v114_v4  ;;  %374 = vmatpush.msrb.mxu3 %v131_v5  ;;  %v73_v5 = vld [vmem:[%s1109_s0 + $0x1d8] sm:$0xff] }
  0x3d   :  { %247 = vmatmul.f32.vlgmr.msra.gmra.mxu3 %v74_v6  ;;  %264 = vmatpush.msrb.mxu1 %v97_v7  ;;  %v75_v6 = vld [vmem:[%s1109_s0 + $0x1e8] sm:$0x3]  ;;  %v76_v7 = vld [vmem:[%s1109_s0 + $0x1f0] sm:$0x3] }
  0x3e   :  { %320 = vmatpush.msrb.mxu2 %v113_v8  ;;  %375 = vmatpush.msrb.mxu3 %v130_v9  ;;  %v77_v8 = vld [vmem:[%s1109_s0 + $0x1f8] sm:$0x3] }
  0x3f   :  { %265 = vmatpush.msrb.mxu1 %v96_v10  ;;  %432 = vmatpush.msrb.mxu0 %v145_v11  ;;  %v1013_v10 = vld [vmem:[%s1110_s2] ss:$0 sm:$0xff] }
  0x40   :  { %321 = vmatpush.msrb.mxu2 %v112_v12  ;;  %376 = vmatpush.msrb.mxu3 %v129_v13 }
  0x41   :  { %266 = vmatpush.msrb.mxu1 %v95_v14  ;;  %220 = vmatmul.f32.gmra.mxu0 %v29_v15  ;;  %v78_v14 = vld [vmem:[%s1109_s0 + $0x200] sm:$0x3] }
  0x42   :  { %322 = vmatpush.msrb.mxu2 %v111_v16  ;;  %377 = vmatpush.msrb.mxu3 %v128_v17 }
  0x43   :  { %267 = vmatmul.f32.vlgmr.msrb.gmra.mxu1 %v15_v18  ;;  %323 = vmatmul.f32.vlgmr.msrb.gmra.mxu2 %v16_v19 }
  0x44   :  { %378 = vmatpush.msrb.mxu3 %v127_v20  ;;  %433 = vmatpush.msrb.mxu0 %v144_v21 }
  0x45   :  { %379 = vmatmul.f32.vlgmr.msrb.gmra.mxu3 %v17_v22 }
  0x46   :  { %434 = vmatpush.msrb.mxu0 %v143_v23 }
  0x49   :  { %506 = vmatmul.msk.f32.vlgmr.msrb.gmra.mxu0 %vm155_vm0, %v18_v24 }
  0x4b   :  { %270 = vmatmul.f32.gmra.mxu1 %v20_v25  ;;  %326 = vmatmul.f32.gmra.mxu2 %v21_v26 }
  0x4d   :  { %382 = vmatmul.f32.gmra.mxu3 %v22_v27 }
  0x51   :  { %507 = vmatmul.msk.f32.gmra.mxu0 %vm155_vm0, %v23_v28 }
  0x53   :  { %273 = vmatmul.f32.gmra.mxu1 %v25_v29  ;;  %329 = vmatmul.f32.gmra.mxu2 %v26_v30 }
  0x55   :  { %385 = vmatmul.f32.gmra.mxu3 %v27_v31 }
  0x59   :  { %508 = vmatmul.msk.f32.gmra.mxu0 %vm155_vm0, %v28_v32 }
  0x5b   :  { %276 = vmatmul.f32.gmra.mxu1 %v30_v33  ;;  %332 = vmatmul.f32.gmra.mxu2 %v31_v34 }
  0x5d   :  { %388 = vmatmul.f32.gmra.mxu3 %v32_v35 }
  0x61   :  { %509 = vmatmul.msk.f32.gmra.mxu0 %vm155_vm0, %v33_v36 }
  0x63   :  { %279 = vmatmul.f32.gmra.mxu1 %v35_v37  ;;  %335 = vmatmul.f32.gmra.mxu2 %v36_v38 }
  0x65   :  { %391 = vmatmul.f32.gmra.mxu3 %v37_v39 }
  0x69   :  { %510 = vmatmul.msk.f32.gmra.mxu0 %vm155_vm0, %v38_v40 }
  0x6b   :  { %282 = vmatmul.f32.gmra.mxu1 %v40_v41  ;;  %338 = vmatmul.f32.gmra.mxu2 %v41_v42 }
  0x6d   :  { %394 = vmatmul.f32.gmra.mxu3 %v42_v43 }
  0x71   :  { %511 = vmatmul.msk.f32.gmra.mxu0 %vm155_vm0, %v43_v44 }
  0x73   :  { %285 = vmatmul.f32.gmra.mxu1 %v45_v45  ;;  %341 = vmatmul.f32.gmra.mxu2 %v46_v46 }
  0x75   :  { %397 = vmatmul.f32.gmra.mxu3 %v47_v47 }
  0x79   :  { %512 = vmatmul.msk.f32.gmra.mxu0 %vm155_vm0, %v48_v48 }
  0x7b   :  { %288 = vmatmul.f32.gmra.mxu1 %v50_v49  ;;  %344 = vmatmul.f32.gmra.mxu2 %v51_v50 }
  0x7d   :  { %400 = vmatmul.f32.gmra.mxu3 %v52_v51 }
  0x81   :  { %513 = vmatmul.msk.f32.gmra.mxu0 %vm155_vm0, %v53_v52 }
  0x83   :  { %291 = vmatmul.f32.gmra.mxu1 %v55_v53  ;;  %347 = vmatmul.f32.gmra.mxu2 %v56_v54 }
  0x85   :  { %403 = vmatmul.f32.gmra.mxu3 %v57_v55 }
  0x89   :  { %514 = vmatmul.msk.f32.gmra.mxu0 %vm155_vm0, %v58_v56 }
  0x8b   :  { %294 = vmatmul.f32.gmra.mxu1 %v60_v57  ;;  %350 = vmatmul.f32.gmra.mxu2 %v61_v58 }
  0x8d   :  { %406 = vmatmul.f32.gmra.mxu3 %v62_v59 }
  0x91   :  { %515 = vmatmul.msk.f32.gmra.mxu0 %vm155_vm0, %v63_v60 }
  0x93   :  { %297 = vmatmul.f32.gmra.mxu1 %v65_v61  ;;  %353 = vmatmul.f32.gmra.mxu2 %v66_v62 }
  0x95   :  { %409 = vmatmul.f32.gmra.mxu3 %v67_v63 }
  0x99   :  { %516 = vmatmul.msk.f32.gmra.mxu0 %vm155_vm0, %v68_v0 }
  0x9b   :  { %300 = vmatmul.f32.gmra.mxu1 %v70_v1  ;;  %356 = vmatmul.f32.gmra.mxu2 %v71_v2 }
  0x9d   :  { %412 = vmatmul.f32.gmra.mxu3 %v72_v3 }
  0x9e   :  { %v995_v4 = vpop.f32.mrf.mxu1 }
  0x9f   :  { %v225_v3 = vadd.f32 %v1013_v10, %v995_v4 }
  0xa1   :  { %517 = vmatmul.msk.f32.gmra.mxu0 %vm155_vm0, %v73_v5 }
  0xa2   :  { %v212_v9 = vpop.f32.mrf.mxu0 }
  0xa3   :  { %303 = vmatmul.f32.gmra.mxu1 %v75_v6  ;;  %359 = vmatmul.f32.gmra.mxu2 %v76_v7  ;;  %v213_v29 = vadd.f32 %v1013_v10, %v212_v9 }
  0xa4   :  { %v236_v11 = vpop.f32.mrf.mxu2 }
  0xa5   :  { %415 = vmatmul.f32.gmra.mxu3 %v77_v8  ;;  %v1016_v12 = vadd.f32 %v1013_v10, %v236_v11 }
  0xa6   :  { %v1018_v13 = vpop.f32.mrf.mxu1 }
  0xa9   :  { %518 = vmatmul.msk.f32.gmra.mxu0 %vm155_vm0, %v78_v14 }
  0xab   :  { %v215_v15 = vpop.f32.mrf.mxu0 }
  0xac   :  { %v216_v37 = vadd.f32 %v1013_v10, %v215_v15 }
  0xad   :  { %v239_v16 = vpop.f32.mrf.mxu2 }
  0xae   :  { %v1025_v17 = vadd.f32 %v1013_v10, %v239_v16 }
  0xaf   :  { %v1027_v18 = vpop.f32.mrf.mxu1 }
  0xb3   :  { %v218_v19 = vpop.f32.mrf.mxu0 }
  0xb4   :  { %v219_v47 = vadd.f32 %v1013_v10, %v218_v19  ;;  %v228_v19 = vadd.f32 %v1013_v10, %v1018_v13 }
  0xb5   :  { %v242_v20 = vpop.f32.mrf.mxu2 }
  0xb6   :  { %v1030_v21 = vadd.f32 %v1013_v10, %v242_v20 }
  0xb7   :  { %v1032_v22 = vpop.f32.mrf.mxu1 }
  0xbe   :  { %v245_v23 = vpop.f32.mrf.mxu2  ;;  %v221_v24 = vpop.f32.mrf.mxu0 }
  0xbf   :  { %v1035_v25 = vadd.f32 %v1013_v10, %v245_v23  ;;  %v222_v57 = vadd.f32 %v1013_v10, %v221_v24 }
  0xc0   :  { %v248_v26 = vpop.f32.mrf.mxu3  ;;  %v268_v27 = vpop.f32.mrf.mxu1 }
  0xc1   :  { %v1038_v28 = vadd.f32 %v1013_v10, %v248_v26  ;;  %v269_v30 = vadd.f32 %v268_v27, %v213_v29 }
  0xc6   :  { %v324_v31 = vpop.f32.mrf.mxu2  ;;  %v436_v32 = vpop.f32.mrf.mxu0 }
  0xc7   :  { %v325_v33 = vadd.f32 %v324_v31, %v269_v30 }
  0xc8   :  { %v271_v34 = vpop.f32.mrf.mxu1  ;;  %v380_v35 = vpop.f32.mrf.mxu3 }
  0xc9   :  { %v381_v36 = vadd.f32 %v380_v35, %v325_v33  ;;  %v272_v39 = vadd.f32 %v271_v34, %v216_v37 }
  0xcb   :  { %v437_v38 = vadd.f32 %v436_v32, %v381_v36  ;;  %v231_v32 = vadd.f32 %v1013_v10, %v1027_v18 }
  0xcd   :  { %v475_v40 = vmax.f32 %v437_v38, 0.0 }
  0xce   :  { %v327_v41 = vpop.f32.mrf.mxu2  ;;  %v439_v42 = vpop.f32.mrf.mxu0 }
  0xcf   :  { %488 = vst.msk [vmem:[%s1111_s3] sm:$0xff] %vm155_vm0, %v475_v40  ;;  %v328_v43 = vadd.f32 %v327_v41, %v272_v39  ;;  %v234_v41 = vadd.f32 %v1013_v10, %v1032_v22 }
  0xd0   :  { %v274_v44 = vpop.f32.mrf.mxu1  ;;  %v383_v45 = vpop.f32.mrf.mxu3 }
  0xd1   :  { %v384_v46 = vadd.f32 %v383_v45, %v328_v43  ;;  %v275_v49 = vadd.f32 %v274_v44, %v219_v47 }
  0xd3   :  { %v440_v48 = vadd.f32 %v439_v42, %v384_v46 }
  0xd5   :  { %v476_v50 = vmax.f32 %v440_v48, 0.0 }
  0xd6   :  { %v330_v51 = vpop.f32.mrf.mxu2  ;;  %v442_v52 = vpop.f32.mrf.mxu0 }
  0xd7   :  { %489 = vst.msk [vmem:[%s1111_s3 + $0x8] sm:$0xff] %vm155_vm0, %v476_v50  ;;  %v331_v53 = vadd.f32 %v330_v51, %v275_v49 }
  0xd8   :  { %v277_v54 = vpop.f32.mrf.mxu1  ;;  %v386_v55 = vpop.f32.mrf.mxu3 }
  0xd9   :  { %v387_v56 = vadd.f32 %v386_v55, %v331_v53  ;;  %v278_v59 = vadd.f32 %v277_v54, %v222_v57 }
  0xdb   :  { %v443_v58 = vadd.f32 %v442_v52, %v387_v56 }
  0xdd   :  { %v477_v60 = vmax.f32 %v443_v58, 0.0 }
  0xde   :  { %v333_v61 = vpop.f32.mrf.mxu2  ;;  %v445_v62 = vpop.f32.mrf.mxu0 }
  0xdf   :  { %490 = vst.msk [vmem:[%s1111_s3 + $0x10] sm:$0xff] %vm155_vm0, %v477_v60  ;;  %v334_v63 = vadd.f32 %v333_v61, %v278_v59 }
  0xe0   :  { %v280_v0 = vpop.f32.mrf.mxu1  ;;  %v389_v1 = vpop.f32.mrf.mxu3 }
  0xe1   :  { %v390_v2 = vadd.f32 %v389_v1, %v334_v63  ;;  %v281_v6 = vadd.f32 %v280_v0, %v225_v3 }
  0xe3   :  { %v446_v5 = vadd.f32 %v445_v62, %v390_v2 }
  0xe5   :  { %v478_v7 = vmax.f32 %v446_v5, 0.0 }
  0xe6   :  { %v336_v8 = vpop.f32.mrf.mxu2  ;;  %v448_v9 = vpop.f32.mrf.mxu0 }
  0xe7   :  { %491 = vst.msk [vmem:[%s1111_s3 + $0x18] sm:$0xff] %vm155_vm0, %v478_v7  ;;  %v337_v11 = vadd.f32 %v336_v8, %v281_v6 }
  0xe8   :  { %v283_v14 = vpop.f32.mrf.mxu1  ;;  %v392_v15 = vpop.f32.mrf.mxu3 }
  0xe9   :  { %v393_v16 = vadd.f32 %v392_v15, %v337_v11  ;;  %v284_v23 = vadd.f32 %v283_v14, %v228_v19 }
  0xeb   :  { %v449_v20 = vadd.f32 %v448_v9, %v393_v16 }
  0xed   :  { %v479_v4 = vmax.f32 %v449_v20, 0.0 }
  0xee   :  { %v339_v24 = vpop.f32.mrf.mxu2  ;;  %v451_v26 = vpop.f32.mrf.mxu0 }
  0xef   :  { %492 = vst.msk [vmem:[%s1111_s3 + $0x20] sm:$0xff] %vm155_vm0, %v479_v4  ;;  %v340_v27 = vadd.f32 %v339_v24, %v284_v23 }
  0xf0   :  { %v286_v29 = vpop.f32.mrf.mxu1  ;;  %v395_v30 = vpop.f32.mrf.mxu3 }
  0xf1   :  { %v396_v31 = vadd.f32 %v395_v30, %v340_v27  ;;  %v287_v34 = vadd.f32 %v286_v29, %v231_v32 }
  0xf3   :  { %v452_v33 = vadd.f32 %v451_v26, %v396_v31 }
  0xf5   :  { %v480_v13 = vmax.f32 %v452_v33, 0.0 }
  0xf6   :  { %v342_v35 = vpop.f32.mrf.mxu2  ;;  %v454_v36 = vpop.f32.mrf.mxu0 }
  0xf7   :  { %493 = vst.msk [vmem:[%s1111_s3 + $0x28] sm:$0xff] %vm155_vm0, %v480_v13  ;;  %v343_v37 = vadd.f32 %v342_v35, %v287_v34 }
  0xf8   :  { %v289_v38 = vpop.f32.mrf.mxu1  ;;  %v398_v39 = vpop.f32.mrf.mxu3 }
  0xf9   :  { %v399_v40 = vadd.f32 %v398_v39, %v343_v37  ;;  %v290_v43 = vadd.f32 %v289_v38, %v234_v41 }
  0xfb   :  { %v455_v42 = vadd.f32 %v454_v36, %v399_v40 }
  0xfd   :  { %v481_v18 = vmax.f32 %v455_v42, 0.0 }
  0xfe   :  { %v345_v44 = vpop.f32.mrf.mxu2  ;;  %v457_v45 = vpop.f32.mrf.mxu0 }
  0xff   :  { %494 = vst.msk [vmem:[%s1111_s3 + $0x30] sm:$0xff] %vm155_vm0, %v481_v18  ;;  %v346_v46 = vadd.f32 %v345_v44, %v290_v43 }
 0x100   :  { %v292_v47 = vpop.f32.mrf.mxu1  ;;  %v401_v48 = vpop.f32.mrf.mxu3 }
 0x101   :  { %v402_v49 = vadd.f32 %v401_v48, %v346_v46  ;;  %v293_v51 = vadd.f32 %v292_v47, %v1016_v12 }
 0x103   :  { %v458_v50 = vadd.f32 %v457_v45, %v402_v49 }
 0x105   :  { %v482_v52 = vmax.f32 %v458_v50, 0.0 }
 0x106   :  { %v348_v53 = vpop.f32.mrf.mxu2  ;;  %v460_v10 = vpop.f32.mrf.mxu0 }
 0x107   :  { %495 = vst.msk [vmem:[%s1111_s3 + $0x38] sm:$0xff] %vm155_vm0, %v482_v52  ;;  %v349_v22 = vadd.f32 %v348_v53, %v293_v51 }
 0x108   :  { %v295_v54 = vpop.f32.mrf.mxu1  ;;  %v404_v55 = vpop.f32.mrf.mxu3 }
 0x109   :  { %v405_v56 = vadd.f32 %v404_v55, %v349_v22  ;;  %v296_v58 = vadd.f32 %v295_v54, %v1025_v17 }
 0x10b   :  { %v461_v57 = vadd.f32 %v460_v10, %v405_v56 }
 0x10d   :  { %v483_v59 = vmax.f32 %v461_v57, 0.0 }
 0x10e   :  { %v351_v60 = vpop.f32.mrf.mxu2  ;;  %v463_v61 = vpop.f32.mrf.mxu0 }
 0x10f   :  { %496 = vst.msk [vmem:[%s1111_s3 + $0x40] sm:$0xff] %vm155_vm0, %v483_v59  ;;  %v352_v12 = vadd.f32 %v351_v60, %v296_v58 }
 0x110   :  { %v298_v62 = vpop.f32.mrf.mxu1  ;;  %v407_v63 = vpop.f32.mrf.mxu3 }
 0x111   :  { %v408_v0 = vadd.f32 %v407_v63, %v352_v12  ;;  %v299_v2 = vadd.f32 %v298_v62, %v1030_v21 }
 0x113   :  { %v464_v1 = vadd.f32 %v463_v61, %v408_v0 }
 0x115   :  { %v484_v3 = vmax.f32 %v464_v1, 0.0 }
 0x116   :  { %v354_v5 = vpop.f32.mrf.mxu2  ;;  %v466_v6 = vpop.f32.mrf.mxu0 }
 0x117   :  { %497 = vst.msk [vmem:[%s1111_s3 + $0x48] sm:$0xff] %vm155_vm0, %v484_v3  ;;  %v355_v17 = vadd.f32 %v354_v5, %v299_v2 }
 0x118   :  { %v301_v7 = vpop.f32.mrf.mxu1  ;;  %v410_v8 = vpop.f32.mrf.mxu3 }
 0x119   :  { %v411_v9 = vadd.f32 %v410_v8, %v355_v17  ;;  %v302_v14 = vadd.f32 %v301_v7, %v1035_v25 }
 0x11b   :  { %v467_v11 = vadd.f32 %v466_v6, %v411_v9 }
 0x11d   :  { %v485_v15 = vmax.f32 %v467_v11, 0.0 }
 0x11e   :  { %v357_v16 = vpop.f32.mrf.mxu2  ;;  %v469_v19 = vpop.f32.mrf.mxu0 }
 0x11f   :  { %498 = vst.msk [vmem:[%s1111_s3 + $0x50] sm:$0xff] %vm155_vm0, %v485_v15  ;;  %v358_v21 = vadd.f32 %v357_v16, %v302_v14 }
 0x120   :  { %v413_v20 = vpop.f32.mrf.mxu3  ;;  %v304_v4 = vpop.f32.mrf.mxu1 }
 0x121   :  { %v414_v23 = vadd.f32 %v413_v20, %v358_v21  ;;  %v305_v26 = vadd.f32 %v304_v4, %v1038_v28 }
 0x123   :  { %v470_v24 = vadd.f32 %v469_v19, %v414_v23 }
 0x125   :  { %v486_v27 = vmax.f32 %v470_v24, 0.0 }
 0x126   :  { %v360_v29 = vpop.f32.mrf.mxu2  ;;  %v472_v31 = vpop.f32.mrf.mxu0 }
 0x127   :  { %499 = vst.msk [vmem:[%s1111_s3 + $0x58] sm:$0xff] %vm155_vm0, %v486_v27  ;;  %v361_v25 = vadd.f32 %v360_v29, %v305_v26 }
 0x128   :  { %v416_v30 = vpop.f32.mrf.mxu3 }
 0x129   :  { %v417_v32 = vadd.f32 %v416_v30, %v361_v25 }
 0x12b   :  { %v473_v33 = vadd.f32 %v472_v31, %v417_v32 }
 0x12d   :  { %v487_v34 = vmax.f32 %v473_v33, 0.0 }
 0x12f   :  { %501 = vst.msk [vmem:[%s1111_s3 + $0x60] sm:$0x3] %vm500_vm1, %v487_v34 }

// kernel: qnetwork_forward.7
= control target key start
LH: loop header
LB: loop body
LE: loop exit
PB: predicated region body
PF: predicated region fallthrough
CT: control target
= control target key end

     0   :  { %s2409_s0 = inlined_call_operand.vmem [shape: f32[2,3136], index: 0, kind: input, shape index: {}]   ;;  %s2410_s1 = inlined_call_operand.vmem [shape: f32[3136,128], index: 1, kind: input, shape index: {}]   ;;  %s2411_s2 = inlined_call_operand.vmem [shape: f32[1,128], index: 2, kind: input, shape index: {}]   ;;  %s2412_s3 = inlined_call_operand.vmem [shape: f32[128,128], index: 3, kind: input, shape index: {}]   ;;  %s2413_s4 = inlined_call_operand.vmem [shape: f32[1,128], index: 4, kind: input, shape index: {}]   ;;  %s2414_s5 = inlined_call_operand.hbm [shape: f32[2,128], index: 5, kind: output, shape index: {}]  }
   0x1   :  { %v43_v0 = vld [vmem:[%s2410_s1 + $0x78] sm:$0xff]  ;;  %v42_v2 = vld [vmem:[%s2410_s1 + $0x70] sm:$0xff]  ;;  %v41_v6 = vld [vmem:[%s2410_s1 + $0x68] sm:$0xff] }
   0x2   :  { %v75_v1 = vld [vmem:[%s2410_s1 + $0x178] sm:$0xff]  ;;  %491 = vmatpush.msra.mxu0 %v43_v0  ;;  %v74_v4 = vld [vmem:[%s2410_s1 + $0x170] sm:$0xff]  ;;  %v73_v8 = vld [vmem:[%s2410_s1 + $0x168] sm:$0xff] }
   0x3   :  { %531 = vmatpush.msra.mxu2 %v75_v1  ;;  %v59_v3 = vld [vmem:[%s2410_s1 + $0xf8] sm:$0xff]  ;;  %v58_v7 = vld [vmem:[%s2410_s1 + $0xf0] sm:$0xff]  ;;  %v57_v10 = vld [vmem:[%s2410_s1 + $0xe8] sm:$0xff] }
   0x4   :  { %v91_v5 = vld [vmem:[%s2410_s1 + $0x1f8] sm:$0xff]  ;;  %511 = vmatpush.msra.mxu1 %v59_v3  ;;  %492 = vmatpush.msra.mxu0 %v42_v2  ;;  %v90_v9 = vld [vmem:[%s2410_s1 + $0x1f0] sm:$0xff]  ;;  %v40_v11 = vld [vmem:[%s2410_s1 + $0x60] sm:$0xff] }
   0x5   :  { %551 = vmatpush.msra.mxu3 %v91_v5  ;;  %532 = vmatpush.msra.mxu2 %v74_v4  ;;  %v72_v12 = vld [vmem:[%s2410_s1 + $0x160] sm:$0xff]  ;;  %v89_v13 = vld [vmem:[%s2410_s1 + $0x1e8] sm:$0xff]  ;;  %v39_v16 = vld [vmem:[%s2410_s1 + $0x58] sm:$0xff] }
   0x6   :  { %512 = vmatpush.msra.mxu1 %v58_v7  ;;  %493 = vmatpush.msra.mxu0 %v41_v6  ;;  %v56_v14 = vld [vmem:[%s2410_s1 + $0xe0] sm:$0xff]  ;;  %v71_v17 = vld [vmem:[%s2410_s1 + $0x158] sm:$0xff]  ;;  %v38_v20 = vld [vmem:[%s2410_s1 + $0x50] sm:$0xff] }
   0x7   :  { %552 = vmatpush.msra.mxu3 %v90_v9  ;;  %533 = vmatpush.msra.mxu2 %v73_v8  ;;  %v88_v15 = vld [vmem:[%s2410_s1 + $0x1e0] sm:$0xff]  ;;  %v55_v18 = vld [vmem:[%s2410_s1 + $0xd8] sm:$0xff]  ;;  %v70_v21 = vld [vmem:[%s2410_s1 + $0x150] sm:$0xff] }
   0x8   :  { %513 = vmatpush.msra.mxu1 %v57_v10  ;;  %494 = vmatpush.msra.mxu0 %v40_v11  ;;  %v87_v19 = vld [vmem:[%s2410_s1 + $0x1d8] sm:$0xff]  ;;  %v54_v22 = vld [vmem:[%s2410_s1 + $0xd0] sm:$0xff]  ;;  %v37_v24 = vld [vmem:[%s2410_s1 + $0x48] sm:$0xff] }
   0x9   :  { %553 = vmatpush.msra.mxu3 %v89_v13  ;;  %534 = vmatpush.msra.mxu2 %v72_v12  ;;  %v86_v23 = vld [vmem:[%s2410_s1 + $0x1d0] sm:$0xff]  ;;  %v69_v25 = vld [vmem:[%s2410_s1 + $0x148] sm:$0xff]  ;;  %v36_v28 = vld [vmem:[%s2410_s1 + $0x40] sm:$0xff] }
   0xa   :  { %514 = vmatpush.msra.mxu1 %v56_v14  ;;  %495 = vmatpush.msra.mxu0 %v39_v16  ;;  %v53_v26 = vld [vmem:[%s2410_s1 + $0xc8] sm:$0xff]  ;;  %v68_v29 = vld [vmem:[%s2410_s1 + $0x140] sm:$0xff]  ;;  %v35_v32 = vld [vmem:[%s2410_s1 + $0x38] sm:$0xff] }
   0xb   :  { %554 = vmatpush.msra.mxu3 %v88_v15  ;;  %535 = vmatpush.msra.mxu2 %v71_v17  ;;  %v85_v27 = vld [vmem:[%s2410_s1 + $0x1c8] sm:$0xff]  ;;  %v52_v30 = vld [vmem:[%s2410_s1 + $0xc0] sm:$0xff]  ;;  %v67_v33 = vld [vmem:[%s2410_s1 + $0x138] sm:$0xff] }
   0xc   :  { %515 = vmatpush.msra.mxu1 %v55_v18  ;;  %496 = vmatpush.msra.mxu0 %v38_v20  ;;  %v84_v31 = vld [vmem:[%s2410_s1 + $0x1c0] sm:$0xff]  ;;  %v51_v34 = vld [vmem:[%s2410_s1 + $0xb8] sm:$0xff]  ;;  %v34_v36 = vld [vmem:[%s2410_s1 + $0x30] sm:$0xff] }
   0xd   :  { %555 = vmatpush.msra.mxu3 %v87_v19  ;;  %536 = vmatpush.msra.mxu2 %v70_v21  ;;  %v83_v35 = vld [vmem:[%s2410_s1 + $0x1b8] sm:$0xff]  ;;  %v66_v37 = vld [vmem:[%s2410_s1 + $0x130] sm:$0xff]  ;;  %v33_v40 = vld [vmem:[%s2410_s1 + $0x28] sm:$0xff] }
   0xe   :  { %516 = vmatpush.msra.mxu1 %v54_v22  ;;  %497 = vmatpush.msra.mxu0 %v37_v24  ;;  %v50_v38 = vld [vmem:[%s2410_s1 + $0xb0] sm:$0xff]  ;;  %v65_v41 = vld [vmem:[%s2410_s1 + $0x128] sm:$0xff]  ;;  %v32_v44 = vld [vmem:[%s2410_s1 + $0x20] sm:$0xff] }
   0xf   :  { %556 = vmatpush.msra.mxu3 %v86_v23  ;;  %537 = vmatpush.msra.mxu2 %v69_v25  ;;  %v82_v39 = vld [vmem:[%s2410_s1 + $0x1b0] sm:$0xff]  ;;  %v49_v42 = vld [vmem:[%s2410_s1 + $0xa8] sm:$0xff]  ;;  %v64_v45 = vld [vmem:[%s2410_s1 + $0x120] sm:$0xff] }
  0x10   :  { %517 = vmatpush.msra.mxu1 %v53_v26  ;;  %498 = vmatpush.msra.mxu0 %v36_v28  ;;  %v81_v43 = vld [vmem:[%s2410_s1 + $0x1a8] sm:$0xff]  ;;  %v48_v46 = vld [vmem:[%s2410_s1 + $0xa0] sm:$0xff]  ;;  %v31_v48 = vld [vmem:[%s2410_s1 + $0x18] sm:$0xff] }
  0x11   :  { %557 = vmatpush.msra.mxu3 %v85_v27  ;;  %538 = vmatpush.msra.mxu2 %v68_v29  ;;  %v80_v47 = vld [vmem:[%s2410_s1 + $0x1a0] sm:$0xff]  ;;  %v63_v49 = vld [vmem:[%s2410_s1 + $0x118] sm:$0xff]  ;;  %v30_v52 = vld [vmem:[%s2410_s1 + $0x10] sm:$0xff] }
  0x12   :  { %518 = vmatpush.msra.mxu1 %v52_v30  ;;  %499 = vmatpush.msra.mxu0 %v35_v32  ;;  %v47_v50 = vld [vmem:[%s2410_s1 + $0x98] sm:$0xff]  ;;  %v62_v53 = vld [vmem:[%s2410_s1 + $0x110] sm:$0xff]  ;;  %v29_v56 = vld [vmem:[%s2410_s1 + $0x8] sm:$0xff] }
  0x13   :  { %558 = vmatpush.msra.mxu3 %v84_v31  ;;  %539 = vmatpush.msra.mxu2 %v67_v33  ;;  %v79_v51 = vld [vmem:[%s2410_s1 + $0x198] sm:$0xff]  ;;  %v46_v54 = vld [vmem:[%s2410_s1 + $0x90] sm:$0xff]  ;;  %v61_v57 = vld [vmem:[%s2410_s1 + $0x108] sm:$0xff] }
  0x14   :  { %519 = vmatpush.msra.mxu1 %v51_v34  ;;  %500 = vmatpush.msra.mxu0 %v34_v36  ;;  %v78_v55 = vld [vmem:[%s2410_s1 + $0x190] sm:$0xff]  ;;  %v45_v58 = vld [vmem:[%s2410_s1 + $0x88] sm:$0xff]  ;;  %v28_v60 = vld [vmem:[%s2410_s1] sm:$0xff] }
  0x15   :  { %559 = vmatpush.msra.mxu3 %v83_v35  ;;  %540 = vmatpush.msra.mxu2 %v66_v37  ;;  %v77_v59 = vld [vmem:[%s2410_s1 + $0x188] sm:$0xff]  ;;  %v60_v61 = vld [vmem:[%s2410_s1 + $0x100] sm:$0xff]  ;;  %v107_v62 = vld [vmem:[%s2410_s1 + $0x278] sm:$0xff] }
  0x16   :  { %520 = vmatpush.msra.mxu1 %v50_v38  ;;  %501 = vmatpush.msra.mxu0 %v33_v40  ;;  %v139_v63 = vld [vmem:[%s2410_s1 + $0x378] sm:$0xff]  ;;  %v44_v0 = vld [vmem:[%s2410_s1 + $0x80] sm:$0xff]  ;;  %v106_v2 = vld [vmem:[%s2410_s1 + $0x270] sm:$0xff] }
  0x17   :  { %560 = vmatpush.msra.mxu3 %v82_v39  ;;  %541 = vmatpush.msra.mxu2 %v65_v41  ;;  %v76_v1 = vld [vmem:[%s2410_s1 + $0x180] sm:$0xff]  ;;  %v123_v3 = vld [vmem:[%s2410_s1 + $0x2f8] sm:$0xff]  ;;  %v138_v4 = vld [vmem:[%s2410_s1 + $0x370] sm:$0xff] }
  0x18   :  { %521 = vmatpush.msra.mxu1 %v49_v42  ;;  %502 = vmatpush.msra.mxu0 %v32_v44  ;;  %v155_v5 = vld [vmem:[%s2410_s1 + $0x3f8] sm:$0xff]  ;;  %v105_v6 = vld [vmem:[%s2410_s1 + $0x268] sm:$0xff]  ;;  %v122_v7 = vld [vmem:[%s2410_s1 + $0x2f0] sm:$0xff] }
  0x19   :  { %561 = vmatpush.msra.mxu3 %v81_v43  ;;  %542 = vmatpush.msra.mxu2 %v64_v45  ;;  %v137_v8 = vld [vmem:[%s2410_s1 + $0x368] sm:$0xff]  ;;  %v154_v9 = vld [vmem:[%s2410_s1 + $0x3f0] sm:$0xff]  ;;  %v104_v10 = vld [vmem:[%s2410_s1 + $0x260] sm:$0xff] }
  0x1a   :  { %522 = vmatpush.msra.mxu1 %v48_v46  ;;  %503 = vmatpush.msra.mxu0 %v31_v48  ;;  %v121_v11 = vld [vmem:[%s2410_s1 + $0x2e8] sm:$0xff]  ;;  %v136_v12 = vld [vmem:[%s2410_s1 + $0x360] sm:$0xff]  ;;  %v103_v14 = vld [vmem:[%s2410_s1 + $0x258] sm:$0xff] }
  0x1b   :  { %562 = vmatpush.msra.mxu3 %v80_v47  ;;  %543 = vmatpush.msra.mxu2 %v63_v49  ;;  %v153_v13 = vld [vmem:[%s2410_s1 + $0x3e8] sm:$0xff]  ;;  %v120_v15 = vld [vmem:[%s2410_s1 + $0x2e0] sm:$0xff]  ;;  %v135_v16 = vld [vmem:[%s2410_s1 + $0x358] sm:$0xff] }
  0x1c   :  { %523 = vmatpush.msra.mxu1 %v47_v50  ;;  %504 = vmatpush.msra.mxu0 %v30_v52  ;;  %v152_v17 = vld [vmem:[%s2410_s1 + $0x3e0] sm:$0xff]  ;;  %v102_v18 = vld [vmem:[%s2410_s1 + $0x250] sm:$0xff]  ;;  %v119_v19 = vld [vmem:[%s2410_s1 + $0x2d8] sm:$0xff] }
  0x1d   :  { %563 = vmatpush.msra.mxu3 %v79_v51  ;;  %544 = vmatpush.msra.mxu2 %v62_v53  ;;  %v134_v20 = vld [vmem:[%s2410_s1 + $0x350] sm:$0xff]  ;;  %v151_v21 = vld [vmem:[%s2410_s1 + $0x3d8] sm:$0xff]  ;;  %v21_v22 = vld [vmem:[%s2409_s0] sm:$0xff] }
  0x1e   :  { %524 = vmatpush.msra.mxu1 %v46_v54  ;;  %505 = vmatpush.msra.mxu0 %v29_v56  ;;  %v101_v23 = vld [vmem:[%s2410_s1 + $0x248] sm:$0xff]  ;;  %v118_v24 = vld [vmem:[%s2410_s1 + $0x2d0] sm:$0xff]  ;;  %431 = vst [vmem:[#allocation1] ss:$4 sm:$0xff] %v21_v22  ;;  %v100_v27 = vld [vmem:[%s2410_s1 + $0x240] sm:$0xff] }
  0x1f   :  { %564 = vmatpush.msra.mxu3 %v78_v55  ;;  %545 = vmatpush.msra.mxu2 %v61_v57  ;;  %v133_v25 = vld [vmem:[%s2410_s1 + $0x348] sm:$0xff]  ;;  %v150_v26 = vld [vmem:[%s2410_s1 + $0x3d0] sm:$0xff]  ;;  %v132_v29 = vld [vmem:[%s2410_s1 + $0x340] sm:$0xff] }
  0x20   :  { %525 = vmatpush.msra.mxu1 %v45_v58  ;;  %506 = vmatpush.msra.mxu0 %v28_v60  ;;  %v117_v28 = vld [vmem:[%s2410_s1 + $0x2c8] sm:$0xff]  ;;  %v99_v31 = vld [vmem:[%s2410_s1 + $0x238] sm:$0xff]  ;;  %v116_v32 = vld [vmem:[%s2410_s1 + $0x2c0] sm:$0xff] }
  0x21   :  { %565 = vmatpush.msra.mxu3 %v77_v59  ;;  %546 = vmatpush.msra.mxu2 %v60_v61  ;;  %v149_v30 = vld [vmem:[%s2410_s1 + $0x3c8] sm:$0xff]  ;;  %v131_v33 = vld [vmem:[%s2410_s1 + $0x338] sm:$0xff]  ;;  %v148_v34 = vld [vmem:[%s2410_s1 + $0x3c0] sm:$0xff] }
  0x22   :  { %571 = vmatpush.msrb.mxu0 %v107_v62  ;;  %526 = vmatpush.msra.mxu1 %v44_v0  ;;  %v98_v35 = vld [vmem:[%s2410_s1 + $0x230] sm:$0xff]  ;;  %v115_v36 = vld [vmem:[%s2410_s1 + $0x2b8] sm:$0xff]  ;;  %v22_v39 = vld [vmem:[%s2409_s0 + $0x8] sm:$0xff] }
  0x23   :  { %611 = vmatpush.msrb.mxu2 %v139_v63  ;;  %566 = vmatpush.msra.mxu3 %v76_v1  ;;  %v130_v37 = vld [vmem:[%s2410_s1 + $0x330] sm:$0xff]  ;;  %v147_v38 = vld [vmem:[%s2410_s1 + $0x3b8] sm:$0xff]  ;;  %v97_v40 = vld [vmem:[%s2410_s1 + $0x228] sm:$0xff]  ;;  %433 = vst [vmem:[#allocation1 + $0x20] ss:$4 sm:$0xff] %v22_v39 }
  0x24   :  { %572 = vmatpush.msrb.mxu0 %v106_v2  ;;  %591 = vmatpush.msrb.mxu1 %v123_v3  ;;  %v114_v41 = vld [vmem:[%s2410_s1 + $0x2b0] sm:$0xff]  ;;  %v129_v43 = vld [vmem:[%s2410_s1 + $0x328] sm:$0xff]  ;;  %v96_v49 = vld [vmem:[%s2410_s1 + $0x220] sm:$0xff] }
  0x25   :  { %612 = vmatpush.msrb.mxu2 %v138_v4  ;;  %631 = vmatpush.msrb.mxu3 %v155_v5  ;;  %v23_v42 = vld [vmem:[%s2409_s0 + $0x10] sm:$0xff]  ;;  %v1434_v45 = vld.sshfl [vmem:[#allocation1] sm:$0xff pattern:$0x73625140]  ;;  %v113_v50 = vld [vmem:[%s2410_s1 + $0x2a8] sm:$0xff] }
  0x26   :  { %573 = vmatpush.msrb.mxu0 %v105_v6  ;;  %592 = vmatpush.msrb.mxu1 %v122_v7  ;;  %v436_v44 = vld.sshfl [vmem:[#allocation1 + $0x10] sm:$0xff pattern:$0x73625140]  ;;  %v1436_v46 = vld.sshfl [vmem:[#allocation1 + $0x18] sm:$0xff pattern:$0x73625140] }
  0x27   :  { %613 = vmatpush.msrb.mxu2 %v137_v8  ;;  %632 = vmatpush.msrb.mxu3 %v154_v9  ;;  %v1438_v47 = vld.sshfl [vmem:[#allocation1 + $0x8] sm:$0xff pattern:$0x73625140]  ;;  %v146_v48 = vld [vmem:[%s2410_s1 + $0x3b0] sm:$0xff]  ;;  %v128_v51 = vld [vmem:[%s2410_s1 + $0x320] sm:$0xff] }
  0x28   :  { %574 = vmatpush.msrb.mxu0 %v104_v10  ;;  %593 = vmatpush.msrb.mxu1 %v121_v11  ;;  %442 = vst [vmem:[#allocation1] ss:$4 sm:$0xff] %v23_v42  ;;  %v145_v52 = vld [vmem:[%s2410_s1 + $0x3a8] sm:$0xff]  ;;  %v95_v53 = vld [vmem:[%s2410_s1 + $0x218] sm:$0xff]  ;;  %v112_v54 = vld [vmem:[%s2410_s1 + $0x2a0] sm:$0xff] }
  0x29   :  { %614 = vmatpush.msrb.mxu2 %v136_v12  ;;  %633 = vmatpush.msrb.mxu3 %v153_v13  ;;  %v127_v55 = vld [vmem:[%s2410_s1 + $0x318] sm:$0xff]  ;;  %v144_v56 = vld [vmem:[%s2410_s1 + $0x3a0] sm:$0xff]  ;;  %v94_v57 = vld [vmem:[%s2410_s1 + $0x210] sm:$0xff] }
  0x2a   :  { %575 = vmatpush.msrb.mxu0 %v103_v14  ;;  %594 = vmatpush.msrb.mxu1 %v120_v15  ;;  %v111_v58 = vld [vmem:[%s2410_s1 + $0x298] sm:$0xff]  ;;  %v1476_v60 = vld.sshfl [vmem:[#allocation1 + $0x30] sm:$0xff pattern:$0x73625140]  ;;  %v93_v2 = vld [vmem:[%s2410_s1 + $0x208] sm:$0xff] }
  0x2b   :  { %615 = vmatpush.msrb.mxu2 %v135_v16  ;;  %634 = vmatpush.msrb.mxu3 %v152_v17  ;;  %v24_v59 = vld [vmem:[%s2409_s0 + $0x18] sm:$0xff]  ;;  %v1478_v61 = vld.sshfl [vmem:[#allocation1 + $0x20] sm:$0xff pattern:$0x73625140]  ;;  %v126_v0 = vld [vmem:[%s2410_s1 + $0x310] sm:$0xff] }
  0x2c   :  { %576 = vmatpush.msrb.mxu0 %v102_v18  ;;  %595 = vmatpush.msrb.mxu1 %v119_v19  ;;  %v1480_v62 = vld.sshfl [vmem:[#allocation1 + $0x38] sm:$0xff pattern:$0x73625140]  ;;  %v1482_v63 = vld.sshfl [vmem:[#allocation1 + $0x28] sm:$0xff pattern:$0x73625140] }
  0x2d   :  { %616 = vmatpush.msrb.mxu2 %v134_v20  ;;  %635 = vmatpush.msrb.mxu3 %v151_v21  ;;  %v143_v1 = vld [vmem:[%s2410_s1 + $0x398] sm:$0xff]  ;;  %443 = vst [vmem:[#allocation1 + $0x20] ss:$4 sm:$0xff] %v24_v59  ;;  %v110_v3 = vld [vmem:[%s2410_s1 + $0x290] sm:$0xff]  ;;  %v125_v4 = vld [vmem:[%s2410_s1 + $0x308] sm:$0xff] }
  0x2e   :  { %577 = vmatpush.msrb.mxu0 %v101_v23  ;;  %596 = vmatpush.msrb.mxu1 %v118_v24  ;;  %v142_v5 = vld [vmem:[%s2410_s1 + $0x390] sm:$0xff]  ;;  %v92_v6 = vld [vmem:[%s2410_s1 + $0x200] sm:$0xff]  ;;  %v109_v7 = vld [vmem:[%s2410_s1 + $0x288] sm:$0xff] }
  0x2f   :  { %617 = vmatpush.msrb.mxu2 %v133_v25  ;;  %636 = vmatpush.msrb.mxu3 %v150_v26  ;;  %v124_v8 = vld [vmem:[%s2410_s1 + $0x300] sm:$0xff]  ;;  %v141_v9 = vld [vmem:[%s2410_s1 + $0x388] sm:$0xff]  ;;  %v171_v10 = vld [vmem:[%s2410_s1 + $0x478] sm:$0xff] }
  0x30   :  { %578 = vmatpush.msrb.mxu0 %v100_v27  ;;  %597 = vmatpush.msrb.mxu1 %v117_v28  ;;  %v203_v11 = vld [vmem:[%s2410_s1 + $0x578] sm:$0xff]  ;;  %v108_v12 = vld [vmem:[%s2410_s1 + $0x280] sm:$0xff]  ;;  %v170_v14 = vld [vmem:[%s2410_s1 + $0x470] sm:$0xff] }
  0x31   :  { %618 = vmatpush.msrb.mxu2 %v132_v29  ;;  %637 = vmatpush.msrb.mxu3 %v149_v30  ;;  %v140_v13 = vld [vmem:[%s2410_s1 + $0x380] sm:$0xff]  ;;  %v187_v15 = vld [vmem:[%s2410_s1 + $0x4f8] sm:$0xff]  ;;  %v202_v16 = vld [vmem:[%s2410_s1 + $0x570] sm:$0xff] }
  0x32   :  { %579 = vmatpush.msrb.mxu0 %v99_v31  ;;  %598 = vmatpush.msrb.mxu1 %v116_v32  ;;  %v219_v17 = vld [vmem:[%s2410_s1 + $0x5f8] sm:$0xff]  ;;  %v169_v18 = vld [vmem:[%s2410_s1 + $0x468] sm:$0xff]  ;;  %v186_v19 = vld [vmem:[%s2410_s1 + $0x4f0] sm:$0xff] }
  0x33   :  { %619 = vmatpush.msrb.mxu2 %v131_v33  ;;  %638 = vmatpush.msrb.mxu3 %v148_v34  ;;  %v201_v20 = vld [vmem:[%s2410_s1 + $0x568] sm:$0xff]  ;;  %v218_v21 = vld [vmem:[%s2410_s1 + $0x5f0] sm:$0xff]  ;;  %v168_v22 = vld [vmem:[%s2410_s1 + $0x460] sm:$0xff] }
  0x34   :  { %580 = vmatpush.msrb.mxu0 %v98_v35  ;;  %599 = vmatpush.msrb.mxu1 %v115_v36  ;;  %v185_v23 = vld [vmem:[%s2410_s1 + $0x4e8] sm:$0xff]  ;;  %v200_v24 = vld [vmem:[%s2410_s1 + $0x560] sm:$0xff]  ;;  %v1564_v26 = vld.sshfl [vmem:[#allocation1 + $0x10] sm:$0xff pattern:$0x73625140] }
  0x35   :  { %620 = vmatpush.msrb.mxu2 %v130_v37  ;;  %639 = vmatpush.msrb.mxu3 %v147_v38  ;;  %v1562_v25 = vld.sshfl [vmem:[#allocation1] sm:$0xff pattern:$0x73625140]  ;;  %v1566_v27 = vld.sshfl [vmem:[#allocation1 + $0x8] sm:$0xff pattern:$0x73625140] }
  0x36   :  { %581 = vmatpush.msrb.mxu0 %v97_v40  ;;  %600 = vmatpush.msrb.mxu1 %v114_v41  ;;  %v217_v28 = vld [vmem:[%s2410_s1 + $0x5e8] sm:$0xff]  ;;  %v25_v29 = vld [vmem:[%s2409_s0 + $0x20] sm:$0xff]  ;;  %v1574_v30 = vld.sshfl [vmem:[#allocation1 + $0x18] sm:$0xff pattern:$0x73625140] }
  0x37   :  { %621 = vmatpush.msrb.mxu2 %v129_v43  ;;  %640 = vmatpush.msrb.mxu3 %v146_v48  ;;  %v167_v31 = vld [vmem:[%s2410_s1 + $0x458] sm:$0xff]  ;;  %v184_v32 = vld [vmem:[%s2410_s1 + $0x4e0] sm:$0xff]  ;;  %452 = vst [vmem:[#allocation1] ss:$4 sm:$0xff] %v25_v29  ;;  %v166_v35 = vld [vmem:[%s2410_s1 + $0x450] sm:$0xff] }
  0x38   :  { %582 = vmatpush.msrb.mxu0 %v96_v49  ;;  %601 = vmatpush.msrb.mxu1 %v113_v50  ;;  %v199_v33 = vld [vmem:[%s2410_s1 + $0x558] sm:$0xff]  ;;  %v216_v34 = vld [vmem:[%s2410_s1 + $0x5e0] sm:$0xff] }
  0x39   :  { %622 = vmatpush.msrb.mxu2 %v128_v51  ;;  %641 = vmatpush.msrb.mxu3 %v145_v52  ;;  %v183_v36 = vld [vmem:[%s2410_s1 + $0x4d8] sm:$0xff] }
  0x3a   :  { %583 = vmatpush.msrb.mxu0 %v95_v53  ;;  %602 = vmatpush.msrb.mxu1 %v112_v54 }
  0x3b   :  { %623 = vmatpush.msrb.mxu2 %v127_v55  ;;  %642 = vmatpush.msrb.mxu3 %v144_v56 }
  0x3c   :  { %584 = vmatpush.msrb.mxu0 %v94_v57  ;;  %603 = vmatpush.msrb.mxu1 %v111_v58 }
  0x3d   :  { %624 = vmatpush.msrb.mxu2 %v126_v0  ;;  %643 = vmatpush.msrb.mxu3 %v143_v1 }
  0x3e   :  { %585 = vmatpush.msrb.mxu0 %v93_v2  ;;  %604 = vmatpush.msrb.mxu1 %v110_v3 }
  0x3f   :  { %625 = vmatpush.msrb.mxu2 %v125_v4  ;;  %644 = vmatpush.msrb.mxu3 %v142_v5 }
  0x40   :  { %547 = vmatmul.f32.vlgmr.msra.gmra.mxu2 %v436_v44  ;;  %586 = vmatpush.msrb.mxu0 %v92_v6 }
  0x41   :  { %605 = vmatpush.msrb.mxu1 %v109_v7  ;;  %626 = vmatpush.msrb.mxu2 %v124_v8 }
  0x42   :  { %645 = vmatpush.msrb.mxu3 %v141_v9  ;;  %507 = vmatmul.f32.vlgmr.msra.gmra.mxu0 %v1434_v45 }
  0x43   :  { %567 = vmatmul.f32.vlgmr.msra.gmra.mxu3 %v1436_v46  ;;  %651 = vmatpush.msra.mxu0 %v171_v10 }
  0x44   :  { %691 = vmatpush.msra.mxu2 %v203_v11  ;;  %606 = vmatpush.msrb.mxu1 %v108_v12 }
  0x45   :  { %646 = vmatpush.msrb.mxu3 %v140_v13  ;;  %527 = vmatmul.f32.vlgmr.msra.gmra.mxu1 %v1438_v47 }
  0x46   :  { %652 = vmatpush.msra.mxu0 %v170_v14  ;;  %671 = vmatpush.msra.mxu1 %v187_v15 }
  0x47   :  { %692 = vmatpush.msra.mxu2 %v202_v16  ;;  %711 = vmatpush.msra.mxu3 %v219_v17 }
  0x48   :  { %653 = vmatpush.msra.mxu0 %v169_v18  ;;  %672 = vmatpush.msra.mxu1 %v186_v19 }
  0x49   :  { %693 = vmatpush.msra.mxu2 %v201_v20  ;;  %712 = vmatpush.msra.mxu3 %v218_v21 }
  0x4a   :  { %627 = vmatmul.f32.vlgmr.msrb.gmra.mxu2 %v1476_v60  ;;  %654 = vmatpush.msra.mxu0 %v168_v22 }
  0x4b   :  { %673 = vmatpush.msra.mxu1 %v185_v23  ;;  %694 = vmatpush.msra.mxu2 %v200_v24 }
  0x4c   :  { %713 = vmatpush.msra.mxu3 %v217_v28  ;;  %587 = vmatmul.f32.vlgmr.msrb.gmra.mxu0 %v1478_v61 }
  0x4d   :  { %647 = vmatmul.f32.vlgmr.msrb.gmra.mxu3 %v1480_v62  ;;  %655 = vmatpush.msra.mxu0 %v167_v31 }
  0x4e   :  { %10 = vsyncpa [#allocation3], 0  ;;  %674 = vmatpush.msra.mxu1 %v184_v32  ;;  %695 = vmatpush.msra.mxu2 %v199_v33  ;;  %v198_v37 = vld [vmem:[%s2410_s1 + $0x550] sm:$0xff]  ;;  %v215_v38 = vld [vmem:[%s2410_s1 + $0x5d8] sm:$0xff]  ;;  %vm488_vm0 = vcmask 523264   ;;  %s1079_s18 = smov [#allocation2]  }
  0x4f   :  { %714 = vmatpush.msra.mxu3 %v216_v34  ;;  %607 = vmatmul.f32.vlgmr.msrb.gmra.mxu1 %v1482_v63  ;;  %v165_v39 = vld [vmem:[%s2410_s1 + $0x448] sm:$0xff]  ;;  %v182_v40 = vld [vmem:[%s2410_s1 + $0x4d0] sm:$0xff]  ;;  %v164_v43 = vld [vmem:[%s2410_s1 + $0x440] sm:$0xff]  ;;  %s1040_s20 = sshll.u32 %s2414_s5, 4  ;;  %s1041_s20 = int_to_ptr.hbm [resolvable:$true] %s1040_s20 }
  0x50   :  { %656 = vmatpush.msra.mxu0 %v166_v35  ;;  %675 = vmatpush.msra.mxu1 %v183_v36  ;;  %v197_v41 = vld [vmem:[%s2410_s1 + $0x548] sm:$0xff]  ;;  %v214_v42 = vld [vmem:[%s2410_s1 + $0x5d0] sm:$0xff]  ;;  %v196_v45 = vld [vmem:[%s2410_s1 + $0x540] sm:$0xff] }
  0x51   :  { %696 = vmatpush.msra.mxu2 %v198_v37  ;;  %715 = vmatpush.msra.mxu3 %v215_v38  ;;  %v181_v44 = vld [vmem:[%s2410_s1 + $0x4c8] sm:$0xff]  ;;  %v163_v47 = vld [vmem:[%s2410_s1 + $0x438] sm:$0xff]  ;;  %v180_v48 = vld [vmem:[%s2410_s1 + $0x4c0] sm:$0xff] }
  0x52   :  { %657 = vmatpush.msra.mxu0 %v165_v39  ;;  %676 = vmatpush.msra.mxu1 %v182_v40  ;;  %v213_v46 = vld [vmem:[%s2410_s1 + $0x5c8] sm:$0xff]  ;;  %v195_v49 = vld [vmem:[%s2410_s1 + $0x538] sm:$0xff]  ;;  %v212_v50 = vld [vmem:[%s2410_s1 + $0x5c0] sm:$0xff] }
  0x53   :  { %697 = vmatpush.msra.mxu2 %v197_v41  ;;  %716 = vmatpush.msra.mxu3 %v214_v42  ;;  %v162_v51 = vld [vmem:[%s2410_s1 + $0x430] sm:$0xff]  ;;  %v179_v52 = vld [vmem:[%s2410_s1 + $0x4b8] sm:$0xff]  ;;  %v161_v55 = vld [vmem:[%s2410_s1 + $0x428] sm:$0xff] }
  0x54   :  { %658 = vmatpush.msra.mxu0 %v164_v43  ;;  %677 = vmatpush.msra.mxu1 %v181_v44  ;;  %v194_v53 = vld [vmem:[%s2410_s1 + $0x530] sm:$0xff]  ;;  %v211_v54 = vld [vmem:[%s2410_s1 + $0x5b8] sm:$0xff]  ;;  %v193_v57 = vld [vmem:[%s2410_s1 + $0x528] sm:$0xff] }
  0x55   :  { %698 = vmatpush.msra.mxu2 %v196_v45  ;;  %717 = vmatpush.msra.mxu3 %v213_v46  ;;  %v178_v56 = vld [vmem:[%s2410_s1 + $0x4b0] sm:$0xff]  ;;  %v160_v59 = vld [vmem:[%s2410_s1 + $0x420] sm:$0xff]  ;;  %v177_v60 = vld [vmem:[%s2410_s1 + $0x4a8] sm:$0xff] }
  0x56   :  { %659 = vmatpush.msra.mxu0 %v163_v47  ;;  %678 = vmatpush.msra.mxu1 %v180_v48  ;;  %v210_v58 = vld [vmem:[%s2410_s1 + $0x5b0] sm:$0xff]  ;;  %v192_v61 = vld [vmem:[%s2410_s1 + $0x520] sm:$0xff]  ;;  %v209_v62 = vld [vmem:[%s2410_s1 + $0x5a8] sm:$0xff] }
  0x57   :  { %699 = vmatpush.msra.mxu2 %v195_v49  ;;  %718 = vmatpush.msra.mxu3 %v212_v50  ;;  %v159_v63 = vld [vmem:[%s2410_s1 + $0x418] sm:$0xff]  ;;  %v176_v0 = vld [vmem:[%s2410_s1 + $0x4a0] sm:$0xff]  ;;  %v158_v3 = vld [vmem:[%s2410_s1 + $0x410] sm:$0xff] }
  0x58   :  { %660 = vmatpush.msra.mxu0 %v162_v51  ;;  %679 = vmatpush.msra.mxu1 %v179_v52  ;;  %v191_v1 = vld [vmem:[%s2410_s1 + $0x518] sm:$0xff]  ;;  %v208_v2 = vld [vmem:[%s2410_s1 + $0x5a0] sm:$0xff]  ;;  %v190_v5 = vld [vmem:[%s2410_s1 + $0x510] sm:$0xff] }
  0x59   :  { %700 = vmatpush.msra.mxu2 %v194_v53  ;;  %719 = vmatpush.msra.mxu3 %v211_v54  ;;  %v175_v4 = vld [vmem:[%s2410_s1 + $0x498] sm:$0xff]  ;;  %v157_v7 = vld [vmem:[%s2410_s1 + $0x408] sm:$0xff]  ;;  %v174_v8 = vld [vmem:[%s2410_s1 + $0x490] sm:$0xff] }
  0x5a   :  { %661 = vmatpush.msra.mxu0 %v161_v55  ;;  %680 = vmatpush.msra.mxu1 %v178_v56  ;;  %v207_v6 = vld [vmem:[%s2410_s1 + $0x598] sm:$0xff]  ;;  %v189_v9 = vld [vmem:[%s2410_s1 + $0x508] sm:$0xff]  ;;  %v206_v10 = vld [vmem:[%s2410_s1 + $0x590] sm:$0xff] }
  0x5b   :  { %701 = vmatpush.msra.mxu2 %v193_v57  ;;  %720 = vmatpush.msra.mxu3 %v210_v58  ;;  %v156_v11 = vld [vmem:[%s2410_s1 + $0x400] sm:$0xff]  ;;  %v173_v12 = vld [vmem:[%s2410_s1 + $0x488] sm:$0xff]  ;;  %v235_v15 = vld [vmem:[%s2410_s1 + $0x678] sm:$0xff] }
  0x5c   :  { %662 = vmatpush.msra.mxu0 %v160_v59  ;;  %681 = vmatpush.msra.mxu1 %v177_v60  ;;  %v188_v13 = vld [vmem:[%s2410_s1 + $0x500] sm:$0xff]  ;;  %v205_v14 = vld [vmem:[%s2410_s1 + $0x588] sm:$0xff]  ;;  %v267_v16 = vld [vmem:[%s2410_s1 + $0x778] sm:$0xff] }
  0x5d   :  { %702 = vmatpush.msra.mxu2 %v192_v61  ;;  %721 = vmatpush.msra.mxu3 %v209_v62  ;;  %v172_v17 = vld [vmem:[%s2410_s1 + $0x480] sm:$0xff]  ;;  %v234_v19 = vld [vmem:[%s2410_s1 + $0x670] sm:$0xff]  ;;  %v251_v20 = vld [vmem:[%s2410_s1 + $0x6f8] sm:$0xff] }
  0x5e   :  { %663 = vmatpush.msra.mxu0 %v159_v63  ;;  %682 = vmatpush.msra.mxu1 %v176_v0  ;;  %v204_v18 = vld [vmem:[%s2410_s1 + $0x580] sm:$0xff]  ;;  %v266_v21 = vld [vmem:[%s2410_s1 + $0x770] sm:$0xff]  ;;  %v283_v22 = vld [vmem:[%s2410_s1 + $0x7f8] sm:$0xff] }
  0x5f   :  { %703 = vmatpush.msra.mxu2 %v191_v1  ;;  %722 = vmatpush.msra.mxu3 %v208_v2  ;;  %v233_v23 = vld [vmem:[%s2410_s1 + $0x668] sm:$0xff]  ;;  %v250_v24 = vld [vmem:[%s2410_s1 + $0x6f0] sm:$0xff]  ;;  %v232_v28 = vld [vmem:[%s2410_s1 + $0x660] sm:$0xff] }
  0x60   :  { %664 = vmatpush.msra.mxu0 %v158_v3  ;;  %683 = vmatpush.msra.mxu1 %v175_v4  ;;  %v1767_v29 = vld.sshfl [vmem:[#allocation1 + $0x20] sm:$0xff pattern:$0x73625140]  ;;  %v1769_v31 = vld.sshfl [vmem:[#allocation1 + $0x30] sm:$0xff pattern:$0x73625140] }
  0x61   :  { %704 = vmatpush.msra.mxu2 %v190_v5  ;;  %723 = vmatpush.msra.mxu3 %v207_v6  ;;  %v1771_v32 = vld.sshfl [vmem:[#allocation1 + $0x28] sm:$0xff pattern:$0x73625140]  ;;  %v1779_v33 = vld.sshfl [vmem:[#allocation1 + $0x38] sm:$0xff pattern:$0x73625140] }
  0x62   :  { %665 = vmatpush.msra.mxu0 %v157_v7  ;;  %684 = vmatpush.msra.mxu1 %v174_v8  ;;  %v264_v34 = vld [vmem:[%s2410_s1 + $0x760] sm:$0xff]  ;;  %v281_v35 = vld [vmem:[%s2410_s1 + $0x7e8] sm:$0xff]  ;;  %v231_v36 = vld [vmem:[%s2410_s1 + $0x658] sm:$0xff] }
  0x63   :  { %705 = vmatpush.msra.mxu2 %v189_v9  ;;  %724 = vmatpush.msra.mxu3 %v206_v10  ;;  %v248_v37 = vld [vmem:[%s2410_s1 + $0x6e0] sm:$0xff]  ;;  %v263_v38 = vld [vmem:[%s2410_s1 + $0x758] sm:$0xff]  ;;  %v230_v40 = vld [vmem:[%s2410_s1 + $0x650] sm:$0xff] }
  0x64   :  { %666 = vmatpush.msra.mxu0 %v156_v11  ;;  %685 = vmatpush.msra.mxu1 %v173_v12  ;;  %v280_v39 = vld [vmem:[%s2410_s1 + $0x7e0] sm:$0xff]  ;;  %v247_v41 = vld [vmem:[%s2410_s1 + $0x6d8] sm:$0xff]  ;;  %v262_v42 = vld [vmem:[%s2410_s1 + $0x750] sm:$0xff] }
  0x65   :  { %706 = vmatpush.msra.mxu2 %v188_v13  ;;  %725 = vmatpush.msra.mxu3 %v205_v14  ;;  %v279_v43 = vld [vmem:[%s2410_s1 + $0x7d8] sm:$0xff]  ;;  %v229_v44 = vld [vmem:[%s2410_s1 + $0x648] sm:$0xff]  ;;  %v246_v45 = vld [vmem:[%s2410_s1 + $0x6d0] sm:$0xff] }
  0x66   :  { %667 = vmatmul.f32.vlgmr.msra.gmra.mxu0 %v1562_v25  ;;  %707 = vmatmul.f32.vlgmr.msra.gmra.mxu2 %v1564_v26  ;;  %v265_v25 = vld [vmem:[%s2410_s1 + $0x768] sm:$0xff]  ;;  %v282_v26 = vld [vmem:[%s2410_s1 + $0x7f0] sm:$0xff]  ;;  %v228_v48 = vld [vmem:[%s2410_s1 + $0x640] sm:$0xff] }
  0x67   :  { %731 = vmatpush.msrb.mxu0 %v235_v15  ;;  %771 = vmatpush.msrb.mxu2 %v267_v16  ;;  %v261_v46 = vld [vmem:[%s2410_s1 + $0x748] sm:$0xff]  ;;  %v278_v47 = vld [vmem:[%s2410_s1 + $0x7d0] sm:$0xff]  ;;  %v260_v50 = vld [vmem:[%s2410_s1 + $0x740] sm:$0xff] }
  0x68   :  { %686 = vmatpush.msra.mxu1 %v172_v17  ;;  %726 = vmatpush.msra.mxu3 %v204_v18  ;;  %v245_v49 = vld [vmem:[%s2410_s1 + $0x6c8] sm:$0xff]  ;;  %v227_v52 = vld [vmem:[%s2410_s1 + $0x638] sm:$0xff]  ;;  %v244_v53 = vld [vmem:[%s2410_s1 + $0x6c0] sm:$0xff] }
  0x69   :  { %687 = vmatmul.f32.vlgmr.msra.gmra.mxu1 %v1566_v27  ;;  %727 = vmatmul.f32.vlgmr.msra.gmra.mxu3 %v1574_v30  ;;  %v249_v27 = vld [vmem:[%s2410_s1 + $0x6e8] sm:$0xff]  ;;  %v259_v54 = vld [vmem:[%s2410_s1 + $0x738] sm:$0xff]  ;;  %v276_v55 = vld [vmem:[%s2410_s1 + $0x7c0] sm:$0xff] }
  0x6a   :  { %732 = vmatpush.msrb.mxu0 %v234_v19  ;;  %751 = vmatpush.msrb.mxu1 %v251_v20  ;;  %v26_v30 = vld [vmem:[%s2409_s0 + $0x28] sm:$0xff]  ;;  %v226_v56 = vld [vmem:[%s2410_s1 + $0x630] sm:$0xff]  ;;  %v243_v57 = vld [vmem:[%s2410_s1 + $0x6b8] sm:$0xff] }
  0x6b   :  { %772 = vmatpush.msrb.mxu2 %v266_v21  ;;  %791 = vmatpush.msrb.mxu3 %v283_v22  ;;  %453 = vst [vmem:[#allocation1 + $0x20] ss:$4 sm:$0xff] %v26_v30  ;;  %v277_v51 = vld [vmem:[%s2410_s1 + $0x7c8] sm:$0xff]  ;;  %v258_v58 = vld [vmem:[%s2410_s1 + $0x730] sm:$0xff]  ;;  %v275_v59 = vld [vmem:[%s2410_s1 + $0x7b8] sm:$0xff] }
  0x6c   :  { %733 = vmatpush.msrb.mxu0 %v233_v23  ;;  %752 = vmatpush.msrb.mxu1 %v250_v24  ;;  %v225_v60 = vld [vmem:[%s2410_s1 + $0x628] sm:$0xff]  ;;  %v242_v61 = vld [vmem:[%s2410_s1 + $0x6b0] sm:$0xff]  ;;  %v224_v0 = vld [vmem:[%s2410_s1 + $0x620] sm:$0xff] }
  0x6d   :  { %773 = vmatpush.msrb.mxu2 %v265_v25  ;;  %792 = vmatpush.msrb.mxu3 %v282_v26  ;;  %v257_v62 = vld [vmem:[%s2410_s1 + $0x728] sm:$0xff]  ;;  %v274_v63 = vld [vmem:[%s2410_s1 + $0x7b0] sm:$0xff]  ;;  %v256_v2 = vld [vmem:[%s2410_s1 + $0x720] sm:$0xff] }
  0x6e   :  { %734 = vmatpush.msrb.mxu0 %v232_v28  ;;  %753 = vmatpush.msrb.mxu1 %v249_v27  ;;  %v241_v1 = vld [vmem:[%s2410_s1 + $0x6a8] sm:$0xff]  ;;  %v223_v4 = vld [vmem:[%s2410_s1 + $0x618] sm:$0xff]  ;;  %v240_v5 = vld [vmem:[%s2410_s1 + $0x6a0] sm:$0xff] }
  0x6f   :  { %774 = vmatpush.msrb.mxu2 %v264_v34  ;;  %793 = vmatpush.msrb.mxu3 %v281_v35  ;;  %v273_v3 = vld [vmem:[%s2410_s1 + $0x7a8] sm:$0xff]  ;;  %v255_v6 = vld [vmem:[%s2410_s1 + $0x718] sm:$0xff]  ;;  %v272_v7 = vld [vmem:[%s2410_s1 + $0x7a0] sm:$0xff] }
  0x70   :  { %735 = vmatpush.msrb.mxu0 %v231_v36  ;;  %754 = vmatpush.msrb.mxu1 %v248_v37  ;;  %v222_v8 = vld [vmem:[%s2410_s1 + $0x610] sm:$0xff]  ;;  %v239_v9 = vld [vmem:[%s2410_s1 + $0x698] sm:$0xff]  ;;  %v221_v12 = vld [vmem:[%s2410_s1 + $0x608] sm:$0xff] }
  0x71   :  { %775 = vmatpush.msrb.mxu2 %v263_v38  ;;  %794 = vmatpush.msrb.mxu3 %v280_v39  ;;  %v254_v10 = vld [vmem:[%s2410_s1 + $0x710] sm:$0xff]  ;;  %v271_v11 = vld [vmem:[%s2410_s1 + $0x798] sm:$0xff]  ;;  %v253_v14 = vld [vmem:[%s2410_s1 + $0x708] sm:$0xff] }
  0x72   :  { %736 = vmatpush.msrb.mxu0 %v230_v40  ;;  %755 = vmatpush.msrb.mxu1 %v247_v41  ;;  %v238_v13 = vld [vmem:[%s2410_s1 + $0x690] sm:$0xff]  ;;  %v220_v16 = vld [vmem:[%s2410_s1 + $0x600] sm:$0xff]  ;;  %v237_v17 = vld [vmem:[%s2410_s1 + $0x688] sm:$0xff] }
  0x73   :  { %776 = vmatpush.msrb.mxu2 %v262_v42  ;;  %795 = vmatpush.msrb.mxu3 %v279_v43  ;;  %v270_v15 = vld [vmem:[%s2410_s1 + $0x790] sm:$0xff]  ;;  %v252_v18 = vld [vmem:[%s2410_s1 + $0x700] sm:$0xff]  ;;  %v269_v19 = vld [vmem:[%s2410_s1 + $0x788] sm:$0xff] }
  0x74   :  { %737 = vmatpush.msrb.mxu0 %v229_v44  ;;  %756 = vmatpush.msrb.mxu1 %v246_v45  ;;  %v299_v20 = vld [vmem:[%s2410_s1 + $0x878] sm:$0xff]  ;;  %v236_v22 = vld [vmem:[%s2410_s1 + $0x680] sm:$0xff]  ;;  %v298_v24 = vld [vmem:[%s2410_s1 + $0x870] sm:$0xff] }
  0x75   :  { %777 = vmatpush.msrb.mxu2 %v261_v46  ;;  %796 = vmatpush.msrb.mxu3 %v278_v47  ;;  %v331_v21 = vld [vmem:[%s2410_s1 + $0x978] sm:$0xff]  ;;  %v268_v23 = vld [vmem:[%s2410_s1 + $0x780] sm:$0xff]  ;;  %v330_v26 = vld [vmem:[%s2410_s1 + $0x970] sm:$0xff] }
  0x76   :  { %738 = vmatpush.msrb.mxu0 %v228_v48  ;;  %757 = vmatpush.msrb.mxu1 %v245_v49  ;;  %v315_v25 = vld [vmem:[%s2410_s1 + $0x8f8] sm:$0xff]  ;;  %v329_v27 = vld [vmem:[%s2410_s1 + $0x968] sm:$0xff]  ;;  %v296_v30 = vld [vmem:[%s2410_s1 + $0x860] sm:$0xff] }
  0x77   :  { %778 = vmatpush.msrb.mxu2 %v260_v50  ;;  %797 = vmatpush.msrb.mxu3 %v277_v51  ;;  %v347_v28 = vld [vmem:[%s2410_s1 + $0x9f8] sm:$0xff]  ;;  %v328_v34 = vld [vmem:[%s2410_s1 + $0x960] sm:$0xff]  ;;  %v345_v35 = vld [vmem:[%s2410_s1 + $0x9e8] sm:$0xff] }
  0x78   :  { %739 = vmatpush.msrb.mxu0 %v227_v52  ;;  %758 = vmatpush.msrb.mxu1 %v244_v53  ;;  %v295_v36 = vld [vmem:[%s2410_s1 + $0x858] sm:$0xff]  ;;  %v312_v37 = vld [vmem:[%s2410_s1 + $0x8e0] sm:$0xff]  ;;  %v294_v40 = vld [vmem:[%s2410_s1 + $0x850] sm:$0xff] }
  0x79   :  { %779 = vmatpush.msrb.mxu2 %v259_v54  ;;  %798 = vmatpush.msrb.mxu3 %v276_v55  ;;  %v327_v38 = vld [vmem:[%s2410_s1 + $0x958] sm:$0xff]  ;;  %v344_v39 = vld [vmem:[%s2410_s1 + $0x9e0] sm:$0xff]  ;;  %v326_v42 = vld [vmem:[%s2410_s1 + $0x950] sm:$0xff] }
  0x7a   :  { %740 = vmatpush.msrb.mxu0 %v226_v56  ;;  %759 = vmatpush.msrb.mxu1 %v243_v57  ;;  %v311_v41 = vld [vmem:[%s2410_s1 + $0x8d8] sm:$0xff]  ;;  %v293_v44 = vld [vmem:[%s2410_s1 + $0x848] sm:$0xff]  ;;  %v310_v45 = vld [vmem:[%s2410_s1 + $0x8d0] sm:$0xff] }
  0x7b   :  { %780 = vmatpush.msrb.mxu2 %v258_v58  ;;  %799 = vmatpush.msrb.mxu3 %v275_v59  ;;  %v343_v43 = vld [vmem:[%s2410_s1 + $0x9d8] sm:$0xff]  ;;  %v325_v46 = vld [vmem:[%s2410_s1 + $0x948] sm:$0xff]  ;;  %v342_v47 = vld [vmem:[%s2410_s1 + $0x9d0] sm:$0xff] }
  0x7c   :  { %741 = vmatpush.msrb.mxu0 %v225_v60  ;;  %760 = vmatpush.msrb.mxu1 %v242_v61  ;;  %v292_v48 = vld [vmem:[%s2410_s1 + $0x840] sm:$0xff]  ;;  %v309_v49 = vld [vmem:[%s2410_s1 + $0x8c8] sm:$0xff]  ;;  %v291_v52 = vld [vmem:[%s2410_s1 + $0x838] sm:$0xff] }
  0x7d   :  { %781 = vmatpush.msrb.mxu2 %v257_v62  ;;  %800 = vmatpush.msrb.mxu3 %v274_v63  ;;  %v324_v50 = vld [vmem:[%s2410_s1 + $0x940] sm:$0xff]  ;;  %v341_v51 = vld [vmem:[%s2410_s1 + $0x9c8] sm:$0xff]  ;;  %v323_v54 = vld [vmem:[%s2410_s1 + $0x938] sm:$0xff] }
  0x7e   :  { %742 = vmatpush.msrb.mxu0 %v224_v0  ;;  %761 = vmatpush.msrb.mxu1 %v241_v1  ;;  %v308_v53 = vld [vmem:[%s2410_s1 + $0x8c0] sm:$0xff]  ;;  %v290_v56 = vld [vmem:[%s2410_s1 + $0x830] sm:$0xff]  ;;  %v307_v57 = vld [vmem:[%s2410_s1 + $0x8b8] sm:$0xff] }
  0x7f   :  { %782 = vmatpush.msrb.mxu2 %v256_v2  ;;  %801 = vmatpush.msrb.mxu3 %v273_v3  ;;  %v340_v55 = vld [vmem:[%s2410_s1 + $0x9c0] sm:$0xff]  ;;  %v322_v58 = vld [vmem:[%s2410_s1 + $0x930] sm:$0xff]  ;;  %v339_v59 = vld [vmem:[%s2410_s1 + $0x9b8] sm:$0xff] }
  0x80   :  { %743 = vmatpush.msrb.mxu0 %v223_v4  ;;  %762 = vmatpush.msrb.mxu1 %v240_v5  ;;  %v289_v60 = vld [vmem:[%s2410_s1 + $0x828] sm:$0xff]  ;;  %v306_v61 = vld [vmem:[%s2410_s1 + $0x8b0] sm:$0xff]  ;;  %v288_v0 = vld [vmem:[%s2410_s1 + $0x820] sm:$0xff] }
  0x81   :  { %783 = vmatpush.msrb.mxu2 %v255_v6  ;;  %802 = vmatpush.msrb.mxu3 %v272_v7  ;;  %v321_v62 = vld [vmem:[%s2410_s1 + $0x928] sm:$0xff]  ;;  %v338_v63 = vld [vmem:[%s2410_s1 + $0x9b0] sm:$0xff]  ;;  %v320_v2 = vld [vmem:[%s2410_s1 + $0x920] sm:$0xff] }
  0x82   :  { %744 = vmatpush.msrb.mxu0 %v222_v8  ;;  %763 = vmatpush.msrb.mxu1 %v239_v9  ;;  %v305_v1 = vld [vmem:[%s2410_s1 + $0x8a8] sm:$0xff]  ;;  %v287_v4 = vld [vmem:[%s2410_s1 + $0x818] sm:$0xff]  ;;  %v304_v5 = vld [vmem:[%s2410_s1 + $0x8a0] sm:$0xff] }
  0x83   :  { %784 = vmatpush.msrb.mxu2 %v254_v10  ;;  %803 = vmatpush.msrb.mxu3 %v271_v11  ;;  %v337_v3 = vld [vmem:[%s2410_s1 + $0x9a8] sm:$0xff]  ;;  %v319_v6 = vld [vmem:[%s2410_s1 + $0x918] sm:$0xff]  ;;  %v336_v7 = vld [vmem:[%s2410_s1 + $0x9a0] sm:$0xff] }
  0x84   :  { %745 = vmatpush.msrb.mxu0 %v221_v12  ;;  %764 = vmatpush.msrb.mxu1 %v238_v13  ;;  %v286_v8 = vld [vmem:[%s2410_s1 + $0x810] sm:$0xff]  ;;  %v303_v9 = vld [vmem:[%s2410_s1 + $0x898] sm:$0xff]  ;;  %v285_v12 = vld [vmem:[%s2410_s1 + $0x808] sm:$0xff] }
  0x85   :  { %785 = vmatpush.msrb.mxu2 %v253_v14  ;;  %804 = vmatpush.msrb.mxu3 %v270_v15  ;;  %v318_v10 = vld [vmem:[%s2410_s1 + $0x910] sm:$0xff]  ;;  %v335_v11 = vld [vmem:[%s2410_s1 + $0x998] sm:$0xff]  ;;  %v317_v14 = vld [vmem:[%s2410_s1 + $0x908] sm:$0xff] }
  0x86   :  { %746 = vmatpush.msrb.mxu0 %v220_v16  ;;  %765 = vmatpush.msrb.mxu1 %v237_v17  ;;  %v302_v13 = vld [vmem:[%s2410_s1 + $0x890] sm:$0xff]  ;;  %v284_v16 = vld [vmem:[%s2410_s1 + $0x800] sm:$0xff]  ;;  %v301_v17 = vld [vmem:[%s2410_s1 + $0x888] sm:$0xff] }
  0x87   :  { %786 = vmatpush.msrb.mxu2 %v252_v18  ;;  %805 = vmatpush.msrb.mxu3 %v269_v19  ;;  %v334_v15 = vld [vmem:[%s2410_s1 + $0x990] sm:$0xff]  ;;  %v316_v18 = vld [vmem:[%s2410_s1 + $0x900] sm:$0xff]  ;;  %v333_v19 = vld [vmem:[%s2410_s1 + $0x988] sm:$0xff] }
  0x88   :  { %747 = vmatmul.f32.vlgmr.msrb.gmra.mxu0 %v1767_v29  ;;  %787 = vmatmul.f32.vlgmr.msrb.gmra.mxu2 %v1769_v31  ;;  %v297_v29 = vld [vmem:[%s2410_s1 + $0x868] sm:$0xff]  ;;  %v314_v31 = vld [vmem:[%s2410_s1 + $0x8f0] sm:$0xff] }
  0x89   :  { %811 = vmatpush.msra.mxu0 %v299_v20  ;;  %851 = vmatpush.msra.mxu2 %v331_v21  ;;  %v454_v20 = vld.sshfl [vmem:[#allocation1] sm:$0xff pattern:$0x73625140]  ;;  %v456_v21 = vld.sshfl [vmem:[#allocation1 + $0x10] sm:$0xff pattern:$0x73625140] }
  0x8a   :  { %766 = vmatpush.msrb.mxu1 %v236_v22  ;;  %806 = vmatpush.msrb.mxu3 %v268_v23  ;;  %v363_v22 = vld [vmem:[%s2410_s1 + $0xa78] sm:$0xff] }
  0x8b   :  { %767 = vmatmul.f32.vlgmr.msrb.gmra.mxu1 %v1771_v32  ;;  %807 = vmatmul.f32.vlgmr.msrb.gmra.mxu3 %v1779_v33  ;;  %v346_v32 = vld [vmem:[%s2410_s1 + $0x9f0] sm:$0xff]  ;;  %v313_v33 = vld [vmem:[%s2410_s1 + $0x8e8] sm:$0xff]  ;;  %v395_v23 = vld [vmem:[%s2410_s1 + $0xb78] sm:$0xff] }
  0x8c   :  { %812 = vmatpush.msra.mxu0 %v298_v24  ;;  %831 = vmatpush.msra.mxu1 %v315_v25  ;;  %v300_v24 = vld [vmem:[%s2410_s1 + $0x880] sm:$0xff] }
  0x8d   :  { %852 = vmatpush.msra.mxu2 %v330_v26  ;;  %871 = vmatpush.msra.mxu3 %v347_v28  ;;  %v332_v25 = vld [vmem:[%s2410_s1 + $0x980] sm:$0xff]  ;;  %v455_v26 = vld.sshfl [vmem:[#allocation1 + $0x8] sm:$0xff pattern:$0x73625140] }
  0x8e   :  { %813 = vmatpush.msra.mxu0 %v297_v29  ;;  %832 = vmatpush.msra.mxu1 %v314_v31  ;;  %v457_v28 = vld.sshfl [vmem:[#allocation1 + $0x18] sm:$0xff pattern:$0x73625140]  ;;  %v362_v29 = vld [vmem:[%s2410_s1 + $0xa70] sm:$0xff] }
  0x8f   :  { %853 = vmatpush.msra.mxu2 %v329_v27  ;;  %872 = vmatpush.msra.mxu3 %v346_v32  ;;  %v379_v31 = vld [vmem:[%s2410_s1 + $0xaf8] sm:$0xff]  ;;  %v394_v27 = vld [vmem:[%s2410_s1 + $0xb70] sm:$0xff] }
  0x90   :  { %814 = vmatpush.msra.mxu0 %v296_v30  ;;  %833 = vmatpush.msra.mxu1 %v313_v33  ;;  %v411_v32 = vld [vmem:[%s2410_s1 + $0xbf8] sm:$0xff]  ;;  %v361_v30 = vld [vmem:[%s2410_s1 + $0xa68] sm:$0xff]  ;;  %v378_v33 = vld [vmem:[%s2410_s1 + $0xaf0] sm:$0xff] }
  0x91   :  { %854 = vmatpush.msra.mxu2 %v328_v34  ;;  %873 = vmatpush.msra.mxu3 %v345_v35  ;;  %v393_v34 = vld [vmem:[%s2410_s1 + $0xb68] sm:$0xff]  ;;  %v410_v35 = vld [vmem:[%s2410_s1 + $0xbf0] sm:$0xff] }
  0x92   :  { %815 = vmatpush.msra.mxu0 %v295_v36  ;;  %834 = vmatpush.msra.mxu1 %v312_v37  ;;  %v360_v36 = vld [vmem:[%s2410_s1 + $0xa60] sm:$0xff]  ;;  %v377_v37 = vld [vmem:[%s2410_s1 + $0xae8] sm:$0xff] }
  0x93   :  { %855 = vmatpush.msra.mxu2 %v327_v38  ;;  %874 = vmatpush.msra.mxu3 %v344_v39  ;;  %v392_v38 = vld [vmem:[%s2410_s1 + $0xb60] sm:$0xff]  ;;  %v409_v39 = vld [vmem:[%s2410_s1 + $0xbe8] sm:$0xff] }
  0x94   :  { %816 = vmatpush.msra.mxu0 %v294_v40  ;;  %835 = vmatpush.msra.mxu1 %v311_v41  ;;  %v359_v40 = vld [vmem:[%s2410_s1 + $0xa58] sm:$0xff]  ;;  %v376_v41 = vld [vmem:[%s2410_s1 + $0xae0] sm:$0xff] }
  0x95   :  { %856 = vmatpush.msra.mxu2 %v326_v42  ;;  %875 = vmatpush.msra.mxu3 %v343_v43  ;;  %v391_v42 = vld [vmem:[%s2410_s1 + $0xb58] sm:$0xff]  ;;  %v408_v43 = vld [vmem:[%s2410_s1 + $0xbe0] sm:$0xff] }
  0x96   :  { %817 = vmatpush.msra.mxu0 %v293_v44  ;;  %836 = vmatpush.msra.mxu1 %v310_v45  ;;  %v358_v44 = vld [vmem:[%s2410_s1 + $0xa50] sm:$0xff]  ;;  %v375_v45 = vld [vmem:[%s2410_s1 + $0xad8] sm:$0xff] }
  0x97   :  { %857 = vmatpush.msra.mxu2 %v325_v46  ;;  %876 = vmatpush.msra.mxu3 %v342_v47  ;;  %v27_v46 = vld [vmem:[%s2409_s0 + $0x30] sm:$0x3] }
  0x98   :  { %818 = vmatpush.msra.mxu0 %v292_v48  ;;  %837 = vmatpush.msra.mxu1 %v309_v49  ;;  %v390_v47 = vld [vmem:[%s2410_s1 + $0xb50] sm:$0xff]  ;;  %v407_v48 = vld [vmem:[%s2410_s1 + $0xbd8] sm:$0xff]  ;;  %462 = vst [vmem:[#allocation1] ss:$4 sm:$0xff] %v27_v46  ;;  %v357_v49 = vld [vmem:[%s2410_s1 + $0xa48] sm:$0xff] }
  0x99   :  { %858 = vmatpush.msra.mxu2 %v324_v50  ;;  %877 = vmatpush.msra.mxu3 %v341_v51  ;;  %v374_v50 = vld [vmem:[%s2410_s1 + $0xad0] sm:$0xff]  ;;  %v389_v51 = vld [vmem:[%s2410_s1 + $0xb48] sm:$0xff]  ;;  %v1007_v46 = vld [vmem:[%s2412_s3 + $0x78] sm:$0xff] }
  0x9a   :  { %819 = vmatpush.msra.mxu0 %v291_v52  ;;  %838 = vmatpush.msra.mxu1 %v308_v53  ;;  %v406_v52 = vld [vmem:[%s2410_s1 + $0xbd0] sm:$0xff]  ;;  %v356_v53 = vld [vmem:[%s2410_s1 + $0xa40] sm:$0xff] }
  0x9b   :  { %859 = vmatpush.msra.mxu2 %v323_v54  ;;  %878 = vmatpush.msra.mxu3 %v340_v55  ;;  %v373_v54 = vld [vmem:[%s2410_s1 + $0xac8] sm:$0xff]  ;;  %v388_v55 = vld [vmem:[%s2410_s1 + $0xb40] sm:$0xff] }
  0x9c   :  { %820 = vmatpush.msra.mxu0 %v290_v56  ;;  %839 = vmatpush.msra.mxu1 %v307_v57  ;;  %v405_v56 = vld [vmem:[%s2410_s1 + $0xbc8] sm:$0xff]  ;;  %v355_v57 = vld [vmem:[%s2410_s1 + $0xa38] sm:$0xff] }
  0x9d   :  { %860 = vmatpush.msra.mxu2 %v322_v58  ;;  %879 = vmatpush.msra.mxu3 %v339_v59  ;;  %v372_v58 = vld [vmem:[%s2410_s1 + $0xac0] sm:$0xff]  ;;  %v387_v59 = vld [vmem:[%s2410_s1 + $0xb38] sm:$0xff] }
  0x9e   :  { %821 = vmatpush.msra.mxu0 %v289_v60  ;;  %840 = vmatpush.msra.mxu1 %v306_v61  ;;  %v404_v60 = vld [vmem:[%s2410_s1 + $0xbc0] sm:$0xff]  ;;  %v354_v61 = vld [vmem:[%s2410_s1 + $0xa30] sm:$0xff] }
  0x9f   :  { %861 = vmatpush.msra.mxu2 %v321_v62  ;;  %880 = vmatpush.msra.mxu3 %v338_v63  ;;  %v371_v62 = vld [vmem:[%s2410_s1 + $0xab8] sm:$0xff]  ;;  %v386_v63 = vld [vmem:[%s2410_s1 + $0xb30] sm:$0xff] }
  0xa0   :  { %822 = vmatpush.msra.mxu0 %v288_v0  ;;  %841 = vmatpush.msra.mxu1 %v305_v1  ;;  %v403_v0 = vld [vmem:[%s2410_s1 + $0xbb8] sm:$0xff]  ;;  %v353_v1 = vld [vmem:[%s2410_s1 + $0xa28] sm:$0xff] }
  0xa1   :  { %862 = vmatpush.msra.mxu2 %v320_v2  ;;  %881 = vmatpush.msra.mxu3 %v337_v3  ;;  %v370_v2 = vld [vmem:[%s2410_s1 + $0xab0] sm:$0xff]  ;;  %v385_v3 = vld [vmem:[%s2410_s1 + $0xb28] sm:$0xff] }
  0xa2   :  { %823 = vmatpush.msra.mxu0 %v287_v4  ;;  %842 = vmatpush.msra.mxu1 %v304_v5  ;;  %v402_v4 = vld [vmem:[%s2410_s1 + $0xbb0] sm:$0xff]  ;;  %v352_v5 = vld [vmem:[%s2410_s1 + $0xa20] sm:$0xff] }
  0xa3   :  { %863 = vmatpush.msra.mxu2 %v319_v6  ;;  %882 = vmatpush.msra.mxu3 %v336_v7  ;;  %v369_v6 = vld [vmem:[%s2410_s1 + $0xaa8] sm:$0xff]  ;;  %v384_v7 = vld [vmem:[%s2410_s1 + $0xb20] sm:$0xff] }
  0xa4   :  { %824 = vmatpush.msra.mxu0 %v286_v8  ;;  %843 = vmatpush.msra.mxu1 %v303_v9  ;;  %v401_v8 = vld [vmem:[%s2410_s1 + $0xba8] sm:$0xff]  ;;  %v351_v9 = vld [vmem:[%s2410_s1 + $0xa18] sm:$0xff] }
  0xa5   :  { %864 = vmatpush.msra.mxu2 %v318_v10  ;;  %883 = vmatpush.msra.mxu3 %v335_v11  ;;  %v368_v10 = vld [vmem:[%s2410_s1 + $0xaa0] sm:$0xff]  ;;  %v383_v11 = vld [vmem:[%s2410_s1 + $0xb18] sm:$0xff] }
  0xa6   :  { %825 = vmatpush.msra.mxu0 %v285_v12  ;;  %844 = vmatpush.msra.mxu1 %v302_v13  ;;  %v400_v12 = vld [vmem:[%s2410_s1 + $0xba0] sm:$0xff]  ;;  %v350_v13 = vld [vmem:[%s2410_s1 + $0xa10] sm:$0xff] }
  0xa7   :  { %865 = vmatpush.msra.mxu2 %v317_v14  ;;  %884 = vmatpush.msra.mxu3 %v334_v15  ;;  %v367_v14 = vld [vmem:[%s2410_s1 + $0xa98] sm:$0xff]  ;;  %v382_v15 = vld [vmem:[%s2410_s1 + $0xb10] sm:$0xff] }
  0xa8   :  { %826 = vmatpush.msra.mxu0 %v284_v16  ;;  %845 = vmatpush.msra.mxu1 %v301_v17  ;;  %v399_v16 = vld [vmem:[%s2410_s1 + $0xb98] sm:$0xff]  ;;  %v349_v17 = vld [vmem:[%s2410_s1 + $0xa08] sm:$0xff] }
  0xa9   :  { %866 = vmatpush.msra.mxu2 %v316_v18  ;;  %885 = vmatpush.msra.mxu3 %v333_v19  ;;  %v366_v18 = vld [vmem:[%s2410_s1 + $0xa90] sm:$0xff]  ;;  %v381_v19 = vld [vmem:[%s2410_s1 + $0xb08] sm:$0xff] }
  0xaa   :  { %827 = vmatmul.f32.vlgmr.msra.gmra.mxu0 %v454_v20  ;;  %867 = vmatmul.f32.vlgmr.msra.gmra.mxu2 %v456_v21  ;;  %v398_v20 = vld [vmem:[%s2410_s1 + $0xb90] sm:$0xff]  ;;  %v348_v21 = vld [vmem:[%s2410_s1 + $0xa00] sm:$0xff] }
  0xab   :  { %891 = vmatpush.msrb.mxu0 %v363_v22  ;;  %931 = vmatpush.msrb.mxu2 %v395_v23  ;;  %v365_v22 = vld [vmem:[%s2410_s1 + $0xa88] sm:$0xff]  ;;  %v380_v23 = vld [vmem:[%s2410_s1 + $0xb00] sm:$0xff] }
  0xac   :  { %846 = vmatpush.msra.mxu1 %v300_v24  ;;  %886 = vmatpush.msra.mxu3 %v332_v25  ;;  %v397_v24 = vld [vmem:[%s2410_s1 + $0xb88] sm:$0xff]  ;;  %v458_v25 = vld.sshfl [vmem:[#allocation1 + $0x20] sm:$0xff pattern:$0x73625140] }
  0xad   :  { %847 = vmatmul.f32.vlgmr.msra.gmra.mxu1 %v455_v26  ;;  %887 = vmatmul.f32.vlgmr.msra.gmra.mxu3 %v457_v28  ;;  %v460_v26 = vld.sshfl [vmem:[#allocation1 + $0x30] sm:$0xff pattern:$0x73625140]  ;;  %v419_v28 = vld [vmem:[%s2410_s1 + $0xc38] sm:$0xff] }
  0xae   :  { %892 = vmatpush.msrb.mxu0 %v362_v29  ;;  %911 = vmatpush.msrb.mxu1 %v379_v31  ;;  %v364_v29 = vld [vmem:[%s2410_s1 + $0xa80] sm:$0xff] }
  0xaf   :  { %932 = vmatpush.msrb.mxu2 %v394_v27  ;;  %951 = vmatpush.msrb.mxu3 %v411_v32  ;;  %v396_v31 = vld [vmem:[%s2410_s1 + $0xb80] sm:$0xff]  ;;  %v459_v27 = vld.sshfl [vmem:[#allocation1 + $0x28] sm:$0xff pattern:$0x73625140] }
  0xb0   :  { %893 = vmatpush.msrb.mxu0 %v361_v30  ;;  %912 = vmatpush.msrb.mxu1 %v378_v33  ;;  %v461_v32 = vld.sshfl [vmem:[#allocation1 + $0x38] sm:$0xff pattern:$0x73625140]  ;;  %v418_v30 = vld [vmem:[%s2410_s1 + $0xc30] sm:$0xff]  ;;  %v417_v33 = vld [vmem:[%s2410_s1 + $0xc28] sm:$0xff] }
  0xb1   :  { %933 = vmatpush.msrb.mxu2 %v393_v34  ;;  %952 = vmatpush.msrb.mxu3 %v410_v35  ;;  %v416_v34 = vld [vmem:[%s2410_s1 + $0xc20] sm:$0xff]  ;;  %v415_v35 = vld [vmem:[%s2410_s1 + $0xc18] sm:$0xff] }
  0xb2   :  { %894 = vmatpush.msrb.mxu0 %v360_v36  ;;  %913 = vmatpush.msrb.mxu1 %v377_v37  ;;  %v414_v36 = vld [vmem:[%s2410_s1 + $0xc10] sm:$0xff]  ;;  %v413_v37 = vld [vmem:[%s2410_s1 + $0xc08] sm:$0xff] }
  0xb3   :  { %934 = vmatpush.msrb.mxu2 %v392_v38  ;;  %953 = vmatpush.msrb.mxu3 %v409_v39  ;;  %v412_v38 = vld [vmem:[%s2410_s1 + $0xc00] sm:$0xff] }
  0xb4   :  { %895 = vmatpush.msrb.mxu0 %v359_v40  ;;  %914 = vmatpush.msrb.mxu1 %v376_v41  ;;  %v463_v39 = vld.sshfl [vmem:[#allocation1] sm:$0xff pattern:$0x73625140] }
  0xb5   :  { %935 = vmatpush.msrb.mxu2 %v391_v42  ;;  %954 = vmatpush.msrb.mxu3 %v408_v43  ;;  %v1051_v40 = vld [vmem:[%s2411_s2] ss:$0 sm:$0xff]  ;;  %s1038_s2 = sshll.u32 %s1079_s18, 4  ;;  %s1039_s2 = int_to_ptr.vmem [resolvable:$true] %s1038_s2 }
  0xb6   :  { %896 = vmatpush.msrb.mxu0 %v358_v44  ;;  %915 = vmatpush.msrb.mxu1 %v375_v45 }
  0xb7   :  { %936 = vmatpush.msrb.mxu2 %v390_v47  ;;  %955 = vmatpush.msrb.mxu3 %v407_v48  ;;  %v1006_v47 = vld [vmem:[%s2412_s3 + $0x70] sm:$0xff]  ;;  %v1005_v48 = vld [vmem:[%s2412_s3 + $0x68] sm:$0xff] }
  0xb8   :  { %897 = vmatpush.msrb.mxu0 %v357_v49  ;;  %916 = vmatpush.msrb.mxu1 %v374_v50 }
  0xb9   :  { %937 = vmatpush.msrb.mxu2 %v389_v51  ;;  %956 = vmatpush.msrb.mxu3 %v406_v52  ;;  %v1004_v51 = vld [vmem:[%s2412_s3 + $0x60] sm:$0xff]  ;;  %v1003_v52 = vld [vmem:[%s2412_s3 + $0x58] sm:$0xff] }
  0xba   :  { %898 = vmatpush.msrb.mxu0 %v356_v53  ;;  %917 = vmatpush.msrb.mxu1 %v373_v54 }
  0xbb   :  { %938 = vmatpush.msrb.mxu2 %v388_v55  ;;  %957 = vmatpush.msrb.mxu3 %v405_v56  ;;  %v1002_v55 = vld [vmem:[%s2412_s3 + $0x50] sm:$0xff] }
  0xbc   :  { %899 = vmatpush.msrb.mxu0 %v355_v57  ;;  %918 = vmatpush.msrb.mxu1 %v372_v58 }
  0xbd   :  { %939 = vmatpush.msrb.mxu2 %v387_v59  ;;  %958 = vmatpush.msrb.mxu3 %v404_v60 }
  0xbe   :  { %900 = vmatpush.msrb.mxu0 %v354_v61  ;;  %919 = vmatpush.msrb.mxu1 %v371_v62 }
  0xbf   :  { %940 = vmatpush.msrb.mxu2 %v386_v63  ;;  %959 = vmatpush.msrb.mxu3 %v403_v0  ;;  %v508_v41 = vpop.f32.mrf.mxu0 }
  0xc0   :  { %901 = vmatpush.msrb.mxu0 %v353_v1  ;;  %920 = vmatpush.msrb.mxu1 %v370_v2  ;;  %v509_v42 = vadd.f32 %v1051_v40, %v508_v41  ;;  %v1001_v1 = vld [vmem:[%s2412_s3 + $0x48] sm:$0xff] }
  0xc1   :  { %941 = vmatpush.msrb.mxu2 %v385_v3  ;;  %960 = vmatpush.msrb.mxu3 %v402_v4  ;;  %v1000_v3 = vld [vmem:[%s2412_s3 + $0x40] sm:$0xff]  ;;  %v999_v4 = vld [vmem:[%s2412_s3 + $0x38] sm:$0xff] }
  0xc2   :  { %902 = vmatpush.msrb.mxu0 %v352_v5  ;;  %921 = vmatpush.msrb.mxu1 %v369_v6  ;;  %v528_v43 = vpop.f32.mrf.mxu1 }
  0xc3   :  { %942 = vmatpush.msrb.mxu2 %v384_v7  ;;  %961 = vmatpush.msrb.mxu3 %v401_v8  ;;  %v529_v44 = vadd.f32 %v528_v43, %v509_v42  ;;  %v548_v45 = vpop.f32.mrf.mxu2  ;;  %v998_v8 = vld [vmem:[%s2412_s3 + $0x30] sm:$0xff] }
  0xc4   :  { %903 = vmatpush.msrb.mxu0 %v351_v9  ;;  %922 = vmatpush.msrb.mxu1 %v368_v10  ;;  %v997_v10 = vld [vmem:[%s2412_s3 + $0x28] sm:$0xff] }
  0xc5   :  { %943 = vmatpush.msrb.mxu2 %v383_v11  ;;  %962 = vmatpush.msrb.mxu3 %v400_v12  ;;  %v549_v49 = vadd.f32 %v548_v45, %v529_v44  ;;  %v996_v12 = vld [vmem:[%s2412_s3 + $0x20] sm:$0xff] }
  0xc6   :  { %904 = vmatpush.msrb.mxu0 %v350_v13  ;;  %923 = vmatpush.msrb.mxu1 %v367_v14  ;;  %v568_v50 = vpop.f32.mrf.mxu3  ;;  %v995_v14 = vld [vmem:[%s2412_s3 + $0x18] sm:$0xff]  ;;  %v1052_v44 = vld [vmem:[%s2413_s4] ss:$0 sm:$0xff] }
  0xc7   :  { %944 = vmatpush.msrb.mxu2 %v382_v15  ;;  %963 = vmatpush.msrb.mxu3 %v399_v16  ;;  %v569_v53 = vadd.f32 %v568_v50, %v549_v49 }
  0xc8   :  { %905 = vmatpush.msrb.mxu0 %v349_v17  ;;  %924 = vmatpush.msrb.mxu1 %v366_v18  ;;  %v994_v17 = vld [vmem:[%s2412_s3 + $0x10] sm:$0xff] }
  0xc9   :  { %945 = vmatpush.msrb.mxu2 %v381_v19  ;;  %964 = vmatpush.msrb.mxu3 %v398_v20  ;;  %v588_v54 = vpop.f32.mrf.mxu0  ;;  %v993_v20 = vld [vmem:[%s2412_s3 + $0x8] sm:$0xff] }
  0xca   :  { %906 = vmatpush.msrb.mxu0 %v348_v21  ;;  %925 = vmatpush.msrb.mxu1 %v365_v22  ;;  %v589_v56 = vadd.f32 %v588_v54, %v569_v53  ;;  %v992_v22 = vld [vmem:[%s2412_s3] sm:$0xff] }
  0xcb   :  { %946 = vmatpush.msrb.mxu2 %v380_v23  ;;  %965 = vmatpush.msrb.mxu3 %v397_v24 }
  0xcc   :  { %907 = vmatmul.f32.vlgmr.msrb.gmra.mxu0 %v458_v25  ;;  %947 = vmatmul.f32.vlgmr.msrb.gmra.mxu2 %v460_v26  ;;  %v608_v57 = vpop.f32.mrf.mxu1 }
  0xcd   :  { %979 = vmatpush.msra.mxu0 %v419_v28  ;;  %926 = vmatpush.msrb.mxu1 %v364_v29  ;;  %v609_v58 = vadd.f32 %v608_v57, %v589_v56  ;;  %v628_v59 = vpop.f32.mrf.mxu2 }
  0xce   :  { %966 = vmatpush.msrb.mxu3 %v396_v31  ;;  %927 = vmatmul.f32.vlgmr.msrb.gmra.mxu1 %v459_v27 }
  0xcf   :  { %967 = vmatmul.f32.vlgmr.msrb.gmra.mxu3 %v461_v32  ;;  %980 = vmatpush.msra.mxu0 %v418_v30  ;;  %v629_v60 = vadd.f32 %v628_v59, %v609_v58 }
  0xd0   :  { %1012 = vmatpush.msra.mxu1 %v1007_v46  ;;  %v648_v61 = vpop.f32.mrf.mxu3 }
  0xd1   :  { %981 = vmatpush.msra.mxu0 %v417_v33  ;;  %v649_v63 = vadd.f32 %v648_v61, %v629_v60 }
  0xd2   :  { %1013 = vmatpush.msra.mxu1 %v1006_v47 }
  0xd3   :  { %982 = vmatpush.msra.mxu0 %v416_v34 }
  0xd4   :  { %1014 = vmatpush.msra.mxu1 %v1005_v48 }
  0xd5   :  { %983 = vmatpush.msra.mxu0 %v415_v35 }
  0xd6   :  { %1015 = vmatpush.msra.mxu1 %v1004_v51 }
  0xd7   :  { %984 = vmatpush.msra.mxu0 %v414_v36 }
  0xd8   :  { %1016 = vmatpush.msra.mxu1 %v1003_v52 }
  0xd9   :  { %985 = vmatpush.msra.mxu0 %v413_v37 }
  0xda   :  { %1017 = vmatpush.msra.mxu1 %v1002_v55 }
  0xdb   :  { %986 = vmatpush.msra.mxu0 %v412_v38 }
  0xdc   :  { %1049 = vmatmul.msk.f32.vlgmr.msra.gmra.mxu0 %vm488_vm0, %v463_v39  ;;  %1018 = vmatpush.msra.mxu1 %v1001_v1 }
  0xde   :  { %1019 = vmatpush.msra.mxu1 %v1000_v3 }
  0xe0   :  { %1020 = vmatpush.msra.mxu1 %v999_v4 }
  0xe2   :  { %1021 = vmatpush.msra.mxu1 %v998_v8 }
  0xe3   :  { %v668_v62 = vpop.f32.mrf.mxu0 }
  0xe4   :  { %v669_v0 = vadd.f32 %v668_v62, %v649_v63  ;;  %1022 = vmatpush.msra.mxu1 %v997_v10 }
  0xe6   :  { %v688_v2 = vpop.f32.mrf.mxu1  ;;  %1023 = vmatpush.msra.mxu1 %v996_v12 }
  0xe7   :  { %v689_v6 = vadd.f32 %v688_v2, %v669_v0 }
  0xe8   :  { %1024 = vmatpush.msra.mxu1 %v995_v14 }
  0xe9   :  { %v708_v5 = vpop.f32.mrf.mxu2 }
  0xea   :  { %v709_v7 = vadd.f32 %v708_v5, %v689_v6  ;;  %1025 = vmatpush.msra.mxu1 %v994_v17 }
  0xec   :  { %v728_v9 = vpop.f32.mrf.mxu3  ;;  %1026 = vmatpush.msra.mxu1 %v993_v20 }
  0xed   :  { %v729_v13 = vadd.f32 %v728_v9, %v709_v7 }
  0xee   :  { %1027 = vmatpush.msra.mxu1 %v992_v22 }
 0x105   :  { %v748_v11 = vpop.f32.mrf.mxu0 }
 0x106   :  { %v749_v15 = vadd.f32 %v748_v11, %v729_v13 }
 0x108   :  { %v768_v16 = vpop.f32.mrf.mxu1 }
 0x109   :  { %v769_v19 = vadd.f32 %v768_v16, %v749_v15 }
 0x10b   :  { %v788_v18 = vpop.f32.mrf.mxu2 }
 0x10c   :  { %v789_v21 = vadd.f32 %v788_v18, %v769_v19 }
 0x10e   :  { %v808_v23 = vpop.f32.mrf.mxu3 }
 0x10f   :  { %v809_v25 = vadd.f32 %v808_v23, %v789_v21 }
 0x127   :  { %v828_v24 = vpop.f32.mrf.mxu0 }
 0x128   :  { %v829_v26 = vadd.f32 %v828_v24, %v809_v25 }
 0x12a   :  { %v848_v28 = vpop.f32.mrf.mxu1 }
 0x12b   :  { %v849_v31 = vadd.f32 %v848_v28, %v829_v26 }
 0x12d   :  { %v868_v29 = vpop.f32.mrf.mxu2 }
 0x12e   :  { %v869_v27 = vadd.f32 %v868_v29, %v849_v31 }
 0x130   :  { %v888_v32 = vpop.f32.mrf.mxu3 }
 0x131   :  { %v889_v33 = vadd.f32 %v888_v32, %v869_v27 }
 0x149   :  { %v908_v30 = vpop.f32.mrf.mxu0 }
 0x14a   :  { %v909_v34 = vadd.f32 %v908_v30, %v889_v33 }
 0x14b   :  { %v928_v35 = vpop.f32.mrf.mxu1 }
 0x14c   :  { %v929_v37 = vadd.f32 %v928_v35, %v909_v34 }
 0x14f   :  { %v948_v36 = vpop.f32.mrf.mxu2 }
 0x150   :  { %v949_v38 = vadd.f32 %v948_v36, %v929_v37 }
 0x152   :  { %v968_v39 = vpop.f32.mrf.mxu3 }
 0x153   :  { %v969_v40 = vadd.f32 %v968_v39, %v949_v38 }
 0x159   :  { %v988_v41 = vpop.f32.mrf.mxu0 }
 0x15a   :  { %v989_v42 = vadd.f32 %v988_v41, %v969_v40 }
 0x15c   :  { %v991_v43 = vmax.f32 %v989_v42, 0.0 }
 0x15e   :  { %1028 = vmatmul.f32.vlgmr.msra.gmra.mxu1 %v991_v43 }
 0x1db   :  { %v1029_v45 = vpop.f32.mrf.mxu1 }
 0x1dc   :  { %v1030_v46 = vadd.f32 %v1052_v44, %v1029_v45 }
 0x1de   :  { %1032 = vst [vmem:[#allocation2] sm:$0x3] %v1030_v46 }
 0x1df   :  { %1043 = dma.vmem_to_hbm [thread:$0]  %s1039_s2, 32, %s1041_s20, [#allocation3]  }
 0x1e0   :  { %1077 = dma.done.wait [#allocation3], 32  }
 0x1e1   :  { %1078 = vsyncadd [#allocation3], 4294967264 }
 0x1e2   :  { %1048 = vsyncpa [#allocation3], 1 }

</bundles_post_ra>
